<compile_context>
chip_gen: v7x
topology: tpu7x:2x2x1
jax: 0.10.0
libtpu: 0.0.40
codegen_flags: <defaults>
</compile_context>

<pallas_src>
import functools

import jax
import jax.numpy as jnp
from jax.experimental import pallas as pl
from jax.experimental.pallas import tpu as pltpu

H = 100          # LSTM hidden size (fixed by the module)
HP = 128         # padded hidden size (lane aligned)


# ----------------------------------------------------------------------------
# Pallas kernel: bidirectional LSTM over full sequence + final FC
# ----------------------------------------------------------------------------
def _bilstm_fc_kernel(x_ref,        # (T*B, E)   bf16, time-major-flattened embeddings
                      wih_ref,      # (E, 8*HP)  bf16 [fwd | bwd], gate order (i,f,o,g),
                                    #            i/f/o columns pre-scaled by 0.5
                      b_ref,        # (1, 8*HP)  f32 combined b_ih+b_hh, same layout/scale
                      whhf_ref,     # (HP, 4*HP) bf16 fwd recurrent weights (i/f/o * 0.5)
                      whhb_ref,     # (HP, 4*HP) bf16 bwd recurrent weights (i/f/o * 0.5)
                      wfc_ref,      # (2*HP, OUTP) bf16 final linear (padded rows/cols = 0)
                      bfc_ref,      # (1, OUTP)  f32
                      out_ref,      # (B, OUTP)  f32 lane-dense padded logits
                      gin_ref):     # scratch (T*B, 8*HP) f32 precomputed gate inputs
    TB = x_ref.shape[0]
    B = out_ref.shape[0]
    T = TB // B
    G = 4 * HP                      # per-direction gate width

    # (1) Hoisted input projection: one well-shaped bf16 matmul for every
    #     timestep and both directions, f32 accumulate, biases folded in.
    gin_ref[...] = (
        jnp.dot(x_ref[...], wih_ref[...], preferred_element_type=jnp.float32)
        + b_ref[...])

    whh_f = whhf_ref[...]           # (HP, 4*HP) bf16
    whh_b = whhb_ref[...]

    zeros = jnp.zeros((B, HP), jnp.float32)
    h_f, c_f = zeros, zeros
    h_b, c_b = zeros, zeros

    # (2) Recurrence: fully unrolled (T small & static); two independent
    #     per-direction 128x512 matmuls per step, none at step 0.
    for t in range(T):
        tb = T - 1 - t                                  # backward reads reversed time
        gates_f = gin_ref[t * B:(t + 1) * B, 0:G]
        gates_b = gin_ref[tb * B:(tb + 1) * B, G:2 * G]
        if t > 0:                                       # h0 = 0 -> no recurrent term
            gates_f = gates_f + jnp.dot(h_f.astype(jnp.bfloat16), whh_f,
                                        preferred_element_type=jnp.float32)
            gates_b = gates_b + jnp.dot(h_b.astype(jnp.bfloat16), whh_b,
                                        preferred_element_type=jnp.float32)

        # gate column order within each direction is (i, f, o, g).  The 0.5
        # input scale for i/f/o is folded into the weights, so sigmoid is a
        # single EUP tanh plus a VPU fma: sigmoid(z) = 0.5*tanh(z/2) + 0.5.
        s_f = 0.5 * jnp.tanh(gates_f[:, 0:3 * HP]) + 0.5   # [i | f | o]
        g_f = jnp.tanh(gates_f[:, 3 * HP:4 * HP])
        s_b = 0.5 * jnp.tanh(gates_b[:, 0:3 * HP]) + 0.5
        g_b = jnp.tanh(gates_b[:, 3 * HP:4 * HP])

        c_f = s_f[:, HP:2 * HP] * c_f + s_f[:, 0:HP] * g_f
        h_f = s_f[:, 2 * HP:3 * HP] * jnp.tanh(c_f)
        c_b = s_b[:, HP:2 * HP] * c_b + s_b[:, 0:HP] * g_b
        h_b = s_b[:, 2 * HP:3 * HP] * jnp.tanh(c_b)

    # (3) torch: fc(dropout(cat(hidden[0], hidden[1]))); dropout == identity (eval).
    h_cat = jnp.concatenate([h_f, h_b], axis=1).astype(jnp.bfloat16)   # (B, 2*HP)
    out_ref[...] = (jnp.dot(h_cat, wfc_ref[...],
                            preferred_element_type=jnp.float32) + bfc_ref[...])


# ----------------------------------------------------------------------------
# Weight preparation (torch layout -> padded / reordered / scaled kernel layout)
# ----------------------------------------------------------------------------
def _gate_cols(w, in_pad):
    """w: torch (4H, in) with row blocks (i,f,g,o) -> (in_pad, 4*HP) with
    column blocks reordered to (i, f, o, g); i/f/o columns scaled by 0.5 for
    the tanh-sigmoid identity; everything else zero."""
    in_dim = w.shape[1]
    wt = w.T.astype(jnp.float32)                         # (in, 4H), cols (i,f,g,o)
    out = jnp.zeros((in_pad, 4 * HP), jnp.float32)
    for dst, src in enumerate((0, 1, 3, 2)):             # (i,f,o,g) <- (i,f,g,o)
        scale = 0.5 if dst < 3 else 1.0                  # i,f,o get the 0.5 fold
        out = out.at[:in_dim, dst * HP:dst * HP + H].set(
            scale * wt[:, src * H:(src + 1) * H])
    return out


def _gate_bias(b):
    """b: (4H,) order (i,f,g,o) -> (1, 4*HP) order (i,f,o,g), i/f/o scaled by
    0.5, zero padded."""
    out = jnp.zeros((1, 4 * HP), jnp.float32)
    for dst, src in enumerate((0, 1, 3, 2)):
        scale = 0.5 if dst < 3 else 1.0
        out = out.at[0, dst * HP:dst * HP + H].set(
            scale * b[src * H:(src + 1) * H])
    return out


def bilstm_fc_pallas(x_2d, params, T, B, dim_out):
    """x_2d: (T*B, E) bf16 time-major-flattened embeddings."""
    E = x_2d.shape[1]
    outp = 128 * pl.cdiv(dim_out, 128)                   # lane-dense padded output

    # input-projection weights / biases for both directions, side by side
    wih_all = jnp.concatenate(
        [_gate_cols(params["w_ih_f"], E), _gate_cols(params["w_ih_b"], E)],
        axis=1).astype(jnp.bfloat16)
    b_all = jnp.concatenate(
        [_gate_bias(params["b_ih_f"] + params["b_hh_f"]),
         _gate_bias(params["b_ih_b"] + params["b_hh_b"])], axis=1)

    # per-direction recurrent weights (no block-diagonal zero padding)
    whh_f = _gate_cols(params["w_hh_f"], HP).astype(jnp.bfloat16)   # (HP, 4*HP)
    whh_b = _gate_cols(params["w_hh_b"], HP).astype(jnp.bfloat16)

    # fc: torch weight (dim_out, 2H) -> (2*HP, outp); padded rows/cols = 0
    wfc_t = params["w_fc"].T.astype(jnp.float32)         # (2H, dim_out)
    wfc = jnp.zeros((2 * HP, outp), jnp.float32)
    wfc = wfc.at[:H, :dim_out].set(wfc_t[:H, :])
    wfc = wfc.at[HP:HP + H, :dim_out].set(wfc_t[H:2 * H, :])
    wfc = wfc.astype(jnp.bfloat16)
    bfc = jnp.zeros((1, outp), jnp.float32).at[0, :dim_out].set(
        params["b_fc"].astype(jnp.float32))

    vmem = pl.BlockSpec(memory_space=pltpu.MemorySpace.VMEM)
    out = pl.pallas_call(
        _bilstm_fc_kernel,
        out_shape=jax.ShapeDtypeStruct((B, outp), jnp.float32),
        in_specs=[vmem] * 7,
        out_specs=vmem,
        scratch_shapes=[pltpu.VMEM((T * B, 8 * HP), jnp.float32)],
    )(x_2d, wih_all, b_all, whh_f, whh_b, wfc, bfc)
    return out[:, :dim_out]


# ----------------------------------------------------------------------------
# Full TextRNN forward (embedding gather is glue in plain JAX)
# ----------------------------------------------------------------------------
@functools.partial(jax.jit, static_argnames=("dim_out",))
def text_rnn_forward(token_ids, x_len, params, dim_out):
    del x_len  # unused in the PyTorch forward as well (no packing)
    B, T = token_ids.shape
    # gather directly in time-major order (no separate transpose pass)
    emb_tm = jnp.take(params["embedding"], token_ids.T, axis=0)    # (T, B, E)
    x_2d = emb_tm.reshape(T * B, -1).astype(jnp.bfloat16)          # (T*B, E)
    return bilstm_fc_pallas(x_2d, params, T, B, dim_out)


# ----------------------------------------------------------------------------
# Pure-JAX f32 reference (for correctness check)
# ----------------------------------------------------------------------------
def _ref_lstm_dir(x_btE, wih, whh, b_ih, b_hh, reverse):
    B = x_btE.shape[0]
    x = x_btE[:, ::-1, :] if reverse else x_btE
    x_t = jnp.swapaxes(x, 0, 1)  # (T, B, E)

    def step(carry, xt):
        h, c = carry
        gates = xt @ wih.T + h @ whh.T + b_ih + b_hh
        i, f, g, o = jnp.split(gates, 4, axis=1)
        c = jax.nn.sigmoid(f) * c + jax.nn.sigmoid(i) * jnp.tanh(g)
        h = jax.nn.sigmoid(o) * jnp.tanh(c)
        return (h, c), None

    (h, _), _ = jax.lax.scan(step, (jnp.zeros((B, H)), jnp.zeros((B, H))), x_t)
    return h


def text_rnn_reference(token_ids, params):
    emb = jnp.take(params["embedding"], token_ids, axis=0)
    h_f = _ref_lstm_dir(emb, params["w_ih_f"], params["w_hh_f"],
                        params["b_ih_f"], params["b_hh_f"], reverse=False)
    h_b = _ref_lstm_dir(emb, params["w_ih_b"], params["w_hh_b"],
                        params["b_ih_b"], params["b_hh_b"], reverse=True)
    concat = jnp.concatenate([h_f, h_b], axis=1)
    return concat @ params["w_fc"].T + params["b_fc"]


# ----------------------------------------------------------------------------
# Deterministic parameter init + demo
# ----------------------------------------------------------------------------
def init_params(key, max_features, embedding_size, dim_out):
    ks = jax.random.split(key, 12)
    std = 1.0 / jnp.sqrt(H)

    def u(k, shape):
        return jax.random.uniform(k, shape, jnp.float32, -std, std)

    return {
        "embedding": jax.random.normal(ks[0], (max_features, embedding_size),
                                       jnp.float32),
        # forward direction
        "w_ih_f": u(ks[1], (4 * H, embedding_size)),
        "w_hh_f": u(ks[2], (4 * H, H)),
        "b_ih_f": u(ks[3], (4 * H,)),
        "b_hh_f": u(ks[4], (4 * H,)),
        # backward direction
        "w_ih_b": u(ks[5], (4 * H, embedding_size)),
        "w_hh_b": u(ks[6], (4 * H, H)),
        "b_ih_b": u(ks[7], (4 * H,)),
        "b_hh_b": u(ks[8], (4 * H,)),
        # fc: Linear(200, dim_out)
        "w_fc": u(ks[9], (dim_out, 2 * H)),
        "b_fc": u(ks[10], (dim_out,)),
    }


if __name__ == "__main__":
    max_features = 1000
    max_seq_length = 8
    embedding_size = 64
    dim_out = 4
    batch = 8

    key = jax.random.PRNGKey(0)
    k_param, k_tok = jax.random.split(key)
    params = init_params(k_param, max_features, embedding_size, dim_out)

    token_ids = jax.random.randint(k_tok, (batch, max_seq_length), 0, max_features)
    x_len = jnp.full((batch,), max_seq_length, jnp.int32)  # unused, as in torch forward

    logits = text_rnn_forward(token_ids, x_len, params, dim_out)
    logits = jax.block_until_ready(logits)

    ref = text_rnn_reference(token_ids, params)
    assert logits.shape == (batch, dim_out)
    # bf16 MXU operands (per perf review) -> loosened tolerance vs f32 reference
    assert jnp.allclose(logits, ref, atol=5e-2, rtol=5e-2), (
        f"max abs err {jnp.max(jnp.abs(logits - ref))}")

    print("KERNEL_OK")
</pallas_src>

<mosaic_0001>
module attributes {stable_mosaic.version = 11 : i64} {
  func.func @_bilstm_fc_kernel(%arg0: memref<64x64xbf16, #tpu.memory_space<vmem>>, %arg1: memref<64x1024xbf16, #tpu.memory_space<vmem>>, %arg2: memref<1x1024xf32, #tpu.memory_space<vmem>>, %arg3: memref<128x512xbf16, #tpu.memory_space<vmem>>, %arg4: memref<128x512xbf16, #tpu.memory_space<vmem>>, %arg5: memref<256x128xbf16, #tpu.memory_space<vmem>>, %arg6: memref<1x128xf32, #tpu.memory_space<vmem>>, %arg7: memref<8x128xf32, #tpu.memory_space<vmem>>, %arg8: memref<64x1024xf32, #tpu.memory_space<vmem>>) attributes {dimension_semantics = [], scalar_prefetch = 0 : i64, scratch_operands = 1 : i64, tpu.core_type = #tpu.core_type<tc>} {
    %c0 = arith.constant 0 : index
    %c0_0 = arith.constant 0 : index
    %0 = vector.load %arg0[%c0, %c0_0] : memref<64x64xbf16, #tpu.memory_space<vmem>>, vector<64x64xbf16>
    %c0_1 = arith.constant 0 : index
    %c0_2 = arith.constant 0 : index
    %1 = vector.load %arg1[%c0_1, %c0_2] : memref<64x1024xbf16, #tpu.memory_space<vmem>>, vector<64x1024xbf16>
    %cst = arith.constant dense<0.000000e+00> : vector<64x1024xf32>
    %2 = tpu.matmul %0, %1, %cst {dimension_numbers = #tpu.dot_dimension_numbers<[1], [0], [0], [1], [0, 0, 1, 1], [], []>} : vector<64x64xbf16>, vector<64x1024xbf16>, vector<64x1024xf32> -> vector<64x1024xf32>
    %c0_3 = arith.constant 0 : index
    %c0_4 = arith.constant 0 : index
    %3 = vector.load %arg2[%c0_3, %c0_4] : memref<1x1024xf32, #tpu.memory_space<vmem>>, vector<1x1024xf32>
    %4 = vector.broadcast %3 : vector<1x1024xf32> to vector<64x1024xf32>
    %5 = arith.addf %2, %4 : vector<64x1024xf32>
    %c0_5 = arith.constant 0 : index
    %c0_6 = arith.constant 0 : index
    %6 = vector.load %arg8[%c0_5, %c0_6] : memref<64x1024xf32, #tpu.memory_space<vmem>>, vector<64x1024xf32>
    tpu.vector_store %arg8[%c0_5, %c0_6], %5 {strides = array<i32>} : memref<64x1024xf32, #tpu.memory_space<vmem>>, vector<64x1024xf32>,
    %c0_7 = arith.constant 0 : index
    %c0_8 = arith.constant 0 : index
    %7 = vector.load %arg3[%c0_7, %c0_8] : memref<128x512xbf16, #tpu.memory_space<vmem>>, vector<128x512xbf16>
    %c0_9 = arith.constant 0 : index
    %c0_10 = arith.constant 0 : index
    %8 = vector.load %arg4[%c0_9, %c0_10] : memref<128x512xbf16, #tpu.memory_space<vmem>>, vector<128x512xbf16>
    %cst_11 = arith.constant 0.000000e+00 : f32
    %9 = vector.broadcast %cst_11 : f32 to vector<8x128xf32>
    %c0_12 = arith.constant 0 : index
    %c0_13 = arith.constant 0 : index
    %10 = vector.load %arg8[%c0_12, %c0_13] : memref<64x1024xf32, #tpu.memory_space<vmem>>, vector<8x512xf32>
    %c56 = arith.constant 56 : index
    %c512 = arith.constant 512 : index
    %11 = vector.load %arg8[%c56, %c512] : memref<64x1024xf32, #tpu.memory_space<vmem>>, vector<8x512xf32>
    %12 = vector.extract_strided_slice %10 {offsets = [0, 0], sizes = [8, 384], strides = [1, 1]} : vector<8x512xf32> to vector<8x384xf32>
    %13 = math.tanh %12 : vector<8x384xf32>
    %cst_14 = arith.constant 5.000000e-01 : f32
    %14 = vector.broadcast %cst_14 : f32 to vector<8x384xf32>
    %15 = arith.mulf %14, %13 : vector<8x384xf32>
    %cst_15 = arith.constant 5.000000e-01 : f32
    %16 = vector.broadcast %cst_15 : f32 to vector<8x384xf32>
    %17 = arith.addf %15, %16 : vector<8x384xf32>
    %18 = vector.extract_strided_slice %10 {offsets = [0, 384], sizes = [8, 128], strides = [1, 1]} : vector<8x512xf32> to vector<8x128xf32>
    %19 = math.tanh %18 : vector<8x128xf32>
    %20 = vector.extract_strided_slice %11 {offsets = [0, 0], sizes = [8, 384], strides = [1, 1]} : vector<8x512xf32> to vector<8x384xf32>
    %21 = math.tanh %20 : vector<8x384xf32>
    %cst_16 = arith.constant 5.000000e-01 : f32
    %22 = vector.broadcast %cst_16 : f32 to vector<8x384xf32>
    %23 = arith.mulf %22, %21 : vector<8x384xf32>
    %cst_17 = arith.constant 5.000000e-01 : f32
    %24 = vector.broadcast %cst_17 : f32 to vector<8x384xf32>
    %25 = arith.addf %23, %24 : vector<8x384xf32>
    %26 = vector.extract_strided_slice %11 {offsets = [0, 384], sizes = [8, 128], strides = [1, 1]} : vector<8x512xf32> to vector<8x128xf32>
    %27 = math.tanh %26 : vector<8x128xf32>
    %28 = vector.extract_strided_slice %17 {offsets = [0, 128], sizes = [8, 128], strides = [1, 1]} : vector<8x384xf32> to vector<8x128xf32>
    %29 = arith.mulf %28, %9 : vector<8x128xf32>
    %30 = vector.extract_strided_slice %17 {offsets = [0, 0], sizes = [8, 128], strides = [1, 1]} : vector<8x384xf32> to vector<8x128xf32>
    %31 = arith.mulf %30, %19 : vector<8x128xf32>
    %32 = arith.addf %29, %31 : vector<8x128xf32>
    %33 = vector.extract_strided_slice %17 {offsets = [0, 256], sizes = [8, 128], strides = [1, 1]} : vector<8x384xf32> to vector<8x128xf32>
    %34 = math.tanh %32 : vector<8x128xf32>
    %35 = arith.mulf %33, %34 : vector<8x128xf32>
    %36 = vector.extract_strided_slice %25 {offsets = [0, 128], sizes = [8, 128], strides = [1, 1]} : vector<8x384xf32> to vector<8x128xf32>
    %37 = arith.mulf %36, %9 : vector<8x128xf32>
    %38 = vector.extract_strided_slice %25 {offsets = [0, 0], sizes = [8, 128], strides = [1, 1]} : vector<8x384xf32> to vector<8x128xf32>
    %39 = arith.mulf %38, %27 : vector<8x128xf32>
    %40 = arith.addf %37, %39 : vector<8x128xf32>
    %41 = vector.extract_strided_slice %25 {offsets = [0, 256], sizes = [8, 128], strides = [1, 1]} : vector<8x384xf32> to vector<8x128xf32>
    %42 = math.tanh %40 : vector<8x128xf32>
    %43 = arith.mulf %41, %42 : vector<8x128xf32>
    %c8 = arith.constant 8 : index
    %c0_18 = arith.constant 0 : index
    %44 = vector.load %arg8[%c8, %c0_18] : memref<64x1024xf32, #tpu.memory_space<vmem>>, vector<8x512xf32>
    %c48 = arith.constant 48 : index
    %c512_19 = arith.constant 512 : index
    %45 = vector.load %arg8[%c48, %c512_19] : memref<64x1024xf32, #tpu.memory_space<vmem>>, vector<8x512xf32>
    %46 = arith.truncf %35 : vector<8x128xf32> to vector<8x128xbf16>
    %cst_20 = arith.constant dense<0.000000e+00> : vector<8x512xf32>
    %47 = tpu.matmul %46, %7, %cst_20 {dimension_numbers = #tpu.dot_dimension_numbers<[1], [0], [0], [1], [0, 0, 1, 1], [], []>} : vector<8x128xbf16>, vector<128x512xbf16>, vector<8x512xf32> -> vector<8x512xf32>
    %48 = arith.addf %44, %47 : vector<8x512xf32>
    %49 = arith.truncf %43 : vector<8x128xf32> to vector<8x128xbf16>
    %cst_21 = arith.constant dense<0.000000e+00> : vector<8x512xf32>
    %50 = tpu.matmul %49, %8, %cst_21 {dimension_numbers = #tpu.dot_dimension_numbers<[1], [0], [0], [1], [0, 0, 1, 1], [], []>} : vector<8x128xbf16>, vector<128x512xbf16>, vector<8x512xf32> -> vector<8x512xf32>
    %51 = arith.addf %45, %50 : vector<8x512xf32>
    %52 = vector.extract_strided_slice %48 {offsets = [0, 0], sizes = [8, 384], strides = [1, 1]} : vector<8x512xf32> to vector<8x384xf32>
    %53 = math.tanh %52 : vector<8x384xf32>
    %cst_22 = arith.constant 5.000000e-01 : f32
    %54 = vector.broadcast %cst_22 : f32 to vector<8x384xf32>
    %55 = arith.mulf %54, %53 : vector<8x384xf32>
    %cst_23 = arith.constant 5.000000e-01 : f32
    %56 = vector.broadcast %cst_23 : f32 to vector<8x384xf32>
    %57 = arith.addf %55, %56 : vector<8x384xf32>
    %58 = vector.extract_strided_slice %48 {offsets = [0, 384], sizes = [8, 128], strides = [1, 1]} : vector<8x512xf32> to vector<8x128xf32>
    %59 = math.tanh %58 : vector<8x128xf32>
    %60 = vector.extract_strided_slice %51 {offsets = [0, 0], sizes = [8, 384], strides = [1, 1]} : vector<8x512xf32> to vector<8x384xf32>
    %61 = math.tanh %60 : vector<8x384xf32>
    %cst_24 = arith.constant 5.000000e-01 : f32
    %62 = vector.broadcast %cst_24 : f32 to vector<8x384xf32>
    %63 = arith.mulf %62, %61 : vector<8x384xf32>
    %cst_25 = arith.constant 5.000000e-01 : f32
    %64 = vector.broadcast %cst_25 : f32 to vector<8x384xf32>
    %65 = arith.addf %63, %64 : vector<8x384xf32>
    %66 = vector.extract_strided_slice %51 {offsets = [0, 384], sizes = [8, 128], strides = [1, 1]} : vector<8x512xf32> to vector<8x128xf32>
    %67 = math.tanh %66 : vector<8x128xf32>
    %68 = vector.extract_strided_slice %57 {offsets = [0, 128], sizes = [8, 128], strides = [1, 1]} : vector<8x384xf32> to vector<8x128xf32>
    %69 = arith.mulf %68, %32 : vector<8x128xf32>
    %70 = vector.extract_strided_slice %57 {offsets = [0, 0], sizes = [8, 128], strides = [1, 1]} : vector<8x384xf32> to vector<8x128xf32>
    %71 = arith.mulf %70, %59 : vector<8x128xf32>
    %72 = arith.addf %69, %71 : vector<8x128xf32>
    %73 = vector.extract_strided_slice %57 {offsets = [0, 256], sizes = [8, 128], strides = [1, 1]} : vector<8x384xf32> to vector<8x128xf32>
    %74 = math.tanh %72 : vector<8x128xf32>
    %75 = arith.mulf %73, %74 : vector<8x128xf32>
    %76 = vector.extract_strided_slice %65 {offsets = [0, 128], sizes = [8, 128], strides = [1, 1]} : vector<8x384xf32> to vector<8x128xf32>
    %77 = arith.mulf %76, %40 : vector<8x128xf32>
    %78 = vector.extract_strided_slice %65 {offsets = [0, 0], sizes = [8, 128], strides = [1, 1]} : vector<8x384xf32> to vector<8x128xf32>
    %79 = arith.mulf %78, %67 : vector<8x128xf32>
    %80 = arith.addf %77, %79 : vector<8x128xf32>
    %81 = vector.extract_strided_slice %65 {offsets = [0, 256], sizes = [8, 128], strides = [1, 1]} : vector<8x384xf32> to vector<8x128xf32>
    %82 = math.tanh %80 : vector<8x128xf32>
    %83 = arith.mulf %81, %82 : vector<8x128xf32>
    %c16 = arith.constant 16 : index
    %c0_26 = arith.constant 0 : index
    %84 = vector.load %arg8[%c16, %c0_26] : memref<64x1024xf32, #tpu.memory_space<vmem>>, vector<8x512xf32>
    %c40 = arith.constant 40 : index
    %c512_27 = arith.constant 512 : index
    %85 = vector.load %arg8[%c40, %c512_27] : memref<64x1024xf32, #tpu.memory_space<vmem>>, vector<8x512xf32>
    %86 = arith.truncf %75 : vector<8x128xf32> to vector<8x128xbf16>
    %cst_28 = arith.constant dense<0.000000e+00> : vector<8x512xf32>
    %87 = tpu.matmul %86, %7, %cst_28 {dimension_numbers = #tpu.dot_dimension_numbers<[1], [0], [0], [1], [0, 0, 1, 1], [], []>} : vector<8x128xbf16>, vector<128x512xbf16>, vector<8x512xf32> -> vector<8x512xf32>
    %88 = arith.addf %84, %87 : vector<8x512xf32>
    %89 = arith.truncf %83 : vector<8x128xf32> to vector<8x128xbf16>
    %cst_29 = arith.constant dense<0.000000e+00> : vector<8x512xf32>
    %90 = tpu.matmul %89, %8, %cst_29 {dimension_numbers = #tpu.dot_dimension_numbers<[1], [0], [0], [1], [0, 0, 1, 1], [], []>} : vector<8x128xbf16>, vector<128x512xbf16>, vector<8x512xf32> -> vector<8x512xf32>
    %91 = arith.addf %85, %90 : vector<8x512xf32>
    %92 = vector.extract_strided_slice %88 {offsets = [0, 0], sizes = [8, 384], strides = [1, 1]} : vector<8x512xf32> to vector<8x384xf32>
    %93 = math.tanh %92 : vector<8x384xf32>
    %cst_30 = arith.constant 5.000000e-01 : f32
    %94 = vector.broadcast %cst_30 : f32 to vector<8x384xf32>
    %95 = arith.mulf %94, %93 : vector<8x384xf32>
    %cst_31 = arith.constant 5.000000e-01 : f32
    %96 = vector.broadcast %cst_31 : f32 to vector<8x384xf32>
    %97 = arith.addf %95, %96 : vector<8x384xf32>
    %98 = vector.extract_strided_slice %88 {offsets = [0, 384], sizes = [8, 128], strides = [1, 1]} : vector<8x512xf32> to vector<8x128xf32>
    %99 = math.tanh %98 : vector<8x128xf32>
    %100 = vector.extract_strided_slice %91 {offsets = [0, 0], sizes = [8, 384], strides = [1, 1]} : vector<8x512xf32> to vector<8x384xf32>
    %101 = math.tanh %100 : vector<8x384xf32>
    %cst_32 = arith.constant 5.000000e-01 : f32
    %102 = vector.broadcast %cst_32 : f32 to vector<8x384xf32>
    %103 = arith.mulf %102, %101 : vector<8x384xf32>
    %cst_33 = arith.constant 5.000000e-01 : f32
    %104 = vector.broadcast %cst_33 : f32 to vector<8x384xf32>
    %105 = arith.addf %103, %104 : vector<8x384xf32>
    %106 = vector.extract_strided_slice %91 {offsets = [0, 384], sizes = [8, 128], strides = [1, 1]} : vector<8x512xf32> to vector<8x128xf32>
    %107 = math.tanh %106 : vector<8x128xf32>
    %108 = vector.extract_strided_slice %97 {offsets = [0, 128], sizes = [8, 128], strides = [1, 1]} : vector<8x384xf32> to vector<8x128xf32>
    %109 = arith.mulf %108, %72 : vector<8x128xf32>
    %110 = vector.extract_strided_slice %97 {offsets = [0, 0], sizes = [8, 128], strides = [1, 1]} : vector<8x384xf32> to vector<8x128xf32>
    %111 = arith.mulf %110, %99 : vector<8x128xf32>
    %112 = arith.addf %109, %111 : vector<8x128xf32>
    %113 = vector.extract_strided_slice %97 {offsets = [0, 256], sizes = [8, 128], strides = [1, 1]} : vector<8x384xf32> to vector<8x128xf32>
    %114 = math.tanh %112 : vector<8x128xf32>
    %115 = arith.mulf %113, %114 : vector<8x128xf32>
    %116 = vector.extract_strided_slice %105 {offsets = [0, 128], sizes = [8, 128], strides = [1, 1]} : vector<8x384xf32> to vector<8x128xf32>
    %117 = arith.mulf %116, %80 : vector<8x128xf32>
    %118 = vector.extract_strided_slice %105 {offsets = [0, 0], sizes = [8, 128], strides = [1, 1]} : vector<8x384xf32> to vector<8x128xf32>
    %119 = arith.mulf %118, %107 : vector<8x128xf32>
    %120 = arith.addf %117, %119 : vector<8x128xf32>
    %121 = vector.extract_strided_slice %105 {offsets = [0, 256], sizes = [8, 128], strides = [1, 1]} : vector<8x384xf32> to vector<8x128xf32>
    %122 = math.tanh %120 : vector<8x128xf32>
    %123 = arith.mulf %121, %122 : vector<8x128xf32>
    %c24 = arith.constant 24 : index
    %c0_34 = arith.constant 0 : index
    %124 = vector.load %arg8[%c24, %c0_34] : memref<64x1024xf32, #tpu.memory_space<vmem>>, vector<8x512xf32>
    %c32 = arith.constant 32 : index
    %c512_35 = arith.constant 512 : index
    %125 = vector.load %arg8[%c32, %c512_35] : memref<64x1024xf32, #tpu.memory_space<vmem>>, vector<8x512xf32>
    %126 = arith.truncf %115 : vector<8x128xf32> to vector<8x128xbf16>
    %cst_36 = arith.constant dense<0.000000e+00> : vector<8x512xf32>
    %127 = tpu.matmul %126, %7, %cst_36 {dimension_numbers = #tpu.dot_dimension_numbers<[1], [0], [0], [1], [0, 0, 1, 1], [], []>} : vector<8x128xbf16>, vector<128x512xbf16>, vector<8x512xf32> -> vector<8x512xf32>
    %128 = arith.addf %124, %127 : vector<8x512xf32>
    %129 = arith.truncf %123 : vector<8x128xf32> to vector<8x128xbf16>
    %cst_37 = arith.constant dense<0.000000e+00> : vector<8x512xf32>
    %130 = tpu.matmul %129, %8, %cst_37 {dimension_numbers = #tpu.dot_dimension_numbers<[1], [0], [0], [1], [0, 0, 1, 1], [], []>} : vector<8x128xbf16>, vector<128x512xbf16>, vector<8x512xf32> -> vector<8x512xf32>
    %131 = arith.addf %125, %130 : vector<8x512xf32>
    %132 = vector.extract_strided_slice %128 {offsets = [0, 0], sizes = [8, 384], strides = [1, 1]} : vector<8x512xf32> to vector<8x384xf32>
    %133 = math.tanh %132 : vector<8x384xf32>
    %cst_38 = arith.constant 5.000000e-01 : f32
    %134 = vector.broadcast %cst_38 : f32 to vector<8x384xf32>
    %135 = arith.mulf %134, %133 : vector<8x384xf32>
    %cst_39 = arith.constant 5.000000e-01 : f32
    %136 = vector.broadcast %cst_39 : f32 to vector<8x384xf32>
    %137 = arith.addf %135, %136 : vector<8x384xf32>
    %138 = vector.extract_strided_slice %128 {offsets = [0, 384], sizes = [8, 128], strides = [1, 1]} : vector<8x512xf32> to vector<8x128xf32>
    %139 = math.tanh %138 : vector<8x128xf32>
    %140 = vector.extract_strided_slice %131 {offsets = [0, 0], sizes = [8, 384], strides = [1, 1]} : vector<8x512xf32> to vector<8x384xf32>
    %141 = math.tanh %140 : vector<8x384xf32>
    %cst_40 = arith.constant 5.000000e-01 : f32
    %142 = vector.broadcast %cst_40 : f32 to vector<8x384xf32>
    %143 = arith.mulf %142, %141 : vector<8x384xf32>
    %cst_41 = arith.constant 5.000000e-01 : f32
    %144 = vector.broadcast %cst_41 : f32 to vector<8x384xf32>
    %145 = arith.addf %143, %144 : vector<8x384xf32>
    %146 = vector.extract_strided_slice %131 {offsets = [0, 384], sizes = [8, 128], strides = [1, 1]} : vector<8x512xf32> to vector<8x128xf32>
    %147 = math.tanh %146 : vector<8x128xf32>
    %148 = vector.extract_strided_slice %137 {offsets = [0, 128], sizes = [8, 128], strides = [1, 1]} : vector<8x384xf32> to vector<8x128xf32>
    %149 = arith.mulf %148, %112 : vector<8x128xf32>
    %150 = vector.extract_strided_slice %137 {offsets = [0, 0], sizes = [8, 128], strides = [1, 1]} : vector<8x384xf32> to vector<8x128xf32>
    %151 = arith.mulf %150, %139 : vector<8x128xf32>
    %152 = arith.addf %149, %151 : vector<8x128xf32>
    %153 = vector.extract_strided_slice %137 {offsets = [0, 256], sizes = [8, 128], strides = [1, 1]} : vector<8x384xf32> to vector<8x128xf32>
    %154 = math.tanh %152 : vector<8x128xf32>
    %155 = arith.mulf %153, %154 : vector<8x128xf32>
    %156 = vector.extract_strided_slice %145 {offsets = [0, 128], sizes = [8, 128], strides = [1, 1]} : vector<8x384xf32> to vector<8x128xf32>
    %157 = arith.mulf %156, %120 : vector<8x128xf32>
    %158 = vector.extract_strided_slice %145 {offsets = [0, 0], sizes = [8, 128], strides = [1, 1]} : vector<8x384xf32> to vector<8x128xf32>
    %159 = arith.mulf %158, %147 : vector<8x128xf32>
    %160 = arith.addf %157, %159 : vector<8x128xf32>
    %161 = vector.extract_strided_slice %145 {offsets = [0, 256], sizes = [8, 128], strides = [1, 1]} : vector<8x384xf32> to vector<8x128xf32>
    %162 = math.tanh %160 : vector<8x128xf32>
    %163 = arith.mulf %161, %162 : vector<8x128xf32>
    %c32_42 = arith.constant 32 : index
    %c0_43 = arith.constant 0 : index
    %164 = vector.load %arg8[%c32_42, %c0_43] : memref<64x1024xf32, #tpu.memory_space<vmem>>, vector<8x512xf32>
    %c24_44 = arith.constant 24 : index
    %c512_45 = arith.constant 512 : index
    %165 = vector.load %arg8[%c24_44, %c512_45] : memref<64x1024xf32, #tpu.memory_space<vmem>>, vector<8x512xf32>
    %166 = arith.truncf %155 : vector<8x128xf32> to vector<8x128xbf16>
    %cst_46 = arith.constant dense<0.000000e+00> : vector<8x512xf32>
    %167 = tpu.matmul %166, %7, %cst_46 {dimension_numbers = #tpu.dot_dimension_numbers<[1], [0], [0], [1], [0, 0, 1, 1], [], []>} : vector<8x128xbf16>, vector<128x512xbf16>, vector<8x512xf32> -> vector<8x512xf32>
    %168 = arith.addf %164, %167 : vector<8x512xf32>
    %169 = arith.truncf %163 : vector<8x128xf32> to vector<8x128xbf16>
    %cst_47 = arith.constant dense<0.000000e+00> : vector<8x512xf32>
    %170 = tpu.matmul %169, %8, %cst_47 {dimension_numbers = #tpu.dot_dimension_numbers<[1], [0], [0], [1], [0, 0, 1, 1], [], []>} : vector<8x128xbf16>, vector<128x512xbf16>, vector<8x512xf32> -> vector<8x512xf32>
    %171 = arith.addf %165, %170 : vector<8x512xf32>
    %172 = vector.extract_strided_slice %168 {offsets = [0, 0], sizes = [8, 384], strides = [1, 1]} : vector<8x512xf32> to vector<8x384xf32>
    %173 = math.tanh %172 : vector<8x384xf32>
    %cst_48 = arith.constant 5.000000e-01 : f32
    %174 = vector.broadcast %cst_48 : f32 to vector<8x384xf32>
    %175 = arith.mulf %174, %173 : vector<8x384xf32>
    %cst_49 = arith.constant 5.000000e-01 : f32
    %176 = vector.broadcast %cst_49 : f32 to vector<8x384xf32>
    %177 = arith.addf %175, %176 : vector<8x384xf32>
    %178 = vector.extract_strided_slice %168 {offsets = [0, 384], sizes = [8, 128], strides = [1, 1]} : vector<8x512xf32> to vector<8x128xf32>
    %179 = math.tanh %178 : vector<8x128xf32>
    %180 = vector.extract_strided_slice %171 {offsets = [0, 0], sizes = [8, 384], strides = [1, 1]} : vector<8x512xf32> to vector<8x384xf32>
    %181 = math.tanh %180 : vector<8x384xf32>
    %cst_50 = arith.constant 5.000000e-01 : f32
    %182 = vector.broadcast %cst_50 : f32 to vector<8x384xf32>
    %183 = arith.mulf %182, %181 : vector<8x384xf32>
    %cst_51 = arith.constant 5.000000e-01 : f32
    %184 = vector.broadcast %cst_51 : f32 to vector<8x384xf32>
    %185 = arith.addf %183, %184 : vector<8x384xf32>
    %186 = vector.extract_strided_slice %171 {offsets = [0, 384], sizes = [8, 128], strides = [1, 1]} : vector<8x512xf32> to vector<8x128xf32>
    %187 = math.tanh %186 : vector<8x128xf32>
    %188 = vector.extract_strided_slice %177 {offsets = [0, 128], sizes = [8, 128], strides = [1, 1]} : vector<8x384xf32> to vector<8x128xf32>
    %189 = arith.mulf %188, %152 : vector<8x128xf32>
    %190 = vector.extract_strided_slice %177 {offsets = [0, 0], sizes = [8, 128], strides = [1, 1]} : vector<8x384xf32> to vector<8x128xf32>
    %191 = arith.mulf %190, %179 : vector<8x128xf32>
    %192 = arith.addf %189, %191 : vector<8x128xf32>
    %193 = vector.extract_strided_slice %177 {offsets = [0, 256], sizes = [8, 128], strides = [1, 1]} : vector<8x384xf32> to vector<8x128xf32>
    %194 = math.tanh %192 : vector<8x128xf32>
    %195 = arith.mulf %193, %194 : vector<8x128xf32>
    %196 = vector.extract_strided_slice %185 {offsets = [0, 128], sizes = [8, 128], strides = [1, 1]} : vector<8x384xf32> to vector<8x128xf32>
    %197 = arith.mulf %196, %160 : vector<8x128xf32>
    %198 = vector.extract_strided_slice %185 {offsets = [0, 0], sizes = [8, 128], strides = [1, 1]} : vector<8x384xf32> to vector<8x128xf32>
    %199 = arith.mulf %198, %187 : vector<8x128xf32>
    %200 = arith.addf %197, %199 : vector<8x128xf32>
    %201 = vector.extract_strided_slice %185 {offsets = [0, 256], sizes = [8, 128], strides = [1, 1]} : vector<8x384xf32> to vector<8x128xf32>
    %202 = math.tanh %200 : vector<8x128xf32>
    %203 = arith.mulf %201, %202 : vector<8x128xf32>
    %c40_52 = arith.constant 40 : index
    %c0_53 = arith.constant 0 : index
    %204 = vector.load %arg8[%c40_52, %c0_53] : memref<64x1024xf32, #tpu.memory_space<vmem>>, vector<8x512xf32>
    %c16_54 = arith.constant 16 : index
    %c512_55 = arith.constant 512 : index
    %205 = vector.load %arg8[%c16_54, %c512_55] : memref<64x1024xf32, #tpu.memory_space<vmem>>, vector<8x512xf32>
    %206 = arith.truncf %195 : vector<8x128xf32> to vector<8x128xbf16>
    %cst_56 = arith.constant dense<0.000000e+00> : vector<8x512xf32>
    %207 = tpu.matmul %206, %7, %cst_56 {dimension_numbers = #tpu.dot_dimension_numbers<[1], [0], [0], [1], [0, 0, 1, 1], [], []>} : vector<8x128xbf16>, vector<128x512xbf16>, vector<8x512xf32> -> vector<8x512xf32>
    %208 = arith.addf %204, %207 : vector<8x512xf32>
    %209 = arith.truncf %203 : vector<8x128xf32> to vector<8x128xbf16>
    %cst_57 = arith.constant dense<0.000000e+00> : vector<8x512xf32>
    %210 = tpu.matmul %209, %8, %cst_57 {dimension_numbers = #tpu.dot_dimension_numbers<[1], [0], [0], [1], [0, 0, 1, 1], [], []>} : vector<8x128xbf16>, vector<128x512xbf16>, vector<8x512xf32> -> vector<8x512xf32>
    %211 = arith.addf %205, %210 : vector<8x512xf32>
    %212 = vector.extract_strided_slice %208 {offsets = [0, 0], sizes = [8, 384], strides = [1, 1]} : vector<8x512xf32> to vector<8x384xf32>
    %213 = math.tanh %212 : vector<8x384xf32>
    %cst_58 = arith.constant 5.000000e-01 : f32
    %214 = vector.broadcast %cst_58 : f32 to vector<8x384xf32>
    %215 = arith.mulf %214, %213 : vector<8x384xf32>
    %cst_59 = arith.constant 5.000000e-01 : f32
    %216 = vector.broadcast %cst_59 : f32 to vector<8x384xf32>
    %217 = arith.addf %215, %216 : vector<8x384xf32>
    %218 = vector.extract_strided_slice %208 {offsets = [0, 384], sizes = [8, 128], strides = [1, 1]} : vector<8x512xf32> to vector<8x128xf32>
    %219 = math.tanh %218 : vector<8x128xf32>
    %220 = vector.extract_strided_slice %211 {offsets = [0, 0], sizes = [8, 384], strides = [1, 1]} : vector<8x512xf32> to vector<8x384xf32>
    %221 = math.tanh %220 : vector<8x384xf32>
    %cst_60 = arith.constant 5.000000e-01 : f32
    %222 = vector.broadcast %cst_60 : f32 to vector<8x384xf32>
    %223 = arith.mulf %222, %221 : vector<8x384xf32>
    %cst_61 = arith.constant 5.000000e-01 : f32
    %224 = vector.broadcast %cst_61 : f32 to vector<8x384xf32>
    %225 = arith.addf %223, %224 : vector<8x384xf32>
    %226 = vector.extract_strided_slice %211 {offsets = [0, 384], sizes = [8, 128], strides = [1, 1]} : vector<8x512xf32> to vector<8x128xf32>
    %227 = math.tanh %226 : vector<8x128xf32>
    %228 = vector.extract_strided_slice %217 {offsets = [0, 128], sizes = [8, 128], strides = [1, 1]} : vector<8x384xf32> to vector<8x128xf32>
    %229 = arith.mulf %228, %192 : vector<8x128xf32>
    %230 = vector.extract_strided_slice %217 {offsets = [0, 0], sizes = [8, 128], strides = [1, 1]} : vector<8x384xf32> to vector<8x128xf32>
    %231 = arith.mulf %230, %219 : vector<8x128xf32>
    %232 = arith.addf %229, %231 : vector<8x128xf32>
    %233 = vector.extract_strided_slice %217 {offsets = [0, 256], sizes = [8, 128], strides = [1, 1]} : vector<8x384xf32> to vector<8x128xf32>
    %234 = math.tanh %232 : vector<8x128xf32>
    %235 = arith.mulf %233, %234 : vector<8x128xf32>
    %236 = vector.extract_strided_slice %225 {offsets = [0, 128], sizes = [8, 128], strides = [1, 1]} : vector<8x384xf32> to vector<8x128xf32>
    %237 = arith.mulf %236, %200 : vector<8x128xf32>
    %238 = vector.extract_strided_slice %225 {offsets = [0, 0], sizes = [8, 128], strides = [1, 1]} : vector<8x384xf32> to vector<8x128xf32>
    %239 = arith.mulf %238, %227 : vector<8x128xf32>
    %240 = arith.addf %237, %239 : vector<8x128xf32>
    %241 = vector.extract_strided_slice %225 {offsets = [0, 256], sizes = [8, 128], strides = [1, 1]} : vector<8x384xf32> to vector<8x128xf32>
    %242 = math.tanh %240 : vector<8x128xf32>
    %243 = arith.mulf %241, %242 : vector<8x128xf32>
    %c48_62 = arith.constant 48 : index
    %c0_63 = arith.constant 0 : index
    %244 = vector.load %arg8[%c48_62, %c0_63] : memref<64x1024xf32, #tpu.memory_space<vmem>>, vector<8x512xf32>
    %c8_64 = arith.constant 8 : index
    %c512_65 = arith.constant 512 : index
    %245 = vector.load %arg8[%c8_64, %c512_65] : memref<64x1024xf32, #tpu.memory_space<vmem>>, vector<8x512xf32>
    %246 = arith.truncf %235 : vector<8x128xf32> to vector<8x128xbf16>
    %cst_66 = arith.constant dense<0.000000e+00> : vector<8x512xf32>
    %247 = tpu.matmul %246, %7, %cst_66 {dimension_numbers = #tpu.dot_dimension_numbers<[1], [0], [0], [1], [0, 0, 1, 1], [], []>} : vector<8x128xbf16>, vector<128x512xbf16>, vector<8x512xf32> -> vector<8x512xf32>
    %248 = arith.addf %244, %247 : vector<8x512xf32>
    %249 = arith.truncf %243 : vector<8x128xf32> to vector<8x128xbf16>
    %cst_67 = arith.constant dense<0.000000e+00> : vector<8x512xf32>
    %250 = tpu.matmul %249, %8, %cst_67 {dimension_numbers = #tpu.dot_dimension_numbers<[1], [0], [0], [1], [0, 0, 1, 1], [], []>} : vector<8x128xbf16>, vector<128x512xbf16>, vector<8x512xf32> -> vector<8x512xf32>
    %251 = arith.addf %245, %250 : vector<8x512xf32>
    %252 = vector.extract_strided_slice %248 {offsets = [0, 0], sizes = [8, 384], strides = [1, 1]} : vector<8x512xf32> to vector<8x384xf32>
    %253 = math.tanh %252 : vector<8x384xf32>
    %cst_68 = arith.constant 5.000000e-01 : f32
    %254 = vector.broadcast %cst_68 : f32 to vector<8x384xf32>
    %255 = arith.mulf %254, %253 : vector<8x384xf32>
    %cst_69 = arith.constant 5.000000e-01 : f32
    %256 = vector.broadcast %cst_69 : f32 to vector<8x384xf32>
    %257 = arith.addf %255, %256 : vector<8x384xf32>
    %258 = vector.extract_strided_slice %248 {offsets = [0, 384], sizes = [8, 128], strides = [1, 1]} : vector<8x512xf32> to vector<8x128xf32>
    %259 = math.tanh %258 : vector<8x128xf32>
    %260 = vector.extract_strided_slice %251 {offsets = [0, 0], sizes = [8, 384], strides = [1, 1]} : vector<8x512xf32> to vector<8x384xf32>
    %261 = math.tanh %260 : vector<8x384xf32>
    %cst_70 = arith.constant 5.000000e-01 : f32
    %262 = vector.broadcast %cst_70 : f32 to vector<8x384xf32>
    %263 = arith.mulf %262, %261 : vector<8x384xf32>
    %cst_71 = arith.constant 5.000000e-01 : f32
    %264 = vector.broadcast %cst_71 : f32 to vector<8x384xf32>
    %265 = arith.addf %263, %264 : vector<8x384xf32>
    %266 = vector.extract_strided_slice %251 {offsets = [0, 384], sizes = [8, 128], strides = [1, 1]} : vector<8x512xf32> to vector<8x128xf32>
    %267 = math.tanh %266 : vector<8x128xf32>
    %268 = vector.extract_strided_slice %257 {offsets = [0, 128], sizes = [8, 128], strides = [1, 1]} : vector<8x384xf32> to vector<8x128xf32>
    %269 = arith.mulf %268, %232 : vector<8x128xf32>
    %270 = vector.extract_strided_slice %257 {offsets = [0, 0], sizes = [8, 128], strides = [1, 1]} : vector<8x384xf32> to vector<8x128xf32>
    %271 = arith.mulf %270, %259 : vector<8x128xf32>
    %272 = arith.addf %269, %271 : vector<8x128xf32>
    %273 = vector.extract_strided_slice %257 {offsets = [0, 256], sizes = [8, 128], strides = [1, 1]} : vector<8x384xf32> to vector<8x128xf32>
    %274 = math.tanh %272 : vector<8x128xf32>
    %275 = arith.mulf %273, %274 : vector<8x128xf32>
    %276 = vector.extract_strided_slice %265 {offsets = [0, 128], sizes = [8, 128], strides = [1, 1]} : vector<8x384xf32> to vector<8x128xf32>
    %277 = arith.mulf %276, %240 : vector<8x128xf32>
    %278 = vector.extract_strided_slice %265 {offsets = [0, 0], sizes = [8, 128], strides = [1, 1]} : vector<8x384xf32> to vector<8x128xf32>
    %279 = arith.mulf %278, %267 : vector<8x128xf32>
    %280 = arith.addf %277, %279 : vector<8x128xf32>
    %281 = vector.extract_strided_slice %265 {offsets = [0, 256], sizes = [8, 128], strides = [1, 1]} : vector<8x384xf32> to vector<8x128xf32>
    %282 = math.tanh %280 : vector<8x128xf32>
    %283 = arith.mulf %281, %282 : vector<8x128xf32>
    %c56_72 = arith.constant 56 : index
    %c0_73 = arith.constant 0 : index
    %284 = vector.load %arg8[%c56_72, %c0_73] : memref<64x1024xf32, #tpu.memory_space<vmem>>, vector<8x512xf32>
    %c0_74 = arith.constant 0 : index
    %c512_75 = arith.constant 512 : index
    %285 = vector.load %arg8[%c0_74, %c512_75] : memref<64x1024xf32, #tpu.memory_space<vmem>>, vector<8x512xf32>
    %286 = arith.truncf %275 : vector<8x128xf32> to vector<8x128xbf16>
    %cst_76 = arith.constant dense<0.000000e+00> : vector<8x512xf32>
    %287 = tpu.matmul %286, %7, %cst_76 {dimension_numbers = #tpu.dot_dimension_numbers<[1], [0], [0], [1], [0, 0, 1, 1], [], []>} : vector<8x128xbf16>, vector<128x512xbf16>, vector<8x512xf32> -> vector<8x512xf32>
    %288 = arith.addf %284, %287 : vector<8x512xf32>
    %289 = arith.truncf %283 : vector<8x128xf32> to vector<8x128xbf16>
    %cst_77 = arith.constant dense<0.000000e+00> : vector<8x512xf32>
    %290 = tpu.matmul %289, %8, %cst_77 {dimension_numbers = #tpu.dot_dimension_numbers<[1], [0], [0], [1], [0, 0, 1, 1], [], []>} : vector<8x128xbf16>, vector<128x512xbf16>, vector<8x512xf32> -> vector<8x512xf32>
    %291 = arith.addf %285, %290 : vector<8x512xf32>
    %292 = vector.extract_strided_slice %288 {offsets = [0, 0], sizes = [8, 384], strides = [1, 1]} : vector<8x512xf32> to vector<8x384xf32>
    %293 = math.tanh %292 : vector<8x384xf32>
    %cst_78 = arith.constant 5.000000e-01 : f32
    %294 = vector.broadcast %cst_78 : f32 to vector<8x384xf32>
    %295 = arith.mulf %294, %293 : vector<8x384xf32>
    %cst_79 = arith.constant 5.000000e-01 : f32
    %296 = vector.broadcast %cst_79 : f32 to vector<8x384xf32>
    %297 = arith.addf %295, %296 : vector<8x384xf32>
    %298 = vector.extract_strided_slice %288 {offsets = [0, 384], sizes = [8, 128], strides = [1, 1]} : vector<8x512xf32> to vector<8x128xf32>
    %299 = math.tanh %298 : vector<8x128xf32>
    %300 = vector.extract_strided_slice %291 {offsets = [0, 0], sizes = [8, 384], strides = [1, 1]} : vector<8x512xf32> to vector<8x384xf32>
    %301 = math.tanh %300 : vector<8x384xf32>
    %cst_80 = arith.constant 5.000000e-01 : f32
    %302 = vector.broadcast %cst_80 : f32 to vector<8x384xf32>
    %303 = arith.mulf %302, %301 : vector<8x384xf32>
    %cst_81 = arith.constant 5.000000e-01 : f32
    %304 = vector.broadcast %cst_81 : f32 to vector<8x384xf32>
    %305 = arith.addf %303, %304 : vector<8x384xf32>
    %306 = vector.extract_strided_slice %291 {offsets = [0, 384], sizes = [8, 128], strides = [1, 1]} : vector<8x512xf32> to vector<8x128xf32>
    %307 = math.tanh %306 : vector<8x128xf32>
    %308 = vector.extract_strided_slice %297 {offsets = [0, 128], sizes = [8, 128], strides = [1, 1]} : vector<8x384xf32> to vector<8x128xf32>
    %309 = arith.mulf %308, %272 : vector<8x128xf32>
    %310 = vector.extract_strided_slice %297 {offsets = [0, 0], sizes = [8, 128], strides = [1, 1]} : vector<8x384xf32> to vector<8x128xf32>
    %311 = arith.mulf %310, %299 : vector<8x128xf32>
    %312 = arith.addf %309, %311 : vector<8x128xf32>
    %313 = vector.extract_strided_slice %297 {offsets = [0, 256], sizes = [8, 128], strides = [1, 1]} : vector<8x384xf32> to vector<8x128xf32>
    %314 = math.tanh %312 : vector<8x128xf32>
    %315 = arith.mulf %313, %314 : vector<8x128xf32>
    %316 = vector.extract_strided_slice %305 {offsets = [0, 128], sizes = [8, 128], strides = [1, 1]} : vector<8x384xf32> to vector<8x128xf32>
    %317 = arith.mulf %316, %280 : vector<8x128xf32>
    %318 = vector.extract_strided_slice %305 {offsets = [0, 0], sizes = [8, 128], strides = [1, 1]} : vector<8x384xf32> to vector<8x128xf32>
    %319 = arith.mulf %318, %307 : vector<8x128xf32>
    %320 = arith.addf %317, %319 : vector<8x128xf32>
    %321 = vector.extract_strided_slice %305 {offsets = [0, 256], sizes = [8, 128], strides = [1, 1]} : vector<8x384xf32> to vector<8x128xf32>
    %322 = math.tanh %320 : vector<8x128xf32>
    %323 = arith.mulf %321, %322 : vector<8x128xf32>
    %324 = tpu.concatenate %315, %323 in 1 : vector<8x128xf32>, vector<8x128xf32> -> vector<8x256xf32>
    %325 = arith.truncf %324 : vector<8x256xf32> to vector<8x256xbf16>
    %c0_82 = arith.constant 0 : index
    %c0_83 = arith.constant 0 : index
    %326 = vector.load %arg5[%c0_82, %c0_83] : memref<256x128xbf16, #tpu.memory_space<vmem>>, vector<256x128xbf16>
    %cst_84 = arith.constant dense<0.000000e+00> : vector<8x128xf32>
    %327 = tpu.matmul %325, %326, %cst_84 {dimension_numbers = #tpu.dot_dimension_numbers<[1], [0], [0], [1], [0, 0, 1, 1], [], []>} : vector<8x256xbf16>, vector<256x128xbf16>, vector<8x128xf32> -> vector<8x128xf32>
    %c0_85 = arith.constant 0 : index
    %c0_86 = arith.constant 0 : index
    %328 = vector.load %arg6[%c0_85, %c0_86] : memref<1x128xf32, #tpu.memory_space<vmem>>, vector<1x128xf32>
    %329 = vector.broadcast %328 : vector<1x128xf32> to vector<8x128xf32>
    %330 = arith.addf %327, %329 : vector<8x128xf32>
    %c0_87 = arith.constant 0 : index
    %c0_88 = arith.constant 0 : index
    %331 = vector.load %arg7[%c0_87, %c0_88] : memref<8x128xf32, #tpu.memory_space<vmem>>, vector<8x128xf32>
    tpu.vector_store %arg7[%c0_87, %c0_88], %330 {strides = array<i32>} : memref<8x128xf32, #tpu.memory_space<vmem>>, vector<8x128xf32>,
    return
  }
}

</mosaic_0001>

<bundles_post_ra>
// kernel: text_rnn_forward.1
= control target key start
LH: loop header
LB: loop body
LE: loop exit
PB: predicated region body
PF: predicated region fallthrough
CT: control target
= control target key end

     0   :  { %v4955_v3 = vmov 0   ;;  %vm289_vm0 = vcmask 523264   ;;  %s4947_s1 = inlined_call_operand.vmem [shape: bf16[64,1024], index: 1, kind: input, shape index: {}]   ;;  %s4948_s0 = inlined_call_operand.vmem [shape: bf16[64,64], index: 0, kind: input, shape index: {}]   ;;  %s4949_s3 = inlined_call_operand.vmem [shape: bf16[128,512], index: 3, kind: input, shape index: {}]   ;;  %s4950_s4 = inlined_call_operand.vmem [shape: bf16[128,512], index: 4, kind: input, shape index: {}]   ;;  %s4951_s2 = inlined_call_operand.vmem [shape: f32[1,1024], index: 2, kind: input, shape index: {}]   ;;  %s4952_s5 = inlined_call_operand.vmem [shape: bf16[256,128], index: 5, kind: input, shape index: {}]   ;;  %s4953_s6 = inlined_call_operand.vmem [shape: f32[1,128], index: 6, kind: input, shape index: {}]   ;;  %s4954_s7 = inlined_call_operand.vmem [shape: f32[8,128], index: 7, kind: output, shape index: {}]  }
   0x1   :  { %v35_v0 = vld [vmem:[%s4947_s1] sm:$0xff]  ;;  %354 = vmatprep.mubr.bf16.mxu1 %v4955_v3  ;;  %334 = vmatprep.mubr.bf16.mxu0 %v4955_v3  ;;  %v36_v16 = vld [vmem:[%s4947_s1 + $0x8] sm:$0xff]  ;;  %v37_v18 = vld [vmem:[%s4947_s1 + $0x10] sm:$0xff] }
   0x2   :  { %v39_v1 = vld [vmem:[%s4947_s1 + $0x20] sm:$0xff]  ;;  %v40_v17 = vld [vmem:[%s4947_s1 + $0x28] sm:$0xff]  ;;  %v41_v19 = vld [vmem:[%s4947_s1 + $0x30] sm:$0xff] }
   0x3   :  { %v43_v2 = vld [vmem:[%s4947_s1 + $0x40] sm:$0xff]  ;;  %v2751_v4 = vcombine.high %v35_v0, %v39_v1  ;;  %v2750_v5 = vcombine.low %v35_v0, %v39_v1  ;;  %v2753_v21 = vcombine.high %v36_v16, %v40_v17  ;;  %v2755_v22 = vcombine.high %v37_v18, %v41_v19  ;;  %v3338_v23 = vld [vmem:[%s4948_s0 + $0x10] sm:$0xff]   ;;  %v44_v24 = vld [vmem:[%s4947_s1 + $0x48] sm:$0xff] }
   0x4   :  { %v47_v6 = vld [vmem:[%s4947_s1 + $0x60] sm:$0xff]  ;;  %v48_v25 = vld [vmem:[%s4947_s1 + $0x68] sm:$0xff]  ;;  %v45_v27 = vld [vmem:[%s4947_s1 + $0x50] sm:$0xff]  ;;  %v2752_v29 = vcombine.low %v36_v16, %v40_v17  ;;  %v2754_v31 = vcombine.low %v37_v18, %v41_v19 }
   0x5   :  { %v2759_v7 = vcombine.high %v43_v2, %v47_v6  ;;  %v51_v8 = vld [vmem:[%s4947_s1 + $0x80] sm:$0xff]  ;;  %2901 = vmatprep.subr.bf16.mxu1 %v2751_v4  ;;  %302 = vmatprep.subr.bf16.mxu0 %v2751_v4  ;;  %v2758_v10 = vcombine.low %v43_v2, %v47_v6  ;;  %v49_v28 = vld [vmem:[%s4947_s1 + $0x70] sm:$0xff]  ;;  %v2761_v30 = vcombine.high %v44_v24, %v48_v25  ;;  %v52_v32 = vld [vmem:[%s4947_s1 + $0x88] sm:$0xff] }
   0x6   :  { %v55_v9 = vld [vmem:[%s4947_s1 + $0xa0] sm:$0xff]  ;;  %2905 = vmatpush1.bf16.msra.mxu1 %v2750_v5  ;;  %303 = vmatpush1.bf16.msra.mxu0 %v2750_v5  ;;  %v56_v33 = vld [vmem:[%s4947_s1 + $0xa8] sm:$0xff]  ;;  %v2763_v34 = vcombine.high %v45_v27, %v49_v28  ;;  %v53_v35 = vld [vmem:[%s4947_s1 + $0x90] sm:$0xff]  ;;  %v2760_v37 = vcombine.low %v44_v24, %v48_v25  ;;  %v2762_v39 = vcombine.low %v45_v27, %v49_v28 }
   0x7   :  { %2902 = vmatprep.subr.bf16.mxu1 %v2759_v7  ;;  %v2767_v11 = vcombine.high %v51_v8, %v55_v9  ;;  %304 = vmatprep.subr.bf16.mxu0 %v2759_v7  ;;  %v59_v12 = vld [vmem:[%s4947_s1 + $0xc0] sm:$0xff]  ;;  %v2766_v14 = vcombine.low %v51_v8, %v55_v9  ;;  %v57_v36 = vld [vmem:[%s4947_s1 + $0xb0] sm:$0xff]  ;;  %v2769_v38 = vcombine.high %v52_v32, %v56_v33  ;;  %v60_v40 = vld [vmem:[%s4947_s1 + $0xc8] sm:$0xff] }
   0x8   :  { %v63_v13 = vld [vmem:[%s4947_s1 + $0xe0] sm:$0xff]  ;;  %v64_v41 = vld [vmem:[%s4947_s1 + $0xe8] sm:$0xff]  ;;  %v2771_v42 = vcombine.high %v53_v35, %v57_v36  ;;  %v3384_v43 = vld [vmem:[%s4948_s0 + $0x18] sm:$0xff]   ;;  %v2768_v46 = vcombine.low %v52_v32, %v56_v33  ;;  %v2770_v49 = vcombine.low %v53_v35, %v57_v36 }
   0x9   :  { %v2775_v15 = vcombine.high %v59_v12, %v63_v13  ;;  %v2774_v20 = vcombine.low %v59_v12, %v63_v13  ;;  %v3349_v26 = vld [vmem:[%s4948_s0] sm:$0xff]   ;;  %v61_v44 = vld [vmem:[%s4947_s1 + $0xd0] sm:$0xff]  ;;  %v2777_v47 = vcombine.high %v60_v40, %v64_v41  ;;  %v2913_v48 = vld [vmem:[%s4948_s0 + $0x8] sm:$0xff]   ;;  %v2776_v53 = vcombine.low %v60_v40, %v64_v41 }
   0xa   :  { %2906 = vmatpush1.bf16.msra.mxu1 %v2758_v10  ;;  %305 = vmatpush1.bf16.msra.mxu0 %v2758_v10  ;;  %v65_v45 = vld [vmem:[%s4947_s1 + $0xf0] sm:$0xff]  ;;  %v38_v50 = vld [vmem:[%s4947_s1 + $0x18] sm:$0xff]  ;;  %v69_v40 = vlaneseq }
   0xb   :  { %2903 = vmatprep.subr.bf16.mxu1 %v2767_v11  ;;  %306 = vmatprep.subr.bf16.mxu0 %v2767_v11  ;;  %v42_v51 = vld [vmem:[%s4947_s1 + $0x38] sm:$0xff]  ;;  %v2779_v52 = vcombine.high %v61_v44, %v65_v45  ;;  %v2778_v55 = vcombine.low %v61_v44, %v65_v45  ;;  %v3460_v6 = vld [vmem:[%s4949_s3 + $0x4] ss:$16 sps:$4 sm:$0xff]   ;;  %v3471_v8 = vld [vmem:[%s4949_s3] ss:$16 sps:$4 sm:$0xff]  }
   0xc   :  { %v2757_v54 = vcombine.high %v38_v50, %v42_v51  ;;  %v46_v56 = vld [vmem:[%s4947_s1 + $0x58] sm:$0xff]  ;;  %v2756_v58 = vcombine.low %v38_v50, %v42_v51  ;;  %5090 = vst [vmem:[#allocation3_spill] sm:$0xff] %v3460_v6  ;;  %v3484_v10 = vld [vmem:[%s4949_s3 + $0x24] ss:$16 sps:$4 sm:$0xff]   ;;  %v3494_v12 = vld [vmem:[%s4949_s3 + $0x20] ss:$16 sps:$4 sm:$0xff]  }
   0xd   :  { %v50_v57 = vld [vmem:[%s4947_s1 + $0x78] sm:$0xff]  ;;  %v3518_v16 = vld [vmem:[%s4949_s3 + $0x40] ss:$16 sps:$4 sm:$0xff]   ;;  %v3532_v18 = vld [vmem:[%s4949_s3 + $0x64] ss:$16 sps:$4 sm:$0xff]   ;;  %v3661_v41 = vshrl.u32 %v69_v40, 7 }
   0xe   :  { %2907 = vmatpush1.bf16.msra.mxu1 %v2766_v14  ;;  %307 = vmatpush1.bf16.msra.mxu0 %v2766_v14  ;;  %v2765_v59 = vcombine.high %v46_v56, %v50_v57  ;;  %v54_v60 = vld [vmem:[%s4947_s1 + $0x98] sm:$0xff]  ;;  %v2764_v62 = vcombine.low %v46_v56, %v50_v57  ;;  %v3508_v14 = vld [vmem:[%s4949_s3 + $0x44] ss:$16 sps:$4 sm:$0xff]   ;;  %v3566_v24 = vld [vmem:[%s4949_s3 + $0x80] ss:$16 sps:$4 sm:$0xff]  }
   0xf   :  { %2904 = vmatprep.subr.bf16.mxu1 %v2775_v15  ;;  %308 = vmatprep.subr.bf16.mxu0 %v2775_v15  ;;  %v58_v61 = vld [vmem:[%s4947_s1 + $0xb8] sm:$0xff]  ;;  %v3590_v28 = vld [vmem:[%s4949_s3 + $0xa0] ss:$16 sps:$4 sm:$0xff]   ;;  %v75_v44 = vsub.s32 1, %v3661_v41 }
  0x10   :  { %v2773_v63 = vcombine.high %v54_v60, %v58_v61  ;;  %v62_v0 = vld [vmem:[%s4947_s1 + $0xd8] sm:$0xff]  ;;  %v2772_v2 = vcombine.low %v54_v60, %v58_v61  ;;  %v3614_v32 = vld [vmem:[%s4949_s3 + $0xc0] ss:$16 sps:$4 sm:$0xff]  }
  0x11   :  { %v66_v1 = vld [vmem:[%s4947_s1 + $0xf8] sm:$0xff]  ;;  %v3638_v36 = vld [vmem:[%s4949_s3 + $0xe0] ss:$16 sps:$4 sm:$0xff]  }
  0x12   :  { %2908 = vmatpush1.bf16.msra.mxu1 %v2774_v20  ;;  %309 = vmatpush1.bf16.msra.mxu0 %v2774_v20  ;;  %v2781_v4 = vcombine.high %v62_v0, %v66_v1  ;;  %v2780_v5 = vcombine.low %v62_v0, %v66_v1  ;;  %v3465_v7 = vld [vmem:[%s4949_s3 + $0xc] ss:$16 sps:$4 sm:$0xff]   ;;  %v3476_v9 = vld [vmem:[%s4949_s3 + $0x8] ss:$16 sps:$4 sm:$0xff]   ;;  %v3542_v20 = vld [vmem:[%s4949_s3 + $0x60] ss:$16 sps:$4 sm:$0xff]  }
  0x13   :  { %375 = vmatprep.subr.bf16.mxu1 %v2753_v21  ;;  %448 = vmatprep.subr.bf16.mxu0 %v2755_v22  ;;  %5091 = vst [vmem:[#allocation4_spill] sm:$0xff] %v3465_v7  ;;  %v3489_v11 = vld [vmem:[%s4949_s3 + $0x2c] ss:$16 sps:$4 sm:$0xff]   ;;  %v3499_v13 = vld [vmem:[%s4949_s3 + $0x28] ss:$16 sps:$4 sm:$0xff]  }
  0x14   :  { %v3513_v15 = vld [vmem:[%s4949_s3 + $0x4c] ss:$16 sps:$4 sm:$0xff]   ;;  %v3523_v17 = vld [vmem:[%s4949_s3 + $0x48] ss:$16 sps:$4 sm:$0xff]   ;;  %v3556_v22 = vld [vmem:[%s4949_s3 + $0x84] ss:$16 sps:$4 sm:$0xff]  }
  0x15   :  { %2784 = vmatmul.mubr.msk.bf16.vlgmr.msra.gmra.mrb[0].mxu1 %vm289_vm0, %v3338_v23  ;;  %2782 = vmatmul.mubr.msk.bf16.vlgmr.msra.gmra.mrb[0].mxu0 %vm289_vm0, %v3349_v26  ;;  %v3537_v19 = vld [vmem:[%s4949_s3 + $0x6c] ss:$16 sps:$4 sm:$0xff]   ;;  %v3547_v21 = vld [vmem:[%s4949_s3 + $0x68] ss:$16 sps:$4 sm:$0xff]  }
  0x16   :  { %376 = vmatpush1.bf16.msra.mxu1 %v2752_v29  ;;  %364 = vmatprep.mubr.bf16.mxu1 %v4955_v3  ;;  %v3571_v25 = vld [vmem:[%s4949_s3 + $0x88] ss:$16 sps:$4 sm:$0xff]   ;;  %v3585_v27 = vld [vmem:[%s4949_s3 + $0xac] ss:$16 sps:$4 sm:$0xff]  }
  0x17   :  { %377 = vmatprep.subr.bf16.mxu1 %v2761_v30  ;;  %449 = vmatpush1.bf16.msra.mxu0 %v2754_v31  ;;  %v3595_v29 = vld [vmem:[%s4949_s3 + $0xa8] ss:$16 sps:$4 sm:$0xff]   ;;  %v3604_v30 = vld [vmem:[%s4949_s3 + $0xc4] ss:$16 sps:$4 sm:$0xff]   ;;  %v3609_v31 = vld [vmem:[%s4949_s3 + $0xcc] ss:$16 sps:$4 sm:$0xff]  }
  0x18   :  { %450 = vmatprep.subr.bf16.mxu0 %v2763_v34  ;;  %344 = vmatprep.mubr.bf16.mxu0 %v4955_v3  ;;  %v3619_v33 = vld [vmem:[%s4949_s3 + $0xc8] ss:$16 sps:$4 sm:$0xff]   ;;  %v3628_v34 = vld [vmem:[%s4949_s3 + $0xe4] ss:$16 sps:$4 sm:$0xff]   ;;  %v3633_v35 = vld [vmem:[%s4949_s3 + $0xec] ss:$16 sps:$4 sm:$0xff]  }
  0x1a   :  { %378 = vmatpush1.bf16.msra.mxu1 %v2760_v37  ;;  %v3643_v37 = vld [vmem:[%s4949_s3 + $0xe8] ss:$16 sps:$4 sm:$0xff]  }
  0x1b   :  { %379 = vmatprep.subr.bf16.mxu1 %v2769_v38  ;;  %451 = vmatpush1.bf16.msra.mxu0 %v2762_v39  ;;  %v3652_v38 = vld [vmem:[%s4950_s4 + $0x4] ss:$16 sps:$4 sm:$0xff]   ;;  %v3657_v39 = vld [vmem:[%s4950_s4 + $0xc] ss:$16 sps:$4 sm:$0xff]  }
  0x1c   :  { %452 = vmatprep.subr.bf16.mxu0 %v2771_v42  ;;  %v71_v42 = vsub.s32 0, %v3661_v41 }
  0x1d   :  { %2785 = vmatmul.mubr.msk.bf16.gmra.mrb[4].mxu1 %vm289_vm0, %v3384_v43  ;;  %2783 = vmatmul.mubr.msk.bf16.gmra.mrb[4].mxu0 %vm289_vm0, %v2913_v48 }
  0x1e   :  { %380 = vmatpush1.bf16.msra.mxu1 %v2768_v46  ;;  %407 = vmatprep.mubr.bf16.mxu1 %v4955_v3 }
  0x1f   :  { %381 = vmatprep.subr.bf16.mxu1 %v2777_v47  ;;  %453 = vmatpush1.bf16.msra.mxu0 %v2770_v49 }
  0x20   :  { %454 = vmatprep.subr.bf16.mxu0 %v2779_v52  ;;  %480 = vmatprep.mubr.bf16.mxu0 %v4955_v3 }
  0x22   :  { %382 = vmatpush1.bf16.msra.mxu1 %v2776_v53 }
  0x23   :  { %521 = vmatprep.subr.bf16.mxu1 %v2757_v54  ;;  %455 = vmatpush1.bf16.msra.mxu0 %v2778_v55 }
  0x24   :  { %929 = vmatprep.subr.bf16.mxu0 %v3460_v6 }
  0x25   :  { %2786 = vmatmul.mubr.msk.bf16.vlgmr.msra.gmra.mrb[8].mxu1 %vm289_vm0, %v3349_v26 }
  0x26   :  { %522 = vmatpush1.bf16.msra.mxu1 %v2756_v58  ;;  %417 = vmatprep.mubr.bf16.mxu1 %v4955_v3 }
  0x27   :  { %523 = vmatprep.subr.bf16.mxu1 %v2765_v59  ;;  %2790 = vmatmul.mubr.msk.bf16.vlgmr.msra.gmra.mrb[8].mxu0 %vm289_vm0, %v3349_v26 }
  0x28   :  { %490 = vmatprep.mubr.bf16.mxu0 %v4955_v3  ;;  %930 = vmatpush1.bf16.msra.mxu0 %v3471_v8 }
  0x29   :  { %931 = vmatprep.subr.bf16.mxu0 %v3484_v10 }
  0x2a   :  { %524 = vmatpush1.bf16.msra.mxu1 %v2764_v62 }
  0x2b   :  { %525 = vmatprep.subr.bf16.mxu1 %v2773_v63 }
  0x2c   :  { %932 = vmatpush1.bf16.msra.mxu0 %v3494_v12 }
  0x2d   :  { %2787 = vmatmul.mubr.msk.bf16.gmra.mrb[12].mxu1 %vm289_vm0, %v2913_v48  ;;  %933 = vmatprep.subr.bf16.mxu0 %v3508_v14 }
  0x2e   :  { %427 = vmatprep.mubr.bf16.mxu1 %v4955_v3  ;;  %526 = vmatpush1.bf16.msra.mxu1 %v2772_v2 }
  0x2f   :  { %527 = vmatprep.subr.bf16.mxu1 %v2781_v4  ;;  %2791 = vmatmul.mubr.msk.bf16.gmra.mrb[12].mxu0 %vm289_vm0, %v2913_v48 }
  0x30   :  { %500 = vmatprep.mubr.bf16.mxu0 %v4955_v3  ;;  %934 = vmatpush1.bf16.msra.mxu0 %v3518_v16 }
  0x31   :  { %935 = vmatprep.subr.bf16.mxu0 %v3532_v18 }
  0x32   :  { %528 = vmatpush1.bf16.msra.mxu1 %v2780_v5 }
  0x33   :  { %970 = vmatprep.subr.bf16.mxu1 %v3465_v7 }
  0x34   :  { %936 = vmatpush1.bf16.msra.mxu0 %v3542_v20 }
  0x35   :  { %2788 = vmatmul.mubr.msk.bf16.gmra.mrb[16].mxu1 %vm289_vm0, %v3338_v23  ;;  %937 = vmatprep.subr.bf16.mxu0 %v3556_v22 }
  0x36   :  { %437 = vmatprep.mubr.bf16.mxu1 %v4955_v3 }
  0x37   :  { %2792 = vmatmul.mubr.msk.bf16.gmra.mrb[16].mxu0 %vm289_vm0, %v3338_v23 }
  0x38   :  { %510 = vmatprep.mubr.bf16.mxu0 %v4955_v3  ;;  %938 = vmatpush1.bf16.msra.mxu0 %v3566_v24 }
  0x3d   :  { %2789 = vmatmul.mubr.msk.bf16.gmra.mrb[20].mxu1 %vm289_vm0, %v3384_v43 }
  0x3e   :  { %553 = vmatprep.mubr.bf16.mxu1 %v4955_v3 }
  0x3f   :  { %2793 = vmatmul.mubr.msk.bf16.gmra.mrb[20].mxu0 %vm289_vm0, %v3384_v43 }
  0x40   :  { %961 = vmatprep.mubr.bf16.mxu0 %v4955_v3 }
  0x45   :  { %2794 = vmatmul.mubr.msk.bf16.vlgmr.msra.gmra.mrb[24].mxu1 %vm289_vm0, %v3349_v26  ;;  %v3580_v26 = vld [vmem:[%s4949_s3 + $0xa4] ss:$16 sps:$4 sm:$0xff]  }
  0x46   :  { %563 = vmatprep.mubr.bf16.mxu1 %v4955_v3  ;;  %971 = vmatpush1.bf16.msra.mxu1 %v3476_v9 }
  0x47   :  { %972 = vmatprep.subr.bf16.mxu1 %v3489_v11  ;;  %939 = vmatprep.subr.bf16.mxu0 %v3580_v26 }
  0x48   :  { %940 = vmatpush1.bf16.msra.mxu0 %v3590_v28 }
  0x49   :  { %941 = vmatprep.subr.bf16.mxu0 %v3604_v30 }
  0x4a   :  { %973 = vmatpush1.bf16.msra.mxu1 %v3499_v13 }
  0x4b   :  { %974 = vmatprep.subr.bf16.mxu1 %v3513_v15 }
  0x4c   :  { %942 = vmatpush1.bf16.msra.mxu0 %v3614_v32 }
  0x4d   :  { %2795 = vmatmul.mubr.msk.bf16.gmra.mrb[28].mxu1 %vm289_vm0, %v2913_v48  ;;  %943 = vmatprep.subr.bf16.mxu0 %v3628_v34 }
  0x4e   :  { %573 = vmatprep.mubr.bf16.mxu1 %v4955_v3  ;;  %975 = vmatpush1.bf16.msra.mxu1 %v3523_v17 }
  0x4f   :  { %976 = vmatprep.subr.bf16.mxu1 %v3537_v19 }
  0x50   :  { %944 = vmatpush1.bf16.msra.mxu0 %v3638_v36 }
  0x51   :  { %1176 = vmatprep.subr.bf16.mxu0 %v3652_v38 }
  0x52   :  { %977 = vmatpush1.bf16.msra.mxu1 %v3547_v21 }
  0x55   :  { %2796 = vmatmul.mubr.msk.bf16.gmra.mrb[32].mxu1 %vm289_vm0, %v3338_v23  ;;  %v3561_v23 = vld [vmem:[%s4949_s3 + $0x8c] ss:$16 sps:$4 sm:$0xff]  }
  0x56   :  { %583 = vmatprep.mubr.bf16.mxu1 %v4955_v3  ;;  %978 = vmatprep.subr.bf16.mxu1 %v3561_v23 }
  0x57   :  { %979 = vmatpush1.bf16.msra.mxu1 %v3571_v25 }
  0x58   :  { %980 = vmatprep.subr.bf16.mxu1 %v3585_v27 }
  0x5b   :  { %981 = vmatpush1.bf16.msra.mxu1 %v3595_v29 }
  0x5c   :  { %982 = vmatprep.subr.bf16.mxu1 %v3609_v31 }
  0x5d   :  { %2797 = vmatmul.mubr.msk.bf16.gmra.mrb[36].mxu1 %vm289_vm0, %v3384_v43  ;;  %v3667_v43 = vld [vmem:[%s4951_s2] sm:$0xff] }
  0x5e   :  { %1002 = vmatprep.mubr.bf16.mxu1 %v4955_v3  ;;  %v72_v45 = vrot.slane %v3667_v43, %v71_v42  ;;  %v76_v46 = vrot.slane %v3667_v43, %v75_v44  ;;  %v83_v44 = vsub.s32 3, %v3661_v41 }
  0x5f   :  { %983 = vmatpush1.bf16.msra.mxu1 %v3619_v33 }
  0x60   :  { %984 = vmatprep.subr.bf16.mxu1 %v3633_v35 }
  0x63   :  { %985 = vmatpush1.bf16.msra.mxu1 %v3643_v37 }
  0x64   :  { %1217 = vmatprep.subr.bf16.mxu1 %v3657_v39 }
  0xe8   :  { %v356_v47 = vpop.f32.mrb[0].mxu1  ;;  %v336_v48 = vpop.f32.mrb[0].mxu0 }
  0xe9   :  { %v3672_v49 = vadd.f32 %v356_v47, %v72_v45  ;;  %v358_v50 = vpop.f32.mrb[1].mxu1  ;;  %v338_v51 = vpop.f32.mrb[1].mxu0  ;;  %v337_v62 = vadd.f32 %v336_v48, %v72_v45 }
  0xea   :  { %v3674_v52 = vadd.f32 %v358_v50, %v76_v46  ;;  %v360_v53 = vpop.f32.mrb[2].mxu1  ;;  %v340_v54 = vpop.f32.mrb[2].mxu0  ;;  %v339_v60 = vadd.f32 %v338_v51, %v76_v46 }
  0xeb   :  { %5092 = vst [vmem:[#allocation5_spill] sm:$0xff] %v3672_v49  ;;  %v3676_v55 = vadd.f32 %v360_v53, %v72_v45  ;;  %v362_v56 = vpop.f32.mrb[3].mxu1  ;;  %v3678_v57 = vadd.f32 %v340_v54, %v72_v45  ;;  %v342_v58 = vpop.f32.mrb[3].mxu0 }
  0xec   :  { %5093 = vst [vmem:[#allocation6_spill] sm:$0xff] %v3674_v52  ;;  %v3680_v59 = vadd.f32 %v362_v56, %v76_v46  ;;  %v3682_v61 = vadd.f32 %v342_v58, %v76_v46  ;;  %3026 = vtanh.f32 %v339_v60  ;;  %v87_v56 = vsub.s32 4, %v3661_v41 }
  0xed   :  { %5094 = vst [vmem:[#allocation7_spill] sm:$0xff] %v3676_v55  ;;  %3028 = vtanh.f32 %v337_v62  ;;  %v79_v62 = vsub.s32 2, %v3661_v41 }
  0xee   :  { %5095 = vst [vmem:[#allocation8_spill] sm:$0xff] %v3680_v59 }
  0xf0   :  { %v366_v63 = vpop.f32.mrb[4].mxu1  ;;  %v346_v0 = vpop.f32.mrb[4].mxu0 }
  0xf1   :  { %v3684_v1 = vadd.f32 %v366_v63, %v72_v45  ;;  %v368_v2 = vpop.f32.mrb[5].mxu1  ;;  %v3686_v4 = vadd.f32 %v346_v0, %v72_v45  ;;  %v348_v5 = vpop.f32.mrb[5].mxu0  ;;  %v91_v63 = vsub.s32 5, %v3661_v41  ;;  %v3705_v0 = vrot.slane %v3667_v43, %v83_v44 }
  0xf2   :  { %v3688_v40 = vadd.f32 %v368_v2, %v76_v46  ;;  %v370_v42 = vpop.f32.mrb[6].mxu1  ;;  %v3691_v47 = vadd.f32 %v348_v5, %v76_v46  ;;  %v350_v50 = vpop.f32.mrb[6].mxu0  ;;  %v3708_v2 = vrot.slane %v3667_v43, %v87_v56 }
  0xf3   :  { %5096 = vst [vmem:[#allocation9_spill] sm:$0xff] %v3684_v1  ;;  %5097 = vst [vmem:[#allocation10_spill] sm:$0xff] %v3686_v4  ;;  %v3693_v51 = vadd.f32 %v370_v42, %v72_v45  ;;  %v372_v48 = vpop.f32.mrb[7].mxu1  ;;  %v3695_v53 = vadd.f32 %v350_v50, %v72_v45  ;;  %v352_v54 = vpop.f32.mrb[7].mxu0  ;;  %v3711_v45 = vrot.slane %v3667_v43, %v91_v63 }
  0xf4   :  { %5098 = vst [vmem:[#allocation11_spill] sm:$0xff] %v3688_v40  ;;  %5099 = vst [vmem:[#allocation12_spill] sm:$0xff] %v3691_v47  ;;  %v3698_v58 = vadd.f32 %v372_v48, %v76_v46  ;;  %v3700_v60 = vadd.f32 %v352_v54, %v76_v46  ;;  %v3714_v42 = vrot.slane %v3667_v43, %v79_v62 }
  0xf5   :  { %5100 = vst [vmem:[#allocation13_spill] sm:$0xff] %v3693_v51  ;;  %5101 = vst [vmem:[#allocation14_spill] sm:$0xff] %v3695_v53 }
  0xf6   :  { %5102 = vst [vmem:[#allocation15_spill] sm:$0xff] %v3698_v58  ;;  %5103 = vst [vmem:[#allocation16_spill] sm:$0xff] %v3700_v60  ;;  %v3027_v46 = vpop.eup %3026 }
  0xf7   :  { %v3029_v40 = vpop.eup %3028 }
  0xf8   :  { %v409_v5 = vpop.f32.mrb[8].mxu1 }
  0xf9   :  { %v411_v50 = vpop.f32.mrb[9].mxu1 }
  0xfa   :  { %v412_v48 = vadd.f32 %v411_v50, %v3705_v0  ;;  %v413_v54 = vpop.f32.mrb[10].mxu1  ;;  %v482_v3 = vpop.f32.mrb[8].mxu0  ;;  %v734_v50 = vmul.f32 0.5, %v3027_v46 }
  0xfb   :  { %v3718_v58 = vadd.f32 %v413_v54, %v3714_v42  ;;  %v415_v44 = vpop.f32.mrb[11].mxu1  ;;  %v3721_v56 = vadd.f32 %v482_v3, %v3708_v2  ;;  %v484_v51 = vpop.f32.mrb[9].mxu0  ;;  %v733_v3 = vmul.f32 0.5, %v3029_v40 }
  0xfc   :  { %3030 = vtanh.f32 %v412_v48  ;;  %v3724_v63 = vadd.f32 %v415_v44, %v3705_v0  ;;  %v3727_v62 = vadd.f32 %v484_v51, %v3711_v45  ;;  %v486_v1 = vpop.f32.mrb[10].mxu0  ;;  %v737_v48 = vadd.f32 0.5, %v734_v50 }
  0xfd   :  { %5104 = vst [vmem:[#allocation17_spill] sm:$0xff] %v3721_v56  ;;  %v3730_v59 = vadd.f32 %v486_v1, %v3708_v2  ;;  %v488_v54 = vpop.f32.mrb[11].mxu0  ;;  %v410_v56 = vadd.f32 %v409_v5, %v3714_v42  ;;  %v736_v1 = vadd.f32 0.5, %v733_v3 }
  0xfe   :  { %5105 = vst [vmem:[#allocation18_spill] sm:$0xff] %v3727_v62  ;;  %v3733_v55 = vadd.f32 %v488_v54, %v3711_v45 }
  0xff   :  { %5106 = vst [vmem:[#allocation19_spill] sm:$0xff] %v3730_v59  ;;  %3032 = vtanh.f32 %v410_v56 }
 0x100   :  { %5107 = vst [vmem:[#allocation20_spill] sm:$0xff] %v3733_v55  ;;  %v419_v52 = vpop.f32.mrb[12].mxu1  ;;  %v750_v55 = vmul.f32 0.0, %v737_v48 }
 0x101   :  { %v3737_v44 = vadd.f32 %v419_v52, %v3714_v42  ;;  %v421_v49 = vpop.f32.mrb[13].mxu1 }
 0x102   :  { %v3740_v51 = vadd.f32 %v421_v49, %v3705_v0  ;;  %v423_v46 = vpop.f32.mrb[14].mxu1  ;;  %v492_v62 = vpop.f32.mrb[12].mxu0 }
 0x103   :  { %5108 = vst [vmem:[#allocation21_spill] sm:$0xff] %v3737_v44  ;;  %v3743_v59 = vadd.f32 %v423_v46, %v3714_v42  ;;  %v425_v54 = vpop.f32.mrb[15].mxu1  ;;  %v3746_v40 = vadd.f32 %v492_v62, %v3708_v2  ;;  %v494_v5 = vpop.f32.mrb[13].mxu0 }
 0x104   :  { %5109 = vst [vmem:[#allocation22_spill] sm:$0xff] %v3740_v51  ;;  %v3749_v50 = vadd.f32 %v425_v54, %v3705_v0  ;;  %v3752_v52 = vadd.f32 %v494_v5, %v3711_v45  ;;  %v496_v49 = vpop.f32.mrb[14].mxu0  ;;  %v3895_v51 = vld [vmem:[%s4950_s4 + $0x6c] ss:$16 sps:$4 sm:$0xff]  }
 0x105   :  { %5110 = vst [vmem:[#allocation23_spill] sm:$0xff] %v3743_v59  ;;  %5111 = vst [vmem:[#allocation24_spill] sm:$0xff] %v3746_v40  ;;  %v3755_v60 = vadd.f32 %v496_v49, %v3708_v2  ;;  %v498_v56 = vpop.f32.mrb[15].mxu0 }
 0x106   :  { %5112 = vst [vmem:[#allocation25_spill] sm:$0xff] %v3749_v50  ;;  %5113 = vst [vmem:[#allocation26_spill] sm:$0xff] %v3752_v52  ;;  %v3031_v3 = vpop.eup %3030  ;;  %v3758_v46 = vadd.f32 %v498_v56, %v3711_v45 }
 0x107   :  { %5114 = vst [vmem:[#allocation27_spill] sm:$0xff] %v3755_v60  ;;  %v751_v59 = vmul.f32 %v3031_v3, %v736_v1  ;;  %5139 = vst [vmem:[#allocation51_spill] sm:$0xff] %v3895_v51 }
 0x108   :  { %5115 = vst [vmem:[#allocation28_spill] sm:$0xff] %v3758_v46  ;;  %v429_v62 = vpop.f32.mrb[16].mxu1 }
 0x109   :  { %v3760_v40 = vadd.f32 %v751_v59, %v750_v55  ;;  %v3763_v54 = vadd.f32 %v429_v62, %v3714_v42  ;;  %v431_v50 = vpop.f32.mrb[17].mxu1  ;;  %v3033_v62 = vpop.eup %3032 }
 0x10a   :  { %v3766_v5 = vadd.f32 %v431_v50, %v3705_v0  ;;  %v433_v48 = vpop.f32.mrb[18].mxu1  ;;  %v502_v52 = vpop.f32.mrb[16].mxu0 }
 0x10b   :  { %5116 = vst [vmem:[#allocation29_spill] sm:$0xff] %v3763_v54  ;;  %3034 = vtanh.f32 %v3760_v40  ;;  %v3770_v49 = vadd.f32 %v433_v48, %v3714_v42  ;;  %v435_v56 = vpop.f32.mrb[19].mxu1  ;;  %v3773_v1 = vadd.f32 %v502_v52, %v3708_v2  ;;  %v504_v55 = vpop.f32.mrb[17].mxu0 }
 0x10c   :  { %5117 = vst [vmem:[#allocation30_spill] sm:$0xff] %v3766_v5  ;;  %v3776_v59 = vadd.f32 %v435_v56, %v3705_v0  ;;  %v3779_v3 = vadd.f32 %v504_v55, %v3711_v45  ;;  %v506_v50 = vpop.f32.mrb[18].mxu0  ;;  %v95_v56 = vsub.s32 6, %v3661_v41 }
 0x10d   :  { %5118 = vst [vmem:[#allocation31_spill] sm:$0xff] %v3770_v49  ;;  %5119 = vst [vmem:[#allocation32_spill] sm:$0xff] %v3773_v1  ;;  %v3782_v46 = vadd.f32 %v506_v50, %v3708_v2  ;;  %v508_v60 = vpop.f32.mrb[19].mxu0  ;;  %v735_v49 = vmul.f32 0.5, %v3033_v62 }
 0x10e   :  { %5120 = vst [vmem:[#allocation33_spill] sm:$0xff] %v3776_v59  ;;  %5121 = vst [vmem:[#allocation34_spill] sm:$0xff] %v3779_v3  ;;  %v3785_v48 = vadd.f32 %v508_v60, %v3711_v45  ;;  %v99_v3 = vsub.s32 7, %v3661_v41  ;;  %v3810_v41 = vrot.slane %v3667_v43, %v95_v56  ;;  %v3828_v56 = vld [vmem:[%s4950_s4 + $0x24] ss:$16 sps:$4 sm:$0xff]  }
 0x10f   :  { %5122 = vst [vmem:[#allocation35_spill] sm:$0xff] %v3782_v46  ;;  %v3890_v46 = vld [vmem:[%s4950_s4 + $0x64] ss:$16 sps:$4 sm:$0xff]  }
 0x110   :  { %5123 = vst [vmem:[#allocation36_spill] sm:$0xff] %v3785_v48  ;;  %v439_v5 = vpop.f32.mrb[20].mxu1  ;;  %5138 = vst [vmem:[#allocation50_spill] sm:$0xff] %v3890_v46 }
 0x111   :  { %v3788_v52 = vadd.f32 %v439_v5, %v3714_v42  ;;  %v441_v54 = vpop.f32.mrb[21].mxu1  ;;  %v738_v5 = vadd.f32 0.5, %v735_v49  ;;  %v3818_v49 = vld [vmem:[%s4950_s4] ss:$16 sps:$4 sm:$0xff]  }
 0x112   :  { %v3792_v55 = vadd.f32 %v441_v54, %v3705_v0  ;;  %v443_v59 = vpop.f32.mrb[22].mxu1  ;;  %v512_v50 = vpop.f32.mrb[20].mxu0 }
 0x113   :  { %5124 = vst [vmem:[#allocation37_spill] sm:$0xff] %v3788_v52  ;;  %v3796_v1 = vadd.f32 %v443_v59, %v3714_v42  ;;  %v445_v60 = vpop.f32.mrb[23].mxu1  ;;  %v3799_v62 = vadd.f32 %v512_v50, %v3708_v2  ;;  %v514_v53 = vpop.f32.mrb[21].mxu0  ;;  %v3813_v59 = vrot.slane %v3667_v43, %v99_v3  ;;  %v3833_v43 = vld [vmem:[%s4950_s4 + $0x2c] ss:$16 sps:$4 sm:$0xff]  }
 0x114   :  { %5125 = vst [vmem:[#allocation38_spill] sm:$0xff] %v3792_v55  ;;  %v3802_v52 = vadd.f32 %v445_v60, %v3705_v0  ;;  %v3805_v48 = vadd.f32 %v514_v53, %v3711_v45  ;;  %v3807_v54 = vpop.f32.mrb[22].mxu0  ;;  %v3823_v53 = vld [vmem:[%s4950_s4 + $0x8] ss:$16 sps:$4 sm:$0xff]  }
 0x115   :  { %5126 = vst [vmem:[#allocation39_spill] sm:$0xff] %v3796_v1  ;;  %5127 = vst [vmem:[#allocation40_spill] sm:$0xff] %v3799_v62  ;;  %v3035_v55 = vpop.eup %3034  ;;  %v518_v42 = vpop.f32.mrb[23].mxu0 }
 0x116   :  { %5128 = vst [vmem:[#allocation41_spill] sm:$0xff] %v3802_v52  ;;  %5129 = vst [vmem:[#allocation42_spill] sm:$0xff] %v3805_v48  ;;  %v754_v50 = vmul.f32 %v3035_v55, %v738_v5 }
 0x118   :  { %v555_v0 = vpop.f32.mrb[24].mxu1  ;;  %v768_v60 = vpack.c.bf16 %v754_v50, %v754_v50 }
 0x119   :  { %v3836_v3 = vadd.f32 %v555_v0, %v3810_v41  ;;  %v557_v55 = vpop.f32.mrb[25].mxu1  ;;  %v3849_v0 = vld [vmem:[%s4950_s4 + $0x20] ss:$16 sps:$4 sm:$0xff]  }
 0x11a   :  { %v3839_v5 = vadd.f32 %v557_v55, %v3813_v59  ;;  %v559_v52 = vpop.f32.mrb[26].mxu1  ;;  %962 = vmatmul.mubr.bf16.vlgmr.msra.gmra.mrb[24].mxu0 %v768_v60  ;;  %1003 = vmatmul.mubr.bf16.vlgmr.msra.gmra.mrb[40].mxu1 %v768_v60  ;;  %v3854_v55 = vld [vmem:[%s4950_s4 + $0x28] ss:$16 sps:$4 sm:$0xff]  }
 0x11b   :  { %5130 = vst [vmem:[#allocation43_spill] sm:$0xff] %v3836_v3  ;;  %v3842_v50 = vadd.f32 %v559_v52, %v3810_v41  ;;  %v561_v1 = vpop.f32.mrb[27].mxu1  ;;  %1177 = vmatpush1.bf16.msra.mxu0 %v3818_v49  ;;  %1218 = vmatpush1.bf16.msra.mxu1 %v3823_v53  ;;  %v3864_v52 = vld [vmem:[%s4950_s4 + $0x44] ss:$16 sps:$4 sm:$0xff]   ;;  %v5136_v3 = vmov 0  }
 0x11c   :  { %5131 = vst [vmem:[#allocation44_spill] sm:$0xff] %v3839_v5  ;;  %v3857_v60 = vadd.f32 %v561_v1, %v3813_v59  ;;  %1178 = vmatprep.subr.bf16.mxu0 %v3828_v56  ;;  %1219 = vmatprep.subr.bf16.mxu1 %v3833_v43  ;;  %5134 = vst [vmem:[#allocation47_spill] sm:$0xff] %v3864_v52  ;;  %v3869_v5 = vld [vmem:[%s4950_s4 + $0x4c] ss:$16 sps:$4 sm:$0xff]   ;;  %v3878_v1 = vld [vmem:[%s4950_s4 + $0x40] ss:$16 sps:$4 sm:$0xff]  }
 0x11d   :  { %5132 = vst [vmem:[#allocation45_spill] sm:$0xff] %v3842_v50  ;;  %5135 = vst [vmem:[#allocation48_spill] sm:$0xff] %v3869_v5  ;;  %1208 = vmatprep.mubr.bf16.mxu0 %v5136_v3  ;;  %1249 = vmatprep.mubr.bf16.mxu1 %v5136_v3 }
 0x11e   :  { %5133 = vst [vmem:[#allocation46_spill] sm:$0xff] %v3857_v60  ;;  %v3883_v60 = vld [vmem:[%s4950_s4 + $0x48] ss:$16 sps:$4 sm:$0xff]  }
 0x11f   :  { %1179 = vmatpush1.bf16.msra.mxu0 %v3849_v0  ;;  %1220 = vmatpush1.bf16.msra.mxu1 %v3854_v55  ;;  %5137 = vst [vmem:[#allocation49_spill] sm:$0xff] %v3883_v60 }
 0x120   :  { %v565_v50 = vpop.f32.mrb[28].mxu1  ;;  %1180 = vmatprep.subr.bf16.mxu0 %v3864_v52  ;;  %1221 = vmatprep.subr.bf16.mxu1 %v3869_v5  ;;  %v3911_v52 = vld [vmem:[%s4950_s4 + $0x60] ss:$16 sps:$4 sm:$0xff]  }
 0x121   :  { %v3898_v47 = vadd.f32 %v565_v50, %v3810_v41  ;;  %v567_v44 = vpop.f32.mrb[29].mxu1  ;;  %5143 = vst [vmem:[#allocation55_spill] sm:$0xff] %v3911_v52  ;;  %v3916_v50 = vld [vmem:[%s4950_s4 + $0x68] ss:$16 sps:$4 sm:$0xff]  }
 0x122   :  { %v3901_v4 = vadd.f32 %v567_v44, %v3813_v59  ;;  %v569_v48 = vpop.f32.mrb[30].mxu1  ;;  %5144 = vst [vmem:[#allocation56_spill] sm:$0xff] %v3916_v50 }
 0x123   :  { %5140 = vst [vmem:[#allocation52_spill] sm:$0xff] %v3898_v47  ;;  %v3904_v62 = vadd.f32 %v569_v48, %v3810_v41  ;;  %v571_v5 = vpop.f32.mrb[31].mxu1  ;;  %1181 = vmatpush1.bf16.msra.mxu0 %v3878_v1  ;;  %1222 = vmatpush1.bf16.msra.mxu1 %v3883_v60  ;;  %v3926_v48 = vld [vmem:[%s4950_s4 + $0x84] ss:$16 sps:$4 sm:$0xff]   ;;  %v3943_v47 = vld [vmem:[%s4950_s4 + $0x88] ss:$16 sps:$4 sm:$0xff]  }
 0x124   :  { %5141 = vst [vmem:[#allocation53_spill] sm:$0xff] %v3901_v4  ;;  %v3919_v44 = vadd.f32 %v571_v5, %v3813_v59  ;;  %1182 = vmatprep.subr.bf16.mxu0 %v3890_v46  ;;  %1223 = vmatprep.subr.bf16.mxu1 %v3895_v51  ;;  %5146 = vst [vmem:[#allocation58_spill] sm:$0xff] %v3926_v48  ;;  %v3931_v4 = vld [vmem:[%s4950_s4 + $0x8c] ss:$16 sps:$4 sm:$0xff]   ;;  %v3938_v5 = vld [vmem:[%s4950_s4 + $0x80] ss:$16 sps:$4 sm:$0xff]  }
 0x125   :  { %5142 = vst [vmem:[#allocation54_spill] sm:$0xff] %v3904_v62  ;;  %5147 = vst [vmem:[#allocation59_spill] sm:$0xff] %v3931_v4  ;;  %v519_v62 = vadd.f32 %v518_v42, %v3711_v45 }
 0x126   :  { %5145 = vst [vmem:[#allocation57_spill] sm:$0xff] %v3919_v44  ;;  %5148 = vst [vmem:[#allocation60_spill] sm:$0xff] %v3938_v5 }
 0x127   :  { %1183 = vmatpush1.bf16.msra.mxu0 %v3911_v52  ;;  %1224 = vmatpush1.bf16.msra.mxu1 %v3916_v50  ;;  %5149 = vst [vmem:[#allocation61_spill] sm:$0xff] %v3943_v47  ;;  %v3951_v50 = vld [vmem:[%s4950_s4 + $0xa4] ss:$16 sps:$4 sm:$0xff]   ;;  %v3956_v52 = vld [vmem:[%s4950_s4 + $0xac] ss:$16 sps:$4 sm:$0xff]   ;;  %3036 = vtanh.f32 %v519_v62 }
 0x128   :  { %v575_v44 = vpop.f32.mrb[32].mxu1  ;;  %1184 = vmatprep.subr.bf16.mxu0 %v3926_v48  ;;  %1225 = vmatprep.subr.bf16.mxu1 %v3931_v4  ;;  %5150 = vst [vmem:[#allocation62_spill] sm:$0xff] %v3951_v50  ;;  %5151 = vst [vmem:[#allocation63_spill] sm:$0xff] %v3956_v52  ;;  %v517_v4 = vadd.f32 %v3807_v54, %v3708_v2  ;;  %v3989_v54 = vld [vmem:[%s4950_s4 + $0xc4] ss:$16 sps:$4 sm:$0xff]  }
 0x129   :  { %v3959_v51 = vadd.f32 %v575_v44, %v3810_v41  ;;  %v577_v46 = vpop.f32.mrb[33].mxu1  ;;  %v3974_v44 = vld [vmem:[%s4950_s4 + $0xa0] ss:$16 sps:$4 sm:$0xff]   ;;  %5158 = vst [vmem:[#allocation70_spill] sm:$0xff] %v3989_v54 }
 0x12a   :  { %v3962_v45 = vadd.f32 %v577_v46, %v3813_v59  ;;  %v579_v42 = vpop.f32.mrb[34].mxu1  ;;  %5155 = vst [vmem:[#allocation67_spill] sm:$0xff] %v3974_v44  ;;  %v3979_v46 = vld [vmem:[%s4950_s4 + $0xa8] ss:$16 sps:$4 sm:$0xff]   ;;  %3038 = vtanh.f32 %v517_v4  ;;  %v4001_v62 = vld [vmem:[%s4950_s4 + $0xc0] ss:$16 sps:$4 sm:$0xff]  }
 0x12b   :  { %5152 = vst [vmem:[#allocation64_spill] sm:$0xff] %v3959_v51  ;;  %v3967_v48 = vadd.f32 %v579_v42, %v3810_v41  ;;  %v581_v60 = vpop.f32.mrb[35].mxu1  ;;  %1185 = vmatpush1.bf16.msra.mxu0 %v3938_v5  ;;  %1226 = vmatpush1.bf16.msra.mxu1 %v3943_v47  ;;  %5156 = vst [vmem:[#allocation68_spill] sm:$0xff] %v3979_v46  ;;  %v3994_v42 = vld [vmem:[%s4950_s4 + $0xcc] ss:$16 sps:$4 sm:$0xff]  }
 0x12c   :  { %5153 = vst [vmem:[#allocation65_spill] sm:$0xff] %v3962_v45  ;;  %v3982_v2 = vadd.f32 %v581_v60, %v3813_v59  ;;  %1186 = vmatprep.subr.bf16.mxu0 %v3951_v50  ;;  %1227 = vmatprep.subr.bf16.mxu1 %v3956_v52  ;;  %5159 = vst [vmem:[#allocation71_spill] sm:$0xff] %v3994_v42  ;;  %v4006_v60 = vld [vmem:[%s4950_s4 + $0xc8] ss:$16 sps:$4 sm:$0xff]   ;;  %v4013_v4 = vld [vmem:[%s4950_s4 + $0xe4] ss:$16 sps:$4 sm:$0xff]  }
 0x12d   :  { %5154 = vst [vmem:[#allocation66_spill] sm:$0xff] %v3967_v48  ;;  %5160 = vst [vmem:[#allocation72_spill] sm:$0xff] %v4001_v62  ;;  %v4018_v51 = vld [vmem:[%s4950_s4 + $0xec] ss:$16 sps:$4 sm:$0xff]  }
 0x12e   :  { %5157 = vst [vmem:[#allocation69_spill] sm:$0xff] %v3982_v2  ;;  %5161 = vst [vmem:[#allocation73_spill] sm:$0xff] %v4006_v60 }
 0x12f   :  { %1187 = vmatpush1.bf16.msra.mxu0 %v3974_v44  ;;  %1228 = vmatpush1.bf16.msra.mxu1 %v3979_v46  ;;  %5162 = vst [vmem:[#allocation74_spill] sm:$0xff] %v4013_v4  ;;  %5163 = vst [vmem:[#allocation75_spill] sm:$0xff] %v4018_v51 }
 0x130   :  { %v585_v45 = vpop.f32.mrb[36].mxu1  ;;  %1188 = vmatprep.subr.bf16.mxu0 %v3989_v54  ;;  %1229 = vmatprep.subr.bf16.mxu1 %v3994_v42  ;;  %v4031_v42 = vld [vmem:[%s4950_s4 + $0xe0] ss:$16 sps:$4 sm:$0xff]  }
 0x131   :  { %v4021_v2 = vadd.f32 %v585_v45, %v3810_v41  ;;  %v587_v48 = vpop.f32.mrb[37].mxu1  ;;  %5166 = vst [vmem:[#allocation78_spill] sm:$0xff] %v4031_v42  ;;  %v4036_v45 = vld [vmem:[%s4950_s4 + $0xe8] ss:$16 sps:$4 sm:$0xff]  }
 0x132   :  { %v4024_v46 = vadd.f32 %v587_v48, %v3813_v59  ;;  %v589_v54 = vpop.f32.mrb[38].mxu1  ;;  %5167 = vst [vmem:[#allocation79_spill] sm:$0xff] %v4036_v45  ;;  %v3037_v48 = vpop.eup %3036 }
 0x133   :  { %5164 = vst [vmem:[#allocation76_spill] sm:$0xff] %v4021_v2  ;;  %v591_v44 = vpop.f32.mrb[39].mxu1  ;;  %1189 = vmatpush1.bf16.msra.mxu0 %v4001_v62  ;;  %1230 = vmatpush1.bf16.msra.mxu1 %v4006_v60  ;;  %v744_v62 = vmul.f32 0.5, %v3037_v48 }
 0x134   :  { %5165 = vst [vmem:[#allocation77_spill] sm:$0xff] %v4024_v46  ;;  %v592_v2 = vadd.f32 %v591_v44, %v3813_v59  ;;  %1190 = vmatprep.subr.bf16.mxu0 %v4013_v4  ;;  %1231 = vmatprep.subr.bf16.mxu1 %v4018_v51  ;;  %v3039_v60 = vpop.eup %3038  ;;  %v590_v46 = vadd.f32 %v589_v54, %v3810_v41 }
 0x135   :  { %v743_v52 = vmul.f32 0.5, %v3039_v60  ;;  %v747_v59 = vadd.f32 0.5, %v744_v62 }
 0x136   :  { %3040 = vtanh.f32 %v592_v2 }
 0x137   :  { %1191 = vmatpush1.bf16.msra.mxu0 %v4031_v42  ;;  %1232 = vmatpush1.bf16.msra.mxu1 %v4036_v45  ;;  %3042 = vtanh.f32 %v590_v46  ;;  %v746_v44 = vadd.f32 0.5, %v743_v52  ;;  %v755_v51 = vmul.f32 0.0, %v747_v59 }
 0x138   :  { %1301 = vmatprep.subr.bf16.mxu0 %v3460_v6  ;;  %1342 = vmatprep.subr.bf16.mxu1 %v3465_v7 }
 0x140   :  { %v3041_v4 = vpop.eup %3040 }
 0x141   :  { %v756_v50 = vmul.f32 %v3041_v4, %v746_v44  ;;  %v3043_v45 = vpop.eup %3042 }
 0x142   :  { %v745_v42 = vmul.f32 0.5, %v3043_v45 }
 0x143   :  { %v4046_v2 = vadd.f32 %v756_v50, %v755_v51 }
 0x144   :  { %v748_v47 = vadd.f32 0.5, %v745_v42 }
 0x145   :  { %3044 = vtanh.f32 %v4046_v2 }
 0x14f   :  { %v3045_v6 = vpop.eup %3044 }
 0x150   :  { %v759_v5 = vmul.f32 %v3045_v6, %v748_v47 }
 0x152   :  { %v1015_v7 = vpack.c.bf16 %v759_v5, %v759_v5 }
 0x154   :  { %1209 = vmatmul.mubr.bf16.vlgmr.msra.gmra.mrb[28].mxu0 %v1015_v7  ;;  %1250 = vmatmul.mubr.bf16.vlgmr.msra.gmra.mrb[44].mxu1 %v1015_v7 }
 0x155   :  { %1302 = vmatpush1.bf16.msra.mxu0 %v3471_v8  ;;  %1343 = vmatpush1.bf16.msra.mxu1 %v3476_v9 }
 0x156   :  { %1303 = vmatprep.subr.bf16.mxu0 %v3484_v10  ;;  %1344 = vmatprep.subr.bf16.mxu1 %v3489_v11 }
 0x157   :  { %1333 = vmatprep.mubr.bf16.mxu0 %v5136_v3  ;;  %1374 = vmatprep.mubr.bf16.mxu1 %v5136_v3 }
 0x159   :  { %1304 = vmatpush1.bf16.msra.mxu0 %v3494_v12  ;;  %1345 = vmatpush1.bf16.msra.mxu1 %v3499_v13 }
 0x15a   :  { %1305 = vmatprep.subr.bf16.mxu0 %v3508_v14  ;;  %1346 = vmatprep.subr.bf16.mxu1 %v3513_v15 }
 0x15d   :  { %1306 = vmatpush1.bf16.msra.mxu0 %v3518_v16  ;;  %1347 = vmatpush1.bf16.msra.mxu1 %v3523_v17 }
 0x15e   :  { %1307 = vmatprep.subr.bf16.mxu0 %v3532_v18  ;;  %1348 = vmatprep.subr.bf16.mxu1 %v3537_v19 }
 0x161   :  { %1308 = vmatpush1.bf16.msra.mxu0 %v3542_v20  ;;  %1349 = vmatpush1.bf16.msra.mxu1 %v3547_v21 }
 0x162   :  { %1309 = vmatprep.subr.bf16.mxu0 %v3556_v22  ;;  %1350 = vmatprep.subr.bf16.mxu1 %v3561_v23 }
 0x165   :  { %1310 = vmatpush1.bf16.msra.mxu0 %v3566_v24  ;;  %1351 = vmatpush1.bf16.msra.mxu1 %v3571_v25 }
 0x166   :  { %1311 = vmatprep.subr.bf16.mxu0 %v3580_v26  ;;  %1352 = vmatprep.subr.bf16.mxu1 %v3585_v27 }
 0x169   :  { %1312 = vmatpush1.bf16.msra.mxu0 %v3590_v28  ;;  %1353 = vmatpush1.bf16.msra.mxu1 %v3595_v29 }
 0x16a   :  { %1313 = vmatprep.subr.bf16.mxu0 %v3604_v30  ;;  %1354 = vmatprep.subr.bf16.mxu1 %v3609_v31 }
 0x16d   :  { %1314 = vmatpush1.bf16.msra.mxu0 %v3614_v32  ;;  %1355 = vmatpush1.bf16.msra.mxu1 %v3619_v33 }
 0x16e   :  { %1315 = vmatprep.subr.bf16.mxu0 %v3628_v34  ;;  %1356 = vmatprep.subr.bf16.mxu1 %v3633_v35 }
 0x171   :  { %1316 = vmatpush1.bf16.msra.mxu0 %v3638_v36  ;;  %1357 = vmatpush1.bf16.msra.mxu1 %v3643_v37 }
 0x172   :  { %1388 = vmatprep.subr.bf16.mxu0 %v3652_v38  ;;  %1429 = vmatprep.subr.bf16.mxu1 %v3657_v39 }
 0x1ed   :  { %v963_v6 = vpop.f32.mrb[24].mxu0  ;;  %v1004_v7 = vpop.f32.mrb[40].mxu1 }
 0x1ee   :  { %v1011_v8 = vadd.f32 %v963_v6, %v3678_v57  ;;  %v1013_v9 = vadd.f32 %v1004_v7, %v3718_v58  ;;  %v965_v10 = vpop.f32.mrb[25].mxu0  ;;  %v1006_v11 = vpop.f32.mrb[41].mxu1  ;;  %v5169_v6 = vld [vmem:[#allocation48_spill] sm:$0xff]  ;;  %v5170_v7 = vld [vmem:[#allocation49_spill] sm:$0xff] }
 0x1ef   :  { %v1012_v12 = vadd.f32 %v965_v10, %v3682_v61  ;;  %v1014_v13 = vadd.f32 %v1006_v11, %v3724_v63  ;;  %v967_v47 = vpop.f32.mrb[26].mxu0  ;;  %v1008_v51 = vpop.f32.mrb[42].mxu1  ;;  %v5173_v10 = vld [vmem:[#allocation55_spill] sm:$0xff]  ;;  %v5174_v11 = vld [vmem:[#allocation56_spill] sm:$0xff] }
 0x1f0   :  { %3046 = vtanh.f32 %v1011_v8  ;;  %v968_v41 = vpop.f32.mrb[27].mxu0  ;;  %v1009_v52 = vpop.f32.mrb[43].mxu1  ;;  %v5171_v8 = vld [vmem:[#allocation50_spill] sm:$0xff]  ;;  %v5177_v47 = vld [vmem:[#allocation60_spill] sm:$0xff]  ;;  %v5178_v51 = vld [vmem:[#allocation61_spill] sm:$0xff] }
 0x1f1   :  { %3048 = vtanh.f32 %v1012_v12  ;;  %v5175_v12 = vld [vmem:[#allocation58_spill] sm:$0xff]  ;;  %v5180_v52 = vld [vmem:[#allocation63_spill] sm:$0xff] }
 0x1f2   :  { %3050 = vtanh.f32 %v1014_v13  ;;  %v5176_v13 = vld [vmem:[#allocation59_spill] sm:$0xff]  ;;  %v5179_v41 = vld [vmem:[#allocation62_spill] sm:$0xff] }
 0x1f3   :  { %3052 = vtanh.f32 %v1013_v9  ;;  %v5172_v9 = vld [vmem:[#allocation51_spill] sm:$0xff] }
 0x1fa   :  { %v3047_v50 = vpop.eup %3046 }
 0x1fb   :  { %v1265_v5 = vmul.f32 0.5, %v3047_v50  ;;  %v3049_v46 = vpop.eup %3048 }
 0x1fc   :  { %v1266_v57 = vmul.f32 0.5, %v3049_v46  ;;  %v3051_v58 = vpop.eup %3050  ;;  %v5181_v46 = vld [vmem:[#allocation40_spill] sm:$0xff] }
 0x1fd   :  { %v1268_v54 = vadd.f32 0.5, %v1265_v5  ;;  %v3053_v63 = vpop.eup %3052 }
 0x1fe   :  { %v1269_v42 = vadd.f32 0.5, %v1266_v57  ;;  %v1267_v4 = vmul.f32 0.5, %v3053_v63  ;;  %v5182_v57 = vld [vmem:[#allocation76_spill] sm:$0xff] }
 0x1ff   :  { %v1283_v62 = vmul.f32 %v3051_v58, %v1268_v54 }
 0x200   :  { %v1282_v61 = vmul.f32 %v1269_v42, %v3760_v40  ;;  %v1270_v45 = vadd.f32 0.5, %v1267_v4  ;;  %v5168_v40 = vld [vmem:[#allocation47_spill] sm:$0xff]  ;;  %v5184_v4 = vld [vmem:[#allocation77_spill] sm:$0xff] }
 0x202   :  { %v4088_v60 = vadd.f32 %v1283_v62, %v1282_v61  ;;  %v5183_v61 = vld [vmem:[#allocation42_spill] sm:$0xff] }
 0x204   :  { %3054 = vtanh.f32 %v4088_v60 }
 0x20e   :  { %v3055_v48 = vpop.eup %3054 }
 0x20f   :  { %v1286_v59 = vmul.f32 %v3055_v48, %v1270_v45 }
 0x211   :  { %v1300_v44 = vpack.c.bf16 %v1286_v59, %v1286_v59 }
 0x213   :  { %1334 = vmatmul.mubr.bf16.vlgmr.msra.gmra.mrb[32].mxu0 %v1300_v44  ;;  %1375 = vmatmul.mubr.bf16.vlgmr.msra.gmra.mrb[48].mxu1 %v1300_v44  ;;  %v5185_v44 = vld [vmem:[#allocation67_spill] sm:$0xff] }
 0x214   :  { %1389 = vmatpush1.bf16.msra.mxu0 %v3818_v49  ;;  %1430 = vmatpush1.bf16.msra.mxu1 %v3823_v53 }
 0x215   :  { %1390 = vmatprep.subr.bf16.mxu0 %v3828_v56  ;;  %1431 = vmatprep.subr.bf16.mxu1 %v3833_v43 }
 0x216   :  { %1420 = vmatprep.mubr.bf16.mxu0 %v5136_v3  ;;  %1461 = vmatprep.mubr.bf16.mxu1 %v5136_v3 }
 0x218   :  { %1391 = vmatpush1.bf16.msra.mxu0 %v3849_v0  ;;  %1432 = vmatpush1.bf16.msra.mxu1 %v3854_v55 }
 0x219   :  { %1392 = vmatprep.subr.bf16.mxu0 %v5168_v40  ;;  %1433 = vmatprep.subr.bf16.mxu1 %v5169_v6 }
 0x21c   :  { %1393 = vmatpush1.bf16.msra.mxu0 %v3878_v1  ;;  %1434 = vmatpush1.bf16.msra.mxu1 %v5170_v7 }
 0x21d   :  { %1394 = vmatprep.subr.bf16.mxu0 %v5171_v8  ;;  %1435 = vmatprep.subr.bf16.mxu1 %v5172_v9 }
 0x220   :  { %1395 = vmatpush1.bf16.msra.mxu0 %v5173_v10  ;;  %1436 = vmatpush1.bf16.msra.mxu1 %v5174_v11 }
 0x221   :  { %1396 = vmatprep.subr.bf16.mxu0 %v5175_v12  ;;  %1437 = vmatprep.subr.bf16.mxu1 %v5176_v13 }
 0x224   :  { %1397 = vmatpush1.bf16.msra.mxu0 %v5177_v47  ;;  %1438 = vmatpush1.bf16.msra.mxu1 %v5178_v51  ;;  %v5186_v51 = vld [vmem:[#allocation68_spill] sm:$0xff]  ;;  %v5187_v47 = vld [vmem:[#allocation70_spill] sm:$0xff] }
 0x225   :  { %1398 = vmatprep.subr.bf16.mxu0 %v5179_v41  ;;  %1439 = vmatprep.subr.bf16.mxu1 %v5180_v52 }
 0x227   :  { %v1210_v50 = vpop.f32.mrb[28].mxu0  ;;  %v1251_v5 = vpop.f32.mrb[44].mxu1 }
 0x228   :  { %v1258_v54 = vadd.f32 %v1210_v50, %v5181_v46  ;;  %v1260_v58 = vadd.f32 %v1251_v5, %v5182_v57  ;;  %v1212_v42 = vpop.f32.mrb[29].mxu0  ;;  %v1253_v62 = vpop.f32.mrb[45].mxu1  ;;  %1399 = vmatpush1.bf16.msra.mxu0 %v5185_v44  ;;  %1440 = vmatpush1.bf16.msra.mxu1 %v5186_v51  ;;  %v5188_v50 = vld [vmem:[#allocation71_spill] sm:$0xff]  ;;  %v5189_v5 = vld [vmem:[#allocation72_spill] sm:$0xff]  ;;  %v5190_v46 = vld [vmem:[#allocation73_spill] sm:$0xff] }
 0x229   :  { %v1259_v63 = vadd.f32 %v1212_v42, %v5183_v61  ;;  %v1261_v45 = vadd.f32 %v1253_v62, %v5184_v4  ;;  %v1214_v48 = vpop.f32.mrb[30].mxu0  ;;  %v1255_v59 = vpop.f32.mrb[46].mxu1  ;;  %1400 = vmatprep.subr.bf16.mxu0 %v5187_v47  ;;  %1441 = vmatprep.subr.bf16.mxu1 %v5188_v50  ;;  %v5191_v57 = vld [vmem:[#allocation74_spill] sm:$0xff]  ;;  %v5192_v42 = vld [vmem:[#allocation75_spill] sm:$0xff] }
 0x22a   :  { %3056 = vtanh.f32 %v1258_v54  ;;  %v1215_v52 = vpop.f32.mrb[31].mxu0  ;;  %v1256_v41 = vpop.f32.mrb[47].mxu1  ;;  %v5193_v62 = vld [vmem:[#allocation78_spill] sm:$0xff]  ;;  %v5194_v61 = vld [vmem:[#allocation79_spill] sm:$0xff] }
 0x22b   :  { %3058 = vtanh.f32 %v1259_v63  ;;  %v5195_v52 = vld [vmem:[#allocation3_spill] sm:$0xff]  ;;  %v5196_v41 = vld [vmem:[#allocation4_spill] sm:$0xff] }
 0x22c   :  { %1401 = vmatpush1.bf16.msra.mxu0 %v5189_v5  ;;  %1442 = vmatpush1.bf16.msra.mxu1 %v5190_v46  ;;  %3060 = vtanh.f32 %v1261_v45 }
 0x22d   :  { %1402 = vmatprep.subr.bf16.mxu0 %v5191_v57  ;;  %1443 = vmatprep.subr.bf16.mxu1 %v5192_v42  ;;  %3062 = vtanh.f32 %v1260_v58  ;;  %v4136_v58 = vld [vmem:[%s4949_s3] ss:$16 sps:$4 sm:$0xff]  }
 0x230   :  { %1403 = vmatpush1.bf16.msra.mxu0 %v5193_v62  ;;  %1444 = vmatpush1.bf16.msra.mxu1 %v5194_v61 }
 0x231   :  { %1513 = vmatprep.subr.bf16.mxu0 %v5195_v52  ;;  %1554 = vmatprep.subr.bf16.mxu1 %v5196_v41 }
 0x234   :  { %v3057_v54 = vpop.eup %3056 }
 0x235   :  { %v1275_v4 = vmul.f32 0.5, %v3057_v54  ;;  %v3059_v63 = vpop.eup %3058 }
 0x236   :  { %v1276_v59 = vmul.f32 0.5, %v3059_v63  ;;  %v3061_v46 = vpop.eup %3060 }
 0x237   :  { %v1278_v48 = vadd.f32 0.5, %v1275_v4  ;;  %v3063_v61 = vpop.eup %3062 }
 0x238   :  { %v1279_v45 = vadd.f32 0.5, %v1276_v59  ;;  %v1277_v62 = vmul.f32 0.5, %v3063_v61  ;;  %v5203_v59 = vld [vmem:[#allocation62_spill] sm:$0xff] }
 0x239   :  { %v1288_v5 = vmul.f32 %v3061_v46, %v1278_v48  ;;  %v4168_v46 = vld [vmem:[%s4949_s3 + $0x28] ss:$16 sps:$4 sm:$0xff]   ;;  %v5202_v48 = vld [vmem:[#allocation61_spill] sm:$0xff] }
 0x23a   :  { %v1287_v57 = vmul.f32 %v1279_v45, %v4046_v2  ;;  %v1280_v52 = vadd.f32 0.5, %v1277_v62  ;;  %v4142_v2 = vld [vmem:[%s4949_s3 + $0x8] ss:$16 sps:$4 sm:$0xff]   ;;  %v5204_v45 = vld [vmem:[#allocation63_spill] sm:$0xff] }
 0x23c   :  { %v4130_v42 = vadd.f32 %v1288_v5, %v1287_v57  ;;  %v4162_v5 = vld [vmem:[%s4949_s3 + $0x20] ss:$16 sps:$4 sm:$0xff]  }
 0x23e   :  { %3064 = vtanh.f32 %v4130_v42 }
 0x248   :  { %v3065_v50 = vpop.eup %3064 }
 0x249   :  { %v1291_v41 = vmul.f32 %v3065_v50, %v1280_v52  ;;  %v4148_v50 = vld [vmem:[%s4949_s3 + $0x24] ss:$16 sps:$4 sm:$0xff]  }
 0x24b   :  { %v1387_v47 = vpack.c.bf16 %v1291_v41, %v1291_v41 }
 0x24d   :  { %1421 = vmatmul.mubr.bf16.vlgmr.msra.gmra.mrb[36].mxu0 %v1387_v47  ;;  %1462 = vmatmul.mubr.bf16.vlgmr.msra.gmra.mrb[52].mxu1 %v1387_v47  ;;  %v4154_v47 = vld [vmem:[%s4949_s3 + $0x2c] ss:$16 sps:$4 sm:$0xff]  }
 0x24e   :  { %1514 = vmatpush1.bf16.msra.mxu0 %v4136_v58  ;;  %1555 = vmatpush1.bf16.msra.mxu1 %v4142_v2 }
 0x24f   :  { %1515 = vmatprep.subr.bf16.mxu0 %v4148_v50  ;;  %1556 = vmatprep.subr.bf16.mxu1 %v4154_v47 }
 0x250   :  { %1545 = vmatprep.mubr.bf16.mxu0 %v5136_v3  ;;  %1586 = vmatprep.mubr.bf16.mxu1 %v5136_v3 }
 0x252   :  { %1516 = vmatpush1.bf16.msra.mxu0 %v4162_v5  ;;  %1557 = vmatpush1.bf16.msra.mxu1 %v4168_v46 }
 0x253   :  { %1517 = vmatprep.subr.bf16.mxu0 %v3508_v14  ;;  %1558 = vmatprep.subr.bf16.mxu1 %v3513_v15 }
 0x256   :  { %1518 = vmatpush1.bf16.msra.mxu0 %v3518_v16  ;;  %1559 = vmatpush1.bf16.msra.mxu1 %v3523_v17  ;;  %v5197_v16 = vld [vmem:[#allocation10_spill] sm:$0xff] }
 0x257   :  { %1519 = vmatprep.subr.bf16.mxu0 %v3532_v18  ;;  %1560 = vmatprep.subr.bf16.mxu1 %v3537_v19  ;;  %v5198_v18 = vld [vmem:[#allocation21_spill] sm:$0xff] }
 0x25a   :  { %1520 = vmatpush1.bf16.msra.mxu0 %v3542_v20  ;;  %1561 = vmatpush1.bf16.msra.mxu1 %v3547_v21 }
 0x25b   :  { %1521 = vmatprep.subr.bf16.mxu0 %v3556_v22  ;;  %1562 = vmatprep.subr.bf16.mxu1 %v3561_v23  ;;  %v5199_v22 = vld [vmem:[#allocation12_spill] sm:$0xff] }
 0x25e   :  { %1522 = vmatpush1.bf16.msra.mxu0 %v3566_v24  ;;  %1563 = vmatpush1.bf16.msra.mxu1 %v3571_v25  ;;  %v5200_v24 = vld [vmem:[#allocation22_spill] sm:$0xff] }
 0x25f   :  { %1523 = vmatprep.subr.bf16.mxu0 %v3580_v26  ;;  %1564 = vmatprep.subr.bf16.mxu1 %v3585_v27 }
 0x262   :  { %1524 = vmatpush1.bf16.msra.mxu0 %v3590_v28  ;;  %1565 = vmatpush1.bf16.msra.mxu1 %v3595_v29 }
 0x263   :  { %1525 = vmatprep.subr.bf16.mxu0 %v3604_v30  ;;  %1566 = vmatprep.subr.bf16.mxu1 %v3609_v31 }
 0x266   :  { %1526 = vmatpush1.bf16.msra.mxu0 %v3614_v32  ;;  %1567 = vmatpush1.bf16.msra.mxu1 %v3619_v33 }
 0x267   :  { %1527 = vmatprep.subr.bf16.mxu0 %v3628_v34  ;;  %1568 = vmatprep.subr.bf16.mxu1 %v3633_v35 }
 0x26a   :  { %1528 = vmatpush1.bf16.msra.mxu0 %v3638_v36  ;;  %1569 = vmatpush1.bf16.msra.mxu1 %v3643_v37 }
 0x26b   :  { %1600 = vmatprep.subr.bf16.mxu0 %v3652_v38  ;;  %1641 = vmatprep.subr.bf16.mxu1 %v3657_v39 }
 0x2e6   :  { %v1335_v14 = vpop.f32.mrb[32].mxu0  ;;  %v1376_v15 = vpop.f32.mrb[48].mxu1 }
 0x2e7   :  { %v1383_v17 = vadd.f32 %v1335_v14, %v5197_v16  ;;  %v1385_v19 = vadd.f32 %v1376_v15, %v5198_v18  ;;  %v1337_v20 = vpop.f32.mrb[33].mxu0  ;;  %v1378_v21 = vpop.f32.mrb[49].mxu1  ;;  %v5205_v14 = vld [vmem:[#allocation35_spill] sm:$0xff]  ;;  %v5206_v16 = vld [vmem:[#allocation66_spill] sm:$0xff] }
 0x2e8   :  { %v1384_v23 = vadd.f32 %v1337_v20, %v5199_v22  ;;  %v1386_v25 = vadd.f32 %v1378_v21, %v5200_v24  ;;  %v1339_v26 = vpop.f32.mrb[34].mxu0  ;;  %v1380_v27 = vpop.f32.mrb[50].mxu1  ;;  %v5207_v20 = vld [vmem:[#allocation36_spill] sm:$0xff]  ;;  %v5208_v22 = vld [vmem:[#allocation69_spill] sm:$0xff] }
 0x2e9   :  { %3066 = vtanh.f32 %v1383_v17  ;;  %v1340_v28 = vpop.f32.mrb[35].mxu0  ;;  %v1381_v29 = vpop.f32.mrb[51].mxu1 }
 0x2ea   :  { %3068 = vtanh.f32 %v1384_v23  ;;  %v5209_v28 = vld [vmem:[#allocation70_spill] sm:$0xff]  ;;  %v5210_v29 = vld [vmem:[#allocation71_spill] sm:$0xff] }
 0x2eb   :  { %3070 = vtanh.f32 %v1386_v25 }
 0x2ec   :  { %3072 = vtanh.f32 %v1385_v19 }
 0x2f3   :  { %v3067_v30 = vpop.eup %3066 }
 0x2f4   :  { %v1477_v31 = vmul.f32 0.5, %v3067_v30  ;;  %v3069_v32 = vpop.eup %3068  ;;  %v5211_v30 = vld [vmem:[#allocation72_spill] sm:$0xff] }
 0x2f5   :  { %v1478_v34 = vmul.f32 0.5, %v3069_v32  ;;  %v3071_v35 = vpop.eup %3070  ;;  %v5213_v32 = vld [vmem:[#allocation74_spill] sm:$0xff] }
 0x2f6   :  { %v1480_v33 = vadd.f32 0.5, %v1477_v31  ;;  %v3073_v57 = vpop.eup %3072  ;;  %v5212_v31 = vld [vmem:[#allocation73_spill] sm:$0xff] }
 0x2f7   :  { %v1481_v36 = vadd.f32 0.5, %v1478_v34  ;;  %v1479_v62 = vmul.f32 0.5, %v3073_v57  ;;  %v5215_v34 = vld [vmem:[#allocation78_spill] sm:$0xff] }
 0x2f8   :  { %v1495_v37 = vmul.f32 %v3071_v35, %v1480_v33  ;;  %v5214_v33 = vld [vmem:[#allocation75_spill] sm:$0xff] }
 0x2f9   :  { %v1494_v38 = vmul.f32 %v1481_v36, %v4088_v60  ;;  %v1482_v61 = vadd.f32 0.5, %v1479_v62  ;;  %v5201_v60 = vld [vmem:[#allocation60_spill] sm:$0xff]  ;;  %v5216_v35 = vld [vmem:[#allocation79_spill] sm:$0xff] }
 0x2fa   :  { %v4244_v36 = vld [vmem:[%s4949_s3 + $0x4] ss:$16 sps:$4 sm:$0xff]  }
 0x2fb   :  { %v4202_v39 = vadd.f32 %v1495_v37, %v1494_v38  ;;  %5217 = vst [vmem:[#allocation47_spill] sm:$0xff] %v4244_v36  ;;  %v4250_v37 = vld [vmem:[%s4949_s3 + $0xc] ss:$16 sps:$4 sm:$0xff]  }
 0x2fc   :  { %5218 = vst [vmem:[#allocation48_spill] sm:$0xff] %v4250_v37 }
 0x2fd   :  { %3074 = vtanh.f32 %v4202_v39 }
 0x307   :  { %v3075_v54 = vpop.eup %3074 }
 0x308   :  { %v1498_v4 = vmul.f32 %v3075_v54, %v1482_v61 }
 0x30a   :  { %v1512_v63 = vpack.c.bf16 %v1498_v4, %v1498_v4 }
 0x30c   :  { %1546 = vmatmul.mubr.bf16.vlgmr.msra.gmra.mrb[40].mxu0 %v1512_v63  ;;  %1587 = vmatmul.mubr.bf16.vlgmr.msra.gmra.mrb[56].mxu1 %v1512_v63 }
 0x30d   :  { %1601 = vmatpush1.bf16.msra.mxu0 %v3818_v49  ;;  %1642 = vmatpush1.bf16.msra.mxu1 %v3823_v53 }
 0x30e   :  { %1602 = vmatprep.subr.bf16.mxu0 %v3828_v56  ;;  %1643 = vmatprep.subr.bf16.mxu1 %v3833_v43 }
 0x30f   :  { %1632 = vmatprep.mubr.bf16.mxu0 %v5136_v3  ;;  %1673 = vmatprep.mubr.bf16.mxu1 %v5136_v3 }
 0x311   :  { %1603 = vmatpush1.bf16.msra.mxu0 %v3849_v0  ;;  %1644 = vmatpush1.bf16.msra.mxu1 %v3854_v55 }
 0x312   :  { %1604 = vmatprep.subr.bf16.mxu0 %v5168_v40  ;;  %1645 = vmatprep.subr.bf16.mxu1 %v5169_v6 }
 0x315   :  { %1605 = vmatpush1.bf16.msra.mxu0 %v3878_v1  ;;  %1646 = vmatpush1.bf16.msra.mxu1 %v5170_v7 }
 0x316   :  { %1606 = vmatprep.subr.bf16.mxu0 %v5171_v8  ;;  %1647 = vmatprep.subr.bf16.mxu1 %v5172_v9 }
 0x319   :  { %1607 = vmatpush1.bf16.msra.mxu0 %v5173_v10  ;;  %1648 = vmatpush1.bf16.msra.mxu1 %v5174_v11 }
 0x31a   :  { %1608 = vmatprep.subr.bf16.mxu0 %v5175_v12  ;;  %1649 = vmatprep.subr.bf16.mxu1 %v5176_v13 }
 0x31d   :  { %1609 = vmatpush1.bf16.msra.mxu0 %v5201_v60  ;;  %1650 = vmatpush1.bf16.msra.mxu1 %v5202_v48 }
 0x31e   :  { %1610 = vmatprep.subr.bf16.mxu0 %v5203_v59  ;;  %1651 = vmatprep.subr.bf16.mxu1 %v5204_v45 }
 0x320   :  { %v1422_v52 = vpop.f32.mrb[36].mxu0  ;;  %v1463_v41 = vpop.f32.mrb[52].mxu1 }
 0x321   :  { %v1470_v15 = vadd.f32 %v1422_v52, %v5205_v14  ;;  %v1472_v17 = vadd.f32 %v1463_v41, %v5206_v16  ;;  %v1424_v18 = vpop.f32.mrb[37].mxu0  ;;  %v1465_v19 = vpop.f32.mrb[53].mxu1  ;;  %1611 = vmatpush1.bf16.msra.mxu0 %v5185_v44  ;;  %1652 = vmatpush1.bf16.msra.mxu1 %v5186_v51 }
 0x322   :  { %v1471_v21 = vadd.f32 %v1424_v18, %v5207_v20  ;;  %v1473_v23 = vadd.f32 %v1465_v19, %v5208_v22  ;;  %v1426_v24 = vpop.f32.mrb[38].mxu0  ;;  %v1467_v25 = vpop.f32.mrb[54].mxu1  ;;  %1612 = vmatprep.subr.bf16.mxu0 %v5209_v28  ;;  %1653 = vmatprep.subr.bf16.mxu1 %v5210_v29  ;;  %v4280_v22 = vld [vmem:[%s4949_s3 + $0x40] ss:$16 sps:$4 sm:$0xff]  }
 0x323   :  { %3076 = vtanh.f32 %v1470_v15  ;;  %v1427_v26 = vpop.f32.mrb[39].mxu0  ;;  %v1468_v27 = vpop.f32.mrb[55].mxu1  ;;  %v4292_v24 = vld [vmem:[%s4949_s3 + $0x64] ss:$16 sps:$4 sm:$0xff]   ;;  %v4298_v25 = vld [vmem:[%s4949_s3 + $0x6c] ss:$16 sps:$4 sm:$0xff]  }
 0x324   :  { %3078 = vtanh.f32 %v1471_v21  ;;  %5220 = vst [vmem:[#allocation50_spill] sm:$0xff] %v4292_v24  ;;  %5221 = vst [vmem:[#allocation51_spill] sm:$0xff] %v4298_v25  ;;  %v4304_v26 = vld [vmem:[%s4949_s3 + $0x60] ss:$16 sps:$4 sm:$0xff]   ;;  %v4310_v27 = vld [vmem:[%s4949_s3 + $0x68] ss:$16 sps:$4 sm:$0xff]  }
 0x325   :  { %1613 = vmatpush1.bf16.msra.mxu0 %v5211_v30  ;;  %1654 = vmatpush1.bf16.msra.mxu1 %v5212_v31  ;;  %3080 = vtanh.f32 %v1473_v23  ;;  %v4286_v23 = vld [vmem:[%s4949_s3 + $0x48] ss:$16 sps:$4 sm:$0xff]   ;;  %5222 = vst [vmem:[#allocation55_spill] sm:$0xff] %v4304_v26  ;;  %5223 = vst [vmem:[#allocation56_spill] sm:$0xff] %v4310_v27 }
 0x326   :  { %1614 = vmatprep.subr.bf16.mxu0 %v5213_v32  ;;  %1655 = vmatprep.subr.bf16.mxu1 %v5214_v33  ;;  %3082 = vtanh.f32 %v1472_v17  ;;  %v4274_v17 = vld [vmem:[%s4949_s3 + $0x4c] ss:$16 sps:$4 sm:$0xff]   ;;  %5219 = vst [vmem:[#allocation49_spill] sm:$0xff] %v4286_v23 }
 0x329   :  { %1615 = vmatpush1.bf16.msra.mxu0 %v5215_v34  ;;  %1656 = vmatpush1.bf16.msra.mxu1 %v5216_v35 }
 0x32a   :  { %1725 = vmatprep.subr.bf16.mxu0 %v4244_v36  ;;  %1766 = vmatprep.subr.bf16.mxu1 %v4250_v37 }
 0x32d   :  { %v3077_v38 = vpop.eup %3076 }
 0x32e   :  { %v1487_v57 = vmul.f32 0.5, %v3077_v38  ;;  %v3079_v62 = vpop.eup %3078  ;;  %v4316_v38 = vld [vmem:[%s4949_s3 + $0x84] ss:$16 sps:$4 sm:$0xff]  }
 0x32f   :  { %v1488_v54 = vmul.f32 0.5, %v3079_v62  ;;  %v3081_v4 = vpop.eup %3080  ;;  %5224 = vst [vmem:[#allocation58_spill] sm:$0xff] %v4316_v38  ;;  %v4328_v62 = vld [vmem:[%s4949_s3 + $0x80] ss:$16 sps:$4 sm:$0xff]  }
 0x330   :  { %v1490_v61 = vadd.f32 0.5, %v1487_v57  ;;  %v3083_v15 = vpop.eup %3082  ;;  %v4322_v57 = vld [vmem:[%s4949_s3 + $0x8c] ss:$16 sps:$4 sm:$0xff]   ;;  %5226 = vst [vmem:[#allocation40_spill] sm:$0xff] %v4328_v62 }
 0x331   :  { %v1491_v63 = vadd.f32 0.5, %v1488_v54  ;;  %v1489_v16 = vmul.f32 0.5, %v3083_v15  ;;  %5225 = vst [vmem:[#allocation59_spill] sm:$0xff] %v4322_v57  ;;  %v4340_v54 = vld [vmem:[%s4949_s3 + $0xa4] ss:$16 sps:$4 sm:$0xff]  }
 0x332   :  { %v1500_v52 = vmul.f32 %v3081_v4, %v1490_v61  ;;  %v4334_v61 = vld [vmem:[%s4949_s3 + $0x88] ss:$16 sps:$4 sm:$0xff]   ;;  %5228 = vst [vmem:[#allocation42_spill] sm:$0xff] %v4340_v54  ;;  %v4346_v4 = vld [vmem:[%s4949_s3 + $0xac] ss:$16 sps:$4 sm:$0xff]  }
 0x333   :  { %v1499_v41 = vmul.f32 %v1491_v63, %v4130_v42  ;;  %v1492_v18 = vadd.f32 0.5, %v1489_v16  ;;  %v4268_v42 = vld [vmem:[%s4949_s3 + $0x44] ss:$16 sps:$4 sm:$0xff]   ;;  %5227 = vst [vmem:[#allocation76_spill] sm:$0xff] %v4334_v61  ;;  %5229 = vst [vmem:[#allocation77_spill] sm:$0xff] %v4346_v4 }
 0x334   :  { %v4352_v63 = vld [vmem:[%s4949_s3 + $0xa0] ss:$16 sps:$4 sm:$0xff]   ;;  %v4370_v15 = vld [vmem:[%s4949_s3 + $0xcc] ss:$16 sps:$4 sm:$0xff]  }
 0x335   :  { %v4254_v14 = vadd.f32 %v1500_v52, %v1499_v41  ;;  %5230 = vst [vmem:[#allocation67_spill] sm:$0xff] %v4352_v63  ;;  %v4358_v52 = vld [vmem:[%s4949_s3 + $0xa8] ss:$16 sps:$4 sm:$0xff]   ;;  %v4364_v41 = vld [vmem:[%s4949_s3 + $0xc4] ss:$16 sps:$4 sm:$0xff]   ;;  %5233 = vst [vmem:[#allocation4_spill] sm:$0xff] %v4370_v15 }
 0x336   :  { %5231 = vst [vmem:[#allocation68_spill] sm:$0xff] %v4358_v52  ;;  %5232 = vst [vmem:[#allocation3_spill] sm:$0xff] %v4364_v41  ;;  %v4376_v16 = vld [vmem:[%s4949_s3 + $0xc0] ss:$16 sps:$4 sm:$0xff]  }
 0x337   :  { %3084 = vtanh.f32 %v4254_v14  ;;  %5234 = vst [vmem:[#allocation10_spill] sm:$0xff] %v4376_v16 }
 0x341   :  { %v3085_v19 = vpop.eup %3084 }
 0x342   :  { %v1503_v20 = vmul.f32 %v3085_v19, %v1492_v18  ;;  %v4382_v18 = vld [vmem:[%s4949_s3 + $0xc8] ss:$16 sps:$4 sm:$0xff]   ;;  %v4388_v19 = vld [vmem:[%s4949_s3 + $0xe4] ss:$16 sps:$4 sm:$0xff]  }
 0x343   :  { %5235 = vst [vmem:[#allocation21_spill] sm:$0xff] %v4382_v18  ;;  %5236 = vst [vmem:[#allocation12_spill] sm:$0xff] %v4388_v19 }
 0x344   :  { %v1599_v21 = vpack.c.bf16 %v1503_v20, %v1503_v20  ;;  %v4394_v20 = vld [vmem:[%s4949_s3 + $0xec] ss:$16 sps:$4 sm:$0xff]  }
 0x345   :  { %5237 = vst [vmem:[#allocation22_spill] sm:$0xff] %v4394_v20 }
 0x346   :  { %1633 = vmatmul.mubr.bf16.vlgmr.msra.gmra.mrb[44].mxu0 %v1599_v21  ;;  %1674 = vmatmul.mubr.bf16.vlgmr.msra.gmra.mrb[60].mxu1 %v1599_v21  ;;  %v4400_v21 = vld [vmem:[%s4949_s3 + $0xe0] ss:$16 sps:$4 sm:$0xff]  }
 0x347   :  { %1726 = vmatpush1.bf16.msra.mxu0 %v4136_v58  ;;  %1767 = vmatpush1.bf16.msra.mxu1 %v4142_v2  ;;  %5238 = vst [vmem:[#allocation60_spill] sm:$0xff] %v4400_v21 }
 0x348   :  { %1727 = vmatprep.subr.bf16.mxu0 %v4148_v50  ;;  %1768 = vmatprep.subr.bf16.mxu1 %v4154_v47 }
 0x349   :  { %1757 = vmatprep.mubr.bf16.mxu0 %v5136_v3  ;;  %1798 = vmatprep.mubr.bf16.mxu1 %v5136_v3 }
 0x34b   :  { %1728 = vmatpush1.bf16.msra.mxu0 %v4162_v5  ;;  %1769 = vmatpush1.bf16.msra.mxu1 %v4168_v46 }
 0x34c   :  { %1729 = vmatprep.subr.bf16.mxu0 %v4268_v42  ;;  %1770 = vmatprep.subr.bf16.mxu1 %v4274_v17 }
 0x34f   :  { %1730 = vmatpush1.bf16.msra.mxu0 %v4280_v22  ;;  %1771 = vmatpush1.bf16.msra.mxu1 %v4286_v23 }
 0x350   :  { %1731 = vmatprep.subr.bf16.mxu0 %v4292_v24  ;;  %1772 = vmatprep.subr.bf16.mxu1 %v4298_v25 }
 0x353   :  { %1732 = vmatpush1.bf16.msra.mxu0 %v4304_v26  ;;  %1773 = vmatpush1.bf16.msra.mxu1 %v4310_v27 }
 0x354   :  { %1733 = vmatprep.subr.bf16.mxu0 %v4316_v38  ;;  %1774 = vmatprep.subr.bf16.mxu1 %v4322_v57 }
 0x357   :  { %1734 = vmatpush1.bf16.msra.mxu0 %v4328_v62  ;;  %1775 = vmatpush1.bf16.msra.mxu1 %v4334_v61  ;;  %v5245_v62 = vld [vmem:[#allocation25_spill] sm:$0xff] }
 0x358   :  { %1735 = vmatprep.subr.bf16.mxu0 %v4340_v54  ;;  %1776 = vmatprep.subr.bf16.mxu1 %v4346_v4  ;;  %v5244_v54 = vld [vmem:[#allocation16_spill] sm:$0xff] }
 0x35b   :  { %1736 = vmatpush1.bf16.msra.mxu0 %v4352_v63  ;;  %1777 = vmatpush1.bf16.msra.mxu1 %v4358_v52  ;;  %v5243_v52 = vld [vmem:[#allocation23_spill] sm:$0xff] }
 0x35c   :  { %1737 = vmatprep.subr.bf16.mxu0 %v4364_v41  ;;  %1778 = vmatprep.subr.bf16.mxu1 %v4370_v15  ;;  %v5242_v15 = vld [vmem:[#allocation14_spill] sm:$0xff] }
 0x35f   :  { %1738 = vmatpush1.bf16.msra.mxu0 %v4376_v16  ;;  %1779 = vmatpush1.bf16.msra.mxu1 %v4382_v18  ;;  %v4406_v18 = vld [vmem:[%s4949_s3 + $0xe8] ss:$16 sps:$4 sm:$0xff]  }
 0x360   :  { %1739 = vmatprep.subr.bf16.mxu0 %v4388_v19  ;;  %1780 = vmatprep.subr.bf16.mxu1 %v4394_v20  ;;  %5239 = vst [vmem:[#allocation61_spill] sm:$0xff] %v4406_v18  ;;  %v4412_v19 = vld [vmem:[%s4950_s4 + $0x4] ss:$16 sps:$4 sm:$0xff]   ;;  %v4418_v20 = vld [vmem:[%s4950_s4 + $0xc] ss:$16 sps:$4 sm:$0xff]  }
 0x361   :  { %5240 = vst [vmem:[#allocation62_spill] sm:$0xff] %v4412_v19  ;;  %5241 = vst [vmem:[#allocation63_spill] sm:$0xff] %v4418_v20 }
 0x363   :  { %1740 = vmatpush1.bf16.msra.mxu0 %v4400_v21  ;;  %1781 = vmatpush1.bf16.msra.mxu1 %v4406_v18 }
 0x364   :  { %1812 = vmatprep.subr.bf16.mxu0 %v4412_v19  ;;  %1853 = vmatprep.subr.bf16.mxu1 %v4418_v20 }
 0x3df   :  { %v1547_v21 = vpop.f32.mrb[40].mxu0  ;;  %v1588_v16 = vpop.f32.mrb[56].mxu1 }
 0x3e0   :  { %v1595_v41 = vadd.f32 %v1547_v21, %v5242_v15  ;;  %v1597_v18 = vadd.f32 %v1588_v16, %v5243_v52  ;;  %v1549_v63 = vpop.f32.mrb[41].mxu0  ;;  %v1590_v4 = vpop.f32.mrb[57].mxu1 }
 0x3e1   :  { %v1596_v61 = vadd.f32 %v1549_v63, %v5244_v54  ;;  %v1598_v57 = vadd.f32 %v1590_v4, %v5245_v62  ;;  %v1551_v19 = vpop.f32.mrb[42].mxu0  ;;  %v1592_v38 = vpop.f32.mrb[58].mxu1  ;;  %v5253_v4 = vld [vmem:[#allocation55_spill] sm:$0xff] }
 0x3e2   :  { %3086 = vtanh.f32 %v1595_v41  ;;  %v1552_v27 = vpop.f32.mrb[43].mxu0  ;;  %v1593_v26 = vpop.f32.mrb[59].mxu1  ;;  %v5254_v41 = vld [vmem:[#allocation56_spill] sm:$0xff]  ;;  %v5256_v19 = vld [vmem:[#allocation59_spill] sm:$0xff] }
 0x3e3   :  { %3088 = vtanh.f32 %v1596_v61 }
 0x3e4   :  { %3090 = vtanh.f32 %v1598_v57 }
 0x3e5   :  { %3092 = vtanh.f32 %v1597_v18  ;;  %v5255_v18 = vld [vmem:[#allocation58_spill] sm:$0xff] }
 0x3ec   :  { %v3087_v20 = vpop.eup %3086 }
 0x3ed   :  { %v1689_v25 = vmul.f32 0.5, %v3087_v20  ;;  %v3089_v24 = vpop.eup %3088  ;;  %v5257_v20 = vld [vmem:[#allocation40_spill] sm:$0xff] }
 0x3ee   :  { %v1690_v15 = vmul.f32 0.5, %v3089_v24  ;;  %v3091_v52 = vpop.eup %3090  ;;  %v5251_v24 = vld [vmem:[#allocation50_spill] sm:$0xff] }
 0x3ef   :  { %v1692_v23 = vadd.f32 0.5, %v1689_v25  ;;  %v3093_v38 = vpop.eup %3092  ;;  %v5252_v25 = vld [vmem:[#allocation51_spill] sm:$0xff] }
 0x3f0   :  { %v1693_v16 = vadd.f32 0.5, %v1690_v15  ;;  %v1691_v27 = vmul.f32 0.5, %v3093_v38  ;;  %v5258_v15 = vld [vmem:[#allocation76_spill] sm:$0xff]  ;;  %v5263_v38 = vld [vmem:[#allocation3_spill] sm:$0xff] }
 0x3f1   :  { %v1707_v21 = vmul.f32 %v3091_v52, %v1692_v23  ;;  %v5259_v52 = vld [vmem:[#allocation42_spill] sm:$0xff] }
 0x3f2   :  { %v1706_v54 = vmul.f32 %v1693_v16, %v4202_v39  ;;  %v1694_v26 = vadd.f32 0.5, %v1691_v27  ;;  %v5260_v16 = vld [vmem:[#allocation77_spill] sm:$0xff]  ;;  %v5264_v27 = vld [vmem:[#allocation4_spill] sm:$0xff] }
 0x3f4   :  { %v4426_v63 = vadd.f32 %v1707_v21, %v1706_v54  ;;  %v5261_v21 = vld [vmem:[#allocation67_spill] sm:$0xff]  ;;  %v5262_v54 = vld [vmem:[#allocation68_spill] sm:$0xff] }
 0x3f6   :  { %3094 = vtanh.f32 %v4426_v63 }
 0x400   :  { %v3095_v62 = vpop.eup %3094 }
 0x401   :  { %v1710_v57 = vmul.f32 %v3095_v62, %v1694_v26  ;;  %v5265_v26 = vld [vmem:[#allocation10_spill] sm:$0xff]  ;;  %v5266_v62 = vld [vmem:[#allocation21_spill] sm:$0xff] }
 0x403   :  { %v1724_v61 = vpack.c.bf16 %v1710_v57, %v1710_v57  ;;  %v5267_v57 = vld [vmem:[#allocation12_spill] sm:$0xff] }
 0x405   :  { %1758 = vmatmul.mubr.bf16.vlgmr.msra.gmra.mrb[48].mxu0 %v1724_v61  ;;  %1799 = vmatmul.mubr.bf16.vlgmr.msra.gmra.mrb[64].mxu1 %v1724_v61  ;;  %v5268_v61 = vld [vmem:[#allocation22_spill] sm:$0xff] }
 0x406   :  { %1813 = vmatpush1.bf16.msra.mxu0 %v3818_v49  ;;  %1854 = vmatpush1.bf16.msra.mxu1 %v3823_v53 }
 0x407   :  { %1814 = vmatprep.subr.bf16.mxu0 %v3828_v56  ;;  %1855 = vmatprep.subr.bf16.mxu1 %v3833_v43  ;;  %v5246_v56 = vld [vmem:[#allocation32_spill] sm:$0xff] }
 0x408   :  { %1844 = vmatprep.mubr.bf16.mxu0 %v5136_v3  ;;  %1885 = vmatprep.mubr.bf16.mxu1 %v5136_v3 }
 0x40a   :  { %1815 = vmatpush1.bf16.msra.mxu0 %v3849_v0  ;;  %1856 = vmatpush1.bf16.msra.mxu1 %v3854_v55  ;;  %v5247_v0 = vld [vmem:[#allocation64_spill] sm:$0xff] }
 0x40b   :  { %1816 = vmatprep.subr.bf16.mxu0 %v5168_v40  ;;  %1857 = vmatprep.subr.bf16.mxu1 %v5169_v6  ;;  %v5248_v6 = vld [vmem:[#allocation34_spill] sm:$0xff] }
 0x40e   :  { %1817 = vmatpush1.bf16.msra.mxu0 %v3878_v1  ;;  %1858 = vmatpush1.bf16.msra.mxu1 %v5170_v7 }
 0x40f   :  { %1818 = vmatprep.subr.bf16.mxu0 %v5171_v8  ;;  %1859 = vmatprep.subr.bf16.mxu1 %v5172_v9  ;;  %v5249_v8 = vld [vmem:[#allocation65_spill] sm:$0xff] }
 0x412   :  { %1819 = vmatpush1.bf16.msra.mxu0 %v5173_v10  ;;  %1860 = vmatpush1.bf16.msra.mxu1 %v5174_v11 }
 0x413   :  { %1820 = vmatprep.subr.bf16.mxu0 %v5175_v12  ;;  %1861 = vmatprep.subr.bf16.mxu1 %v5176_v13 }
 0x416   :  { %1821 = vmatpush1.bf16.msra.mxu0 %v5201_v60  ;;  %1862 = vmatpush1.bf16.msra.mxu1 %v5202_v48 }
 0x417   :  { %1822 = vmatprep.subr.bf16.mxu0 %v5203_v59  ;;  %1863 = vmatprep.subr.bf16.mxu1 %v5204_v45 }
 0x419   :  { %v1634_v49 = vpop.f32.mrb[44].mxu0  ;;  %v1675_v53 = vpop.f32.mrb[60].mxu1 }
 0x41a   :  { %v1682_v43 = vadd.f32 %v1634_v49, %v5246_v56  ;;  %v1684_v55 = vadd.f32 %v1675_v53, %v5247_v0  ;;  %v1636_v1 = vpop.f32.mrb[45].mxu0  ;;  %v1677_v40 = vpop.f32.mrb[61].mxu1  ;;  %1823 = vmatpush1.bf16.msra.mxu0 %v5185_v44  ;;  %1864 = vmatpush1.bf16.msra.mxu1 %v5186_v51  ;;  %v5269_v49 = vld [vmem:[#allocation60_spill] sm:$0xff]  ;;  %v5270_v53 = vld [vmem:[#allocation61_spill] sm:$0xff]  ;;  %v5271_v56 = vld [vmem:[#allocation62_spill] sm:$0xff] }
 0x41b   :  { %v1683_v7 = vadd.f32 %v1636_v1, %v5248_v6  ;;  %v1685_v9 = vadd.f32 %v1677_v40, %v5249_v8  ;;  %v1638_v10 = vpop.f32.mrb[46].mxu0  ;;  %v1679_v11 = vpop.f32.mrb[62].mxu1  ;;  %1824 = vmatprep.subr.bf16.mxu0 %v5209_v28  ;;  %1865 = vmatprep.subr.bf16.mxu1 %v5210_v29  ;;  %v5273_v1 = vld [vmem:[#allocation5_spill] sm:$0xff] }
 0x41c   :  { %3096 = vtanh.f32 %v1682_v43  ;;  %v1639_v12 = vpop.f32.mrb[47].mxu0  ;;  %v1680_v13 = vpop.f32.mrb[63].mxu1  ;;  %v5272_v43 = vld [vmem:[#allocation63_spill] sm:$0xff]  ;;  %v5274_v6 = vld [vmem:[#allocation29_spill] sm:$0xff]  ;;  %v5275_v10 = vld [vmem:[#allocation6_spill] sm:$0xff] }
 0x41d   :  { %3098 = vtanh.f32 %v1683_v7  ;;  %v5276_v12 = vld [vmem:[#allocation30_spill] sm:$0xff] }
 0x41e   :  { %1825 = vmatpush1.bf16.msra.mxu0 %v5211_v30  ;;  %1866 = vmatpush1.bf16.msra.mxu1 %v5212_v31  ;;  %3100 = vtanh.f32 %v1685_v9 }
 0x41f   :  { %1826 = vmatprep.subr.bf16.mxu0 %v5213_v32  ;;  %1867 = vmatprep.subr.bf16.mxu1 %v5214_v33  ;;  %3102 = vtanh.f32 %v1684_v55 }
 0x422   :  { %1827 = vmatpush1.bf16.msra.mxu0 %v5215_v34  ;;  %1868 = vmatpush1.bf16.msra.mxu1 %v5216_v35 }
 0x423   :  { %1937 = vmatprep.subr.bf16.mxu0 %v4244_v36  ;;  %1978 = vmatprep.subr.bf16.mxu1 %v4250_v37 }
 0x426   :  { %v3097_v51 = vpop.eup %3096 }
 0x427   :  { %v1699_v44 = vmul.f32 0.5, %v3097_v51  ;;  %v3099_v39 = vpop.eup %3098 }
 0x428   :  { %v1700_v48 = vmul.f32 0.5, %v3099_v39  ;;  %v3101_v59 = vpop.eup %3100 }
 0x429   :  { %v1702_v60 = vadd.f32 0.5, %v1699_v44  ;;  %v3103_v31 = vpop.eup %3102 }
 0x42a   :  { %v1703_v45 = vadd.f32 0.5, %v1700_v48  ;;  %v1701_v32 = vmul.f32 0.5, %v3103_v31 }
 0x42b   :  { %v1712_v28 = vmul.f32 %v3101_v59, %v1702_v60 }
 0x42c   :  { %v1711_v29 = vmul.f32 %v1703_v45, %v4254_v14  ;;  %v1704_v33 = vadd.f32 0.5, %v1701_v32  ;;  %v5250_v14 = vld [vmem:[#allocation49_spill] sm:$0xff] }
 0x42e   :  { %v4468_v30 = vadd.f32 %v1712_v28, %v1711_v29 }
 0x430   :  { %3104 = vtanh.f32 %v4468_v30 }
 0x43a   :  { %v3105_v34 = vpop.eup %3104 }
 0x43b   :  { %v1715_v35 = vmul.f32 %v3105_v34, %v1704_v33 }
 0x43d   :  { %v1811_v23 = vpack.c.bf16 %v1715_v35, %v1715_v35 }
 0x43f   :  { %1845 = vmatmul.mubr.bf16.vlgmr.msra.gmra.mrb[52].mxu0 %v1811_v23  ;;  %1886 = vmatmul.mubr.bf16.vlgmr.msra.gmra.mrb[68].mxu1 %v1811_v23 }
 0x440   :  { %1938 = vmatpush1.bf16.msra.mxu0 %v4136_v58  ;;  %1979 = vmatpush1.bf16.msra.mxu1 %v4142_v2 }
 0x441   :  { %1939 = vmatprep.subr.bf16.mxu0 %v4148_v50  ;;  %1980 = vmatprep.subr.bf16.mxu1 %v4154_v47 }
 0x442   :  { %1969 = vmatprep.mubr.bf16.mxu0 %v5136_v3  ;;  %2010 = vmatprep.mubr.bf16.mxu1 %v5136_v3 }
 0x444   :  { %1940 = vmatpush1.bf16.msra.mxu0 %v4162_v5  ;;  %1981 = vmatpush1.bf16.msra.mxu1 %v4168_v46 }
 0x445   :  { %1941 = vmatprep.subr.bf16.mxu0 %v4268_v42  ;;  %1982 = vmatprep.subr.bf16.mxu1 %v4274_v17 }
 0x448   :  { %1942 = vmatpush1.bf16.msra.mxu0 %v4280_v22  ;;  %1983 = vmatpush1.bf16.msra.mxu1 %v5250_v14 }
 0x449   :  { %1943 = vmatprep.subr.bf16.mxu0 %v5251_v24  ;;  %1984 = vmatprep.subr.bf16.mxu1 %v5252_v25 }
 0x44c   :  { %1944 = vmatpush1.bf16.msra.mxu0 %v5253_v4  ;;  %1985 = vmatpush1.bf16.msra.mxu1 %v5254_v41 }
 0x44d   :  { %1945 = vmatprep.subr.bf16.mxu0 %v5255_v18  ;;  %1986 = vmatprep.subr.bf16.mxu1 %v5256_v19 }
 0x450   :  { %1946 = vmatpush1.bf16.msra.mxu0 %v5257_v20  ;;  %1987 = vmatpush1.bf16.msra.mxu1 %v5258_v15 }
 0x451   :  { %1947 = vmatprep.subr.bf16.mxu0 %v5259_v52  ;;  %1988 = vmatprep.subr.bf16.mxu1 %v5260_v16 }
 0x454   :  { %1948 = vmatpush1.bf16.msra.mxu0 %v5261_v21  ;;  %1989 = vmatpush1.bf16.msra.mxu1 %v5262_v54 }
 0x455   :  { %1949 = vmatprep.subr.bf16.mxu0 %v5263_v38  ;;  %1990 = vmatprep.subr.bf16.mxu1 %v5264_v27 }
 0x458   :  { %1950 = vmatpush1.bf16.msra.mxu0 %v5265_v26  ;;  %1991 = vmatpush1.bf16.msra.mxu1 %v5266_v62 }
 0x459   :  { %1951 = vmatprep.subr.bf16.mxu0 %v5267_v57  ;;  %1992 = vmatprep.subr.bf16.mxu1 %v5268_v61 }
 0x45c   :  { %1952 = vmatpush1.bf16.msra.mxu0 %v5269_v49  ;;  %1993 = vmatpush1.bf16.msra.mxu1 %v5270_v53 }
 0x45d   :  { %2024 = vmatprep.subr.bf16.mxu0 %v5271_v56  ;;  %2065 = vmatprep.subr.bf16.mxu1 %v5272_v43 }
 0x4d8   :  { %v1759_v0 = vpop.f32.mrb[48].mxu0  ;;  %v1800_v55 = vpop.f32.mrb[64].mxu1 }
 0x4d9   :  { %v1807_v40 = vadd.f32 %v1759_v0, %v5273_v1  ;;  %v1809_v7 = vadd.f32 %v1800_v55, %v5274_v6  ;;  %v1761_v8 = vpop.f32.mrb[49].mxu0  ;;  %v1802_v9 = vpop.f32.mrb[65].mxu1 }
 0x4da   :  { %v1808_v11 = vadd.f32 %v1761_v8, %v5275_v10  ;;  %v1810_v13 = vadd.f32 %v1802_v9, %v5276_v12  ;;  %v1763_v51 = vpop.f32.mrb[50].mxu0  ;;  %v1804_v44 = vpop.f32.mrb[66].mxu1  ;;  %v4528_v8 = vld [vmem:[%s4950_s4 + $0x24] ss:$16 sps:$4 sm:$0xff]   ;;  %v4534_v9 = vld [vmem:[%s4950_s4 + $0x2c] ss:$16 sps:$4 sm:$0xff]  }
 0x4db   :  { %3106 = vtanh.f32 %v1807_v40  ;;  %v1764_v39 = vpop.f32.mrb[51].mxu0  ;;  %v1805_v60 = vpop.f32.mrb[67].mxu1  ;;  %v4542_v10 = vld [vmem:[%s4950_s4 + $0x20] ss:$16 sps:$4 sm:$0xff]   ;;  %v4554_v12 = vld [vmem:[%s4950_s4 + $0x44] ss:$16 sps:$4 sm:$0xff]  }
 0x4dc   :  { %3108 = vtanh.f32 %v1808_v11  ;;  %v4548_v11 = vld [vmem:[%s4950_s4 + $0x28] ss:$16 sps:$4 sm:$0xff]   ;;  %v4566_v51 = vld [vmem:[%s4950_s4 + $0x40] ss:$16 sps:$4 sm:$0xff]   ;;  %v4578_v39 = vld [vmem:[%s4950_s4 + $0x64] ss:$16 sps:$4 sm:$0xff]  }
 0x4dd   :  { %3110 = vtanh.f32 %v1810_v13  ;;  %v4560_v13 = vld [vmem:[%s4950_s4 + $0x4c] ss:$16 sps:$4 sm:$0xff]   ;;  %v4572_v44 = vld [vmem:[%s4950_s4 + $0x48] ss:$16 sps:$4 sm:$0xff]  }
 0x4de   :  { %3112 = vtanh.f32 %v1809_v7  ;;  %v4516_v7 = vld [vmem:[%s4950_s4] ss:$16 sps:$4 sm:$0xff]   ;;  %v4584_v60 = vld [vmem:[%s4950_s4 + $0x6c] ss:$16 sps:$4 sm:$0xff]  }
 0x4df   :  { %5277 = vst [vmem:[#allocation35_spill] sm:$0xff] %v4584_v60 }
 0x4e5   :  { %v3107_v48 = vpop.eup %3106 }
 0x4e6   :  { %v1901_v59 = vmul.f32 0.5, %v3107_v48  ;;  %v3109_v45 = vpop.eup %3108  ;;  %v4590_v48 = vld [vmem:[%s4950_s4 + $0x60] ss:$16 sps:$4 sm:$0xff]  }
 0x4e7   :  { %v1902_v29 = vmul.f32 0.5, %v3109_v45  ;;  %v3111_v31 = vpop.eup %3110  ;;  %5278 = vst [vmem:[#allocation66_spill] sm:$0xff] %v4590_v48  ;;  %v4602_v45 = vld [vmem:[%s4950_s4 + $0x84] ss:$16 sps:$4 sm:$0xff]  }
 0x4e8   :  { %v1904_v28 = vadd.f32 0.5, %v1901_v59  ;;  %v3113_v23 = vpop.eup %3112  ;;  %v4596_v59 = vld [vmem:[%s4950_s4 + $0x68] ss:$16 sps:$4 sm:$0xff]   ;;  %5280 = vst [vmem:[#allocation69_spill] sm:$0xff] %v4602_v45 }
 0x4e9   :  { %v1905_v32 = vadd.f32 0.5, %v1902_v29  ;;  %v1903_v0 = vmul.f32 0.5, %v3113_v23  ;;  %5279 = vst [vmem:[#allocation36_spill] sm:$0xff] %v4596_v59  ;;  %v4614_v29 = vld [vmem:[%s4950_s4 + $0x80] ss:$16 sps:$4 sm:$0xff]  }
 0x4ea   :  { %v1919_v33 = vmul.f32 %v3111_v31, %v1904_v28  ;;  %v4608_v28 = vld [vmem:[%s4950_s4 + $0x8c] ss:$16 sps:$4 sm:$0xff]   ;;  %5282 = vst [vmem:[#allocation71_spill] sm:$0xff] %v4614_v29  ;;  %v4620_v31 = vld [vmem:[%s4950_s4 + $0x88] ss:$16 sps:$4 sm:$0xff]  }
 0x4eb   :  { %v1918_v34 = vmul.f32 %v1905_v32, %v4426_v63  ;;  %v1906_v55 = vadd.f32 0.5, %v1903_v0  ;;  %v4522_v63 = vld [vmem:[%s4950_s4 + $0x8] ss:$16 sps:$4 sm:$0xff]   ;;  %5281 = vst [vmem:[#allocation70_spill] sm:$0xff] %v4608_v28  ;;  %5283 = vst [vmem:[#allocation72_spill] sm:$0xff] %v4620_v31  ;;  %v5286_v0 = vld [vmem:[#allocation27_spill] sm:$0xff] }
 0x4ec   :  { %v4626_v32 = vld [vmem:[%s4950_s4 + $0xa4] ss:$16 sps:$4 sm:$0xff]  }
 0x4ed   :  { %v4510_v35 = vadd.f32 %v1919_v33, %v1918_v34  ;;  %5284 = vst [vmem:[#allocation73_spill] sm:$0xff] %v4626_v32  ;;  %v4632_v33 = vld [vmem:[%s4950_s4 + $0xac] ss:$16 sps:$4 sm:$0xff]  }
 0x4ee   :  { %5285 = vst [vmem:[#allocation74_spill] sm:$0xff] %v4632_v33 }
 0x4ef   :  { %3114 = vtanh.f32 %v4510_v35 }
 0x4f9   :  { %v3115_v1 = vpop.eup %3114 }
 0x4fa   :  { %v1922_v40 = vmul.f32 %v3115_v1, %v1906_v55  ;;  %v5287_v1 = vld [vmem:[#allocation54_spill] sm:$0xff] }
 0x4fc   :  { %v1936_v6 = vpack.c.bf16 %v1922_v40, %v1922_v40 }
 0x4fe   :  { %1970 = vmatmul.mubr.bf16.vlgmr.msra.gmra.mrb[56].mxu0 %v1936_v6  ;;  %2011 = vmatmul.mubr.bf16.vlgmr.msra.gmra.mrb[72].mxu1 %v1936_v6 }
 0x4ff   :  { %2025 = vmatpush1.bf16.msra.mxu0 %v4516_v7  ;;  %2066 = vmatpush1.bf16.msra.mxu1 %v4522_v63 }
 0x500   :  { %2026 = vmatprep.subr.bf16.mxu0 %v4528_v8  ;;  %2067 = vmatprep.subr.bf16.mxu1 %v4534_v9 }
 0x501   :  { %2056 = vmatprep.mubr.bf16.mxu0 %v5136_v3  ;;  %2097 = vmatprep.mubr.bf16.mxu1 %v5136_v3 }
 0x503   :  { %2027 = vmatpush1.bf16.msra.mxu0 %v4542_v10  ;;  %2068 = vmatpush1.bf16.msra.mxu1 %v4548_v11 }
 0x504   :  { %2028 = vmatprep.subr.bf16.mxu0 %v4554_v12  ;;  %2069 = vmatprep.subr.bf16.mxu1 %v4560_v13 }
 0x507   :  { %2029 = vmatpush1.bf16.msra.mxu0 %v4566_v51  ;;  %2070 = vmatpush1.bf16.msra.mxu1 %v4572_v44 }
 0x508   :  { %2030 = vmatprep.subr.bf16.mxu0 %v4578_v39  ;;  %2071 = vmatprep.subr.bf16.mxu1 %v4584_v60  ;;  %v4642_v60 = vld [vmem:[%s4950_s4 + $0xa0] ss:$16 sps:$4 sm:$0xff]  }
 0x509   :  { %5290 = vst [vmem:[#allocation75_spill] sm:$0xff] %v4642_v60 }
 0x50b   :  { %2031 = vmatpush1.bf16.msra.mxu0 %v4590_v48  ;;  %2072 = vmatpush1.bf16.msra.mxu1 %v4596_v59 }
 0x50c   :  { %2032 = vmatprep.subr.bf16.mxu0 %v4602_v45  ;;  %2073 = vmatprep.subr.bf16.mxu1 %v4608_v28  ;;  %v5289_v45 = vld [vmem:[#allocation57_spill] sm:$0xff] }
 0x50f   :  { %2033 = vmatpush1.bf16.msra.mxu0 %v4614_v29  ;;  %2074 = vmatpush1.bf16.msra.mxu1 %v4620_v31  ;;  %v5288_v29 = vld [vmem:[#allocation28_spill] sm:$0xff] }
 0x510   :  { %2034 = vmatprep.subr.bf16.mxu0 %v4626_v32  ;;  %2075 = vmatprep.subr.bf16.mxu1 %v4632_v33 }
 0x512   :  { %v1846_v34 = vpop.f32.mrb[52].mxu0  ;;  %v1887_v23 = vpop.f32.mrb[68].mxu1 }
 0x513   :  { %v1894_v55 = vadd.f32 %v1846_v34, %v5286_v0  ;;  %v1896_v40 = vadd.f32 %v1887_v23, %v5287_v1  ;;  %v1848_v6 = vpop.f32.mrb[53].mxu0  ;;  %v1889_v31 = vpop.f32.mrb[69].mxu1  ;;  %2035 = vmatpush1.bf16.msra.mxu0 %v4642_v60  ;;  %v4648_v34 = vld [vmem:[%s4950_s4 + $0xa8] ss:$16 sps:$4 sm:$0xff]   ;;  %v4678_v0 = vld [vmem:[%s4950_s4 + $0xe4] ss:$16 sps:$4 sm:$0xff]  }
 0x514   :  { %v1895_v28 = vadd.f32 %v1848_v6, %v5288_v29  ;;  %v1897_v59 = vadd.f32 %v1889_v31, %v5289_v45  ;;  %v1850_v32 = vpop.f32.mrb[54].mxu0  ;;  %v1891_v48 = vpop.f32.mrb[70].mxu1  ;;  %5291 = vst [vmem:[#allocation78_spill] sm:$0xff] %v4648_v34  ;;  %2076 = vmatpush1.bf16.msra.mxu1 %v4648_v34  ;;  %v4660_v45 = vld [vmem:[%s4950_s4 + $0xcc] ss:$16 sps:$4 sm:$0xff]   ;;  %5296 = vst [vmem:[#allocation25_spill] sm:$0xff] %v4678_v0 }
 0x515   :  { %3116 = vtanh.f32 %v1894_v55  ;;  %v1851_v29 = vpop.f32.mrb[55].mxu0  ;;  %v1892_v23 = vpop.f32.mrb[71].mxu1  ;;  %v4654_v48 = vld [vmem:[%s4950_s4 + $0xc4] ss:$16 sps:$4 sm:$0xff]   ;;  %5293 = vst [vmem:[#allocation14_spill] sm:$0xff] %v4660_v45  ;;  %2077 = vmatprep.subr.bf16.mxu1 %v4660_v45 }
 0x516   :  { %5292 = vst [vmem:[#allocation79_spill] sm:$0xff] %v4654_v48  ;;  %2036 = vmatprep.subr.bf16.mxu0 %v4654_v48  ;;  %3118 = vtanh.f32 %v1895_v28  ;;  %v4666_v31 = vld [vmem:[%s4950_s4 + $0xc0] ss:$16 sps:$4 sm:$0xff]   ;;  %v4672_v32 = vld [vmem:[%s4950_s4 + $0xc8] ss:$16 sps:$4 sm:$0xff]  }
 0x517   :  { %5294 = vst [vmem:[#allocation23_spill] sm:$0xff] %v4666_v31  ;;  %2037 = vmatpush1.bf16.msra.mxu0 %v4666_v31  ;;  %5295 = vst [vmem:[#allocation16_spill] sm:$0xff] %v4672_v32  ;;  %3120 = vtanh.f32 %v1897_v59  ;;  %v4684_v28 = vld [vmem:[%s4950_s4 + $0xec] ss:$16 sps:$4 sm:$0xff]   ;;  %v4690_v55 = vld [vmem:[%s4950_s4 + $0xe0] ss:$16 sps:$4 sm:$0xff]  }
 0x518   :  { %2078 = vmatpush1.bf16.msra.mxu1 %v4672_v32  ;;  %2038 = vmatprep.subr.bf16.mxu0 %v4678_v0  ;;  %5297 = vst [vmem:[#allocation32_spill] sm:$0xff] %v4684_v28  ;;  %5298 = vst [vmem:[#allocation64_spill] sm:$0xff] %v4690_v55  ;;  %v4696_v59 = vld [vmem:[%s4950_s4 + $0xe8] ss:$16 sps:$4 sm:$0xff]   ;;  %3122 = vtanh.f32 %v1896_v40  ;;  %v5303_v40 = vld [vmem:[#allocation33_spill] sm:$0xff] }
 0x519   :  { %2079 = vmatprep.subr.bf16.mxu1 %v4684_v28  ;;  %5299 = vst [vmem:[#allocation34_spill] sm:$0xff] %v4696_v59 }
 0x51b   :  { %2039 = vmatpush1.bf16.msra.mxu0 %v4690_v55 }
 0x51c   :  { %2080 = vmatpush1.bf16.msra.mxu1 %v4696_v59  ;;  %2149 = vmatprep.subr.bf16.mxu0 %v4244_v36 }
 0x51d   :  { %2190 = vmatprep.subr.bf16.mxu1 %v4250_v37 }
 0x51f   :  { %v3117_v1 = vpop.eup %3116 }
 0x520   :  { %v1911_v6 = vmul.f32 0.5, %v3117_v1  ;;  %v3119_v29 = vpop.eup %3118 }
 0x521   :  { %v1912_v28 = vmul.f32 0.5, %v3119_v29  ;;  %v3121_v0 = vpop.eup %3120 }
 0x522   :  { %v1914_v23 = vadd.f32 0.5, %v1911_v6  ;;  %v3123_v59 = vpop.eup %3122 }
 0x523   :  { %v1915_v32 = vadd.f32 0.5, %v1912_v28  ;;  %v1913_v48 = vmul.f32 0.5, %v3123_v59 }
 0x524   :  { %v1924_v55 = vmul.f32 %v3121_v0, %v1914_v23 }
 0x525   :  { %v1923_v31 = vmul.f32 %v1915_v32, %v4468_v30  ;;  %v1916_v36 = vadd.f32 0.5, %v1913_v48  ;;  %v5302_v30 = vld [vmem:[#allocation8_spill] sm:$0xff] }
 0x527   :  { %v4702_v45 = vadd.f32 %v1924_v55, %v1923_v31 }
 0x529   :  { %3124 = vtanh.f32 %v4702_v45 }
 0x533   :  { %v3125_v34 = vpop.eup %3124 }
 0x534   :  { %v1927_v37 = vmul.f32 %v3125_v34, %v1916_v36 }
 0x536   :  { %v2023_v60 = vpack.c.bf16 %v1927_v37, %v1927_v37 }
 0x538   :  { %2057 = vmatmul.mubr.bf16.vlgmr.msra.gmra.mrb[60].mxu0 %v2023_v60  ;;  %2098 = vmatmul.mubr.bf16.vlgmr.msra.gmra.mrb[76].mxu1 %v2023_v60 }
 0x539   :  { %2150 = vmatpush1.bf16.msra.mxu0 %v4136_v58  ;;  %2191 = vmatpush1.bf16.msra.mxu1 %v4142_v2 }
 0x53a   :  { %2151 = vmatprep.subr.bf16.mxu0 %v4148_v50  ;;  %2192 = vmatprep.subr.bf16.mxu1 %v4154_v47  ;;  %v5300_v50 = vld [vmem:[#allocation7_spill] sm:$0xff] }
 0x53b   :  { %2181 = vmatprep.mubr.bf16.mxu0 %v5136_v3  ;;  %2222 = vmatprep.mubr.bf16.mxu1 %v5136_v3 }
 0x53d   :  { %2152 = vmatpush1.bf16.msra.mxu0 %v4162_v5  ;;  %2193 = vmatpush1.bf16.msra.mxu1 %v4168_v46  ;;  %v5301_v5 = vld [vmem:[#allocation31_spill] sm:$0xff] }
 0x53e   :  { %2153 = vmatprep.subr.bf16.mxu0 %v4268_v42  ;;  %2194 = vmatprep.subr.bf16.mxu1 %v4274_v17 }
 0x541   :  { %2154 = vmatpush1.bf16.msra.mxu0 %v4280_v22  ;;  %2195 = vmatpush1.bf16.msra.mxu1 %v5250_v14 }
 0x542   :  { %2155 = vmatprep.subr.bf16.mxu0 %v5251_v24  ;;  %2196 = vmatprep.subr.bf16.mxu1 %v5252_v25 }
 0x545   :  { %2156 = vmatpush1.bf16.msra.mxu0 %v5253_v4  ;;  %2197 = vmatpush1.bf16.msra.mxu1 %v5254_v41 }
 0x546   :  { %2157 = vmatprep.subr.bf16.mxu0 %v5255_v18  ;;  %2198 = vmatprep.subr.bf16.mxu1 %v5256_v19 }
 0x549   :  { %2158 = vmatpush1.bf16.msra.mxu0 %v5257_v20  ;;  %2199 = vmatpush1.bf16.msra.mxu1 %v5258_v15 }
 0x54a   :  { %2159 = vmatprep.subr.bf16.mxu0 %v5259_v52  ;;  %2200 = vmatprep.subr.bf16.mxu1 %v5260_v16 }
 0x54d   :  { %2160 = vmatpush1.bf16.msra.mxu0 %v5261_v21  ;;  %2201 = vmatpush1.bf16.msra.mxu1 %v5262_v54 }
 0x54e   :  { %2161 = vmatprep.subr.bf16.mxu0 %v5263_v38  ;;  %2202 = vmatprep.subr.bf16.mxu1 %v5264_v27 }
 0x551   :  { %2162 = vmatpush1.bf16.msra.mxu0 %v5265_v26  ;;  %2203 = vmatpush1.bf16.msra.mxu1 %v5266_v62 }
 0x552   :  { %2163 = vmatprep.subr.bf16.mxu0 %v5267_v57  ;;  %2204 = vmatprep.subr.bf16.mxu1 %v5268_v61 }
 0x555   :  { %2164 = vmatpush1.bf16.msra.mxu0 %v5269_v49  ;;  %2205 = vmatpush1.bf16.msra.mxu1 %v5270_v53 }
 0x556   :  { %2236 = vmatprep.subr.bf16.mxu0 %v5271_v56  ;;  %2277 = vmatprep.subr.bf16.mxu1 %v5272_v43 }
 0x5d1   :  { %v1971_v58 = vpop.f32.mrb[56].mxu0  ;;  %v2012_v2 = vpop.f32.mrb[72].mxu1 }
 0x5d2   :  { %v2019_v47 = vadd.f32 %v1971_v58, %v5300_v50  ;;  %v2021_v46 = vadd.f32 %v2012_v2, %v5301_v5  ;;  %v1973_v36 = vpop.f32.mrb[57].mxu0  ;;  %v2014_v37 = vpop.f32.mrb[73].mxu1 }
 0x5d3   :  { %v2020_v60 = vadd.f32 %v1973_v36, %v5302_v30  ;;  %v2022_v34 = vadd.f32 %v2014_v37, %v5303_v40  ;;  %v1975_v48 = vpop.f32.mrb[58].mxu0  ;;  %v2016_v31 = vpop.f32.mrb[74].mxu1  ;;  %v5306_v40 = vld [vmem:[#allocation36_spill] sm:$0xff] }
 0x5d4   :  { %3126 = vtanh.f32 %v2019_v47  ;;  %v1976_v32 = vpop.f32.mrb[59].mxu0  ;;  %v2017_v0 = vpop.f32.mrb[75].mxu1  ;;  %v5308_v48 = vld [vmem:[#allocation70_spill] sm:$0xff]  ;;  %v5309_v31 = vld [vmem:[#allocation71_spill] sm:$0xff] }
 0x5d5   :  { %3128 = vtanh.f32 %v2020_v60  ;;  %v5310_v32 = vld [vmem:[#allocation72_spill] sm:$0xff]  ;;  %v5311_v0 = vld [vmem:[#allocation73_spill] sm:$0xff] }
 0x5d6   :  { %3130 = vtanh.f32 %v2022_v34  ;;  %v5307_v34 = vld [vmem:[#allocation69_spill] sm:$0xff] }
 0x5d7   :  { %3132 = vtanh.f32 %v2021_v46  ;;  %v5305_v46 = vld [vmem:[#allocation66_spill] sm:$0xff] }
 0x5de   :  { %v3127_v28 = vpop.eup %3126 }
 0x5df   :  { %v2113_v55 = vmul.f32 0.5, %v3127_v28  ;;  %v3129_v59 = vpop.eup %3128 }
 0x5e0   :  { %v2114_v6 = vmul.f32 0.5, %v3129_v59  ;;  %v3131_v29 = vpop.eup %3130  ;;  %v5312_v59 = vld [vmem:[#allocation24_spill] sm:$0xff] }
 0x5e1   :  { %v2116_v1 = vadd.f32 0.5, %v2113_v55  ;;  %v3133_v47 = vpop.eup %3132 }
 0x5e2   :  { %v2117_v23 = vadd.f32 0.5, %v2114_v6  ;;  %v2115_v5 = vmul.f32 0.5, %v3133_v47  ;;  %v5313_v6 = vld [vmem:[#allocation52_spill] sm:$0xff] }
 0x5e3   :  { %v2131_v58 = vmul.f32 %v3131_v29, %v2116_v1 }
 0x5e4   :  { %v2130_v2 = vmul.f32 %v2117_v23, %v4510_v35  ;;  %v2118_v36 = vadd.f32 0.5, %v2115_v5  ;;  %v5304_v35 = vld [vmem:[#allocation35_spill] sm:$0xff]  ;;  %v5315_v5 = vld [vmem:[#allocation53_spill] sm:$0xff] }
 0x5e6   :  { %v4744_v50 = vadd.f32 %v2131_v58, %v2130_v2  ;;  %v5314_v2 = vld [vmem:[#allocation26_spill] sm:$0xff] }
 0x5e8   :  { %3134 = vtanh.f32 %v4744_v50 }
 0x5f2   :  { %v3135_v37 = vpop.eup %3134 }
 0x5f3   :  { %v2134_v30 = vmul.f32 %v3135_v37, %v2118_v36 }
 0x5f5   :  { %v2148_v60 = vpack.c.bf16 %v2134_v30, %v2134_v30 }
 0x5f7   :  { %2182 = vmatmul.mubr.bf16.vlgmr.msra.gmra.mrb[64].mxu0 %v2148_v60  ;;  %2223 = vmatmul.mubr.bf16.vlgmr.msra.gmra.mrb[80].mxu1 %v2148_v60  ;;  %v5316_v60 = vld [vmem:[#allocation75_spill] sm:$0xff] }
 0x5f8   :  { %2237 = vmatpush1.bf16.msra.mxu0 %v4516_v7  ;;  %2278 = vmatpush1.bf16.msra.mxu1 %v4522_v63 }
 0x5f9   :  { %2238 = vmatprep.subr.bf16.mxu0 %v4528_v8  ;;  %2279 = vmatprep.subr.bf16.mxu1 %v4534_v9 }
 0x5fa   :  { %2268 = vmatprep.mubr.bf16.mxu0 %v5136_v3  ;;  %2309 = vmatprep.mubr.bf16.mxu1 %v5136_v3 }
 0x5fc   :  { %2239 = vmatpush1.bf16.msra.mxu0 %v4542_v10  ;;  %2280 = vmatpush1.bf16.msra.mxu1 %v4548_v11 }
 0x5fd   :  { %2240 = vmatprep.subr.bf16.mxu0 %v4554_v12  ;;  %2281 = vmatprep.subr.bf16.mxu1 %v4560_v13 }
 0x600   :  { %2241 = vmatpush1.bf16.msra.mxu0 %v4566_v51  ;;  %2282 = vmatpush1.bf16.msra.mxu1 %v4572_v44 }
 0x601   :  { %2242 = vmatprep.subr.bf16.mxu0 %v4578_v39  ;;  %2283 = vmatprep.subr.bf16.mxu1 %v5304_v35 }
 0x604   :  { %2243 = vmatpush1.bf16.msra.mxu0 %v5305_v46  ;;  %2284 = vmatpush1.bf16.msra.mxu1 %v5306_v40 }
 0x605   :  { %2244 = vmatprep.subr.bf16.mxu0 %v5307_v34  ;;  %2285 = vmatprep.subr.bf16.mxu1 %v5308_v48 }
 0x608   :  { %2245 = vmatpush1.bf16.msra.mxu0 %v5309_v31  ;;  %2286 = vmatpush1.bf16.msra.mxu1 %v5310_v32  ;;  %v5317_v32 = vld [vmem:[#allocation78_spill] sm:$0xff]  ;;  %v5318_v31 = vld [vmem:[#allocation79_spill] sm:$0xff] }
 0x609   :  { %2246 = vmatprep.subr.bf16.mxu0 %v5311_v0  ;;  %2287 = vmatprep.subr.bf16.mxu1 %v4632_v33 }
 0x60b   :  { %v2058_v28 = vpop.f32.mrb[60].mxu0  ;;  %v2099_v55 = vpop.f32.mrb[76].mxu1 }
 0x60c   :  { %v2106_v1 = vadd.f32 %v2058_v28, %v5312_v59  ;;  %v2108_v29 = vadd.f32 %v2099_v55, %v5313_v6  ;;  %v2060_v23 = vpop.f32.mrb[61].mxu0  ;;  %v2101_v58 = vpop.f32.mrb[77].mxu1  ;;  %2247 = vmatpush1.bf16.msra.mxu0 %v5316_v60  ;;  %2288 = vmatpush1.bf16.msra.mxu1 %v5317_v32  ;;  %v5319_v28 = vld [vmem:[#allocation14_spill] sm:$0xff]  ;;  %v5320_v55 = vld [vmem:[#allocation23_spill] sm:$0xff]  ;;  %v5321_v59 = vld [vmem:[#allocation16_spill] sm:$0xff] }
 0x60d   :  { %v2107_v47 = vadd.f32 %v2060_v23, %v5314_v2  ;;  %v2109_v36 = vadd.f32 %v2101_v58, %v5315_v5  ;;  %v2062_v37 = vpop.f32.mrb[62].mxu0  ;;  %v2103_v30 = vpop.f32.mrb[78].mxu1  ;;  %2248 = vmatprep.subr.bf16.mxu0 %v5318_v31  ;;  %2289 = vmatprep.subr.bf16.mxu1 %v5319_v28  ;;  %v5322_v6 = vld [vmem:[#allocation25_spill] sm:$0xff]  ;;  %v5323_v23 = vld [vmem:[#allocation32_spill] sm:$0xff]  ;;  %v5325_v2 = vld [vmem:[#allocation34_spill] sm:$0xff] }
 0x60e   :  { %3136 = vtanh.f32 %v2106_v1  ;;  %v2063_v33 = vpop.f32.mrb[63].mxu0  ;;  %v2104_v0 = vpop.f32.mrb[79].mxu1  ;;  %v5324_v58 = vld [vmem:[#allocation64_spill] sm:$0xff] }
 0x60f   :  { %3138 = vtanh.f32 %v2107_v47  ;;  %v5326_v33 = vld [vmem:[#allocation47_spill] sm:$0xff]  ;;  %v5327_v0 = vld [vmem:[#allocation48_spill] sm:$0xff] }
 0x610   :  { %2249 = vmatpush1.bf16.msra.mxu0 %v5320_v55  ;;  %2290 = vmatpush1.bf16.msra.mxu1 %v5321_v59  ;;  %3140 = vtanh.f32 %v2109_v36 }
 0x611   :  { %2250 = vmatprep.subr.bf16.mxu0 %v5322_v6  ;;  %2291 = vmatprep.subr.bf16.mxu1 %v5323_v23  ;;  %3142 = vtanh.f32 %v2108_v29  ;;  %v3250_v29 = vld [vmem:[%s4949_s3] ss:$16 sps:$4 sm:$0xff]  }
 0x614   :  { %2251 = vmatpush1.bf16.msra.mxu0 %v5324_v58  ;;  %2292 = vmatpush1.bf16.msra.mxu1 %v5325_v2 }
 0x615   :  { %2361 = vmatprep.subr.bf16.mxu0 %v5326_v33  ;;  %2402 = vmatprep.subr.bf16.mxu1 %v5327_v0 }
 0x618   :  { %v3137_v1 = vpop.eup %3136 }
 0x619   :  { %v2123_v5 = vmul.f32 0.5, %v3137_v1  ;;  %v3139_v47 = vpop.eup %3138 }
 0x61a   :  { %v2124_v30 = vmul.f32 0.5, %v3139_v47  ;;  %v3141_v59 = vpop.eup %3140 }
 0x61b   :  { %v2126_v37 = vadd.f32 0.5, %v2123_v5  ;;  %v3143_v2 = vpop.eup %3142 }
 0x61c   :  { %v2127_v36 = vadd.f32 0.5, %v2124_v30  ;;  %v2125_v58 = vmul.f32 0.5, %v3143_v2 }
 0x61d   :  { %v2136_v55 = vmul.f32 %v3141_v59, %v2126_v37  ;;  %v3255_v59 = vld [vmem:[%s4949_s3 + $0x28] ss:$16 sps:$4 sm:$0xff]  }
 0x61e   :  { %v2135_v6 = vmul.f32 %v2127_v36, %v4702_v45  ;;  %v2128_v33 = vadd.f32 0.5, %v2125_v58  ;;  %v3251_v45 = vld [vmem:[%s4949_s3 + $0x8] ss:$16 sps:$4 sm:$0xff]   ;;  %v5340_v36 = vld [vmem:[#allocation79_spill] sm:$0xff] }
 0x620   :  { %v4786_v23 = vadd.f32 %v2136_v55, %v2135_v6  ;;  %v3252_v55 = vld [vmem:[%s4949_s3 + $0x24] ss:$16 sps:$4 sm:$0xff]  }
 0x622   :  { %3144 = vtanh.f32 %v4786_v23 }
 0x62c   :  { %v3145_v28 = vpop.eup %3144 }
 0x62d   :  { %v2139_v0 = vmul.f32 %v3145_v28, %v2128_v33  ;;  %v3253_v28 = vld [vmem:[%s4949_s3 + $0x2c] ss:$16 sps:$4 sm:$0xff]  }
 0x62e   :  { %v5341_v33 = vld [vmem:[#allocation14_spill] sm:$0xff] }
 0x62f   :  { %v2235_v31 = vpack.c.bf16 %v2139_v0, %v2139_v0  ;;  %v5342_v0 = vld [vmem:[#allocation23_spill] sm:$0xff] }
 0x631   :  { %2269 = vmatmul.mubr.bf16.vlgmr.msra.gmra.mrb[68].mxu0 %v2235_v31  ;;  %2310 = vmatmul.mubr.bf16.vlgmr.msra.gmra.mrb[84].mxu1 %v2235_v31  ;;  %v3254_v31 = vld [vmem:[%s4949_s3 + $0x20] ss:$16 sps:$4 sm:$0xff]  }
 0x632   :  { %2362 = vmatpush1.bf16.msra.mxu0 %v3250_v29  ;;  %2403 = vmatpush1.bf16.msra.mxu1 %v3251_v45  ;;  %v5343_v29 = vld [vmem:[#allocation16_spill] sm:$0xff]  ;;  %v5344_v45 = vld [vmem:[#allocation25_spill] sm:$0xff] }
 0x633   :  { %2363 = vmatprep.subr.bf16.mxu0 %v3252_v55  ;;  %2404 = vmatprep.subr.bf16.mxu1 %v3253_v28  ;;  %v5345_v55 = vld [vmem:[#allocation32_spill] sm:$0xff] }
 0x634   :  { %2393 = vmatprep.mubr.bf16.mxu0 %v5136_v3  ;;  %2434 = vmatprep.mubr.bf16.mxu1 %v5136_v3 }
 0x636   :  { %2364 = vmatpush1.bf16.msra.mxu0 %v3254_v31  ;;  %2405 = vmatpush1.bf16.msra.mxu1 %v3255_v59 }
 0x637   :  { %2365 = vmatprep.subr.bf16.mxu0 %v4268_v42  ;;  %2406 = vmatprep.subr.bf16.mxu1 %v4274_v17 }
 0x63a   :  { %2366 = vmatpush1.bf16.msra.mxu0 %v4280_v22  ;;  %2407 = vmatpush1.bf16.msra.mxu1 %v5250_v14  ;;  %v5328_v22 = vld [vmem:[#allocation9_spill] sm:$0xff] }
 0x63b   :  { %2367 = vmatprep.subr.bf16.mxu0 %v5251_v24  ;;  %2408 = vmatprep.subr.bf16.mxu1 %v5252_v25  ;;  %v5329_v24 = vld [vmem:[#allocation37_spill] sm:$0xff] }
 0x63e   :  { %2368 = vmatpush1.bf16.msra.mxu0 %v5253_v4  ;;  %2409 = vmatpush1.bf16.msra.mxu1 %v5254_v41 }
 0x63f   :  { %2369 = vmatprep.subr.bf16.mxu0 %v5255_v18  ;;  %2410 = vmatprep.subr.bf16.mxu1 %v5256_v19  ;;  %v5330_v18 = vld [vmem:[#allocation11_spill] sm:$0xff] }
 0x642   :  { %2370 = vmatpush1.bf16.msra.mxu0 %v5257_v20  ;;  %2411 = vmatpush1.bf16.msra.mxu1 %v5258_v15  ;;  %v5331_v20 = vld [vmem:[#allocation38_spill] sm:$0xff] }
 0x643   :  { %2371 = vmatprep.subr.bf16.mxu0 %v5259_v52  ;;  %2412 = vmatprep.subr.bf16.mxu1 %v5260_v16 }
 0x646   :  { %2372 = vmatpush1.bf16.msra.mxu0 %v5261_v21  ;;  %2413 = vmatpush1.bf16.msra.mxu1 %v5262_v54 }
 0x647   :  { %2373 = vmatprep.subr.bf16.mxu0 %v5263_v38  ;;  %2414 = vmatprep.subr.bf16.mxu1 %v5264_v27 }
 0x64a   :  { %2374 = vmatpush1.bf16.msra.mxu0 %v5265_v26  ;;  %2415 = vmatpush1.bf16.msra.mxu1 %v5266_v62 }
 0x64b   :  { %2375 = vmatprep.subr.bf16.mxu0 %v5267_v57  ;;  %2416 = vmatprep.subr.bf16.mxu1 %v5268_v61 }
 0x64e   :  { %2376 = vmatpush1.bf16.msra.mxu0 %v5269_v49  ;;  %2417 = vmatpush1.bf16.msra.mxu1 %v5270_v53 }
 0x64f   :  { %2448 = vmatprep.subr.bf16.mxu0 %v5271_v56  ;;  %2489 = vmatprep.subr.bf16.mxu1 %v5272_v43 }
 0x6ca   :  { %v2183_v42 = vpop.f32.mrb[64].mxu0  ;;  %v2224_v17 = vpop.f32.mrb[80].mxu1 }
 0x6cb   :  { %v2231_v14 = vadd.f32 %v2183_v42, %v5328_v22  ;;  %v2233_v25 = vadd.f32 %v2224_v17, %v5329_v24  ;;  %v2185_v4 = vpop.f32.mrb[65].mxu0  ;;  %v2226_v41 = vpop.f32.mrb[81].mxu1 }
 0x6cc   :  { %v2232_v19 = vadd.f32 %v2185_v4, %v5330_v18  ;;  %v2234_v15 = vadd.f32 %v2226_v41, %v5331_v20  ;;  %v2187_v52 = vpop.f32.mrb[66].mxu0  ;;  %v2228_v16 = vpop.f32.mrb[82].mxu1 }
 0x6cd   :  { %3146 = vtanh.f32 %v2231_v14  ;;  %v2188_v21 = vpop.f32.mrb[67].mxu0  ;;  %v2229_v54 = vpop.f32.mrb[83].mxu1  ;;  %v3010_v16 = vld [vmem:[%s4952_s5 + $0x40] sm:$0xff]  }
 0x6ce   :  { %3148 = vtanh.f32 %v2232_v19  ;;  %v3012_v21 = vld [vmem:[%s4952_s5 + $0x48] sm:$0xff]  }
 0x6cf   :  { %3150 = vtanh.f32 %v2234_v15  ;;  %v3013_v54 = vld [vmem:[%s4952_s5 + $0x8] sm:$0xff]  }
 0x6d0   :  { %3152 = vtanh.f32 %v2233_v25 }
 0x6d7   :  { %v3147_v38 = vpop.eup %3146 }
 0x6d8   :  { %v2325_v27 = vmul.f32 0.5, %v3147_v38  ;;  %v3149_v26 = vpop.eup %3148  ;;  %v3014_v38 = vld [vmem:[%s4952_s5 + $0x50] sm:$0xff]  }
 0x6d9   :  { %v2326_v57 = vmul.f32 0.5, %v3149_v26  ;;  %v3151_v61 = vpop.eup %3150  ;;  %v3016_v26 = vld [vmem:[%s4952_s5 + $0x58] sm:$0xff]  }
 0x6da   :  { %v2328_v62 = vadd.f32 0.5, %v2325_v27  ;;  %v3153_v6 = vpop.eup %3152  ;;  %v3015_v27 = vld [vmem:[%s4952_s5 + $0x10] sm:$0xff]  }
 0x6db   :  { %v2329_v49 = vadd.f32 0.5, %v2326_v57  ;;  %v2327_v58 = vmul.f32 0.5, %v3153_v6  ;;  %v3018_v57 = vld [vmem:[%s4952_s5 + $0x60] sm:$0xff]   ;;  %v3023_v6 = vld [vmem:[%s4952_s5 + $0x30] sm:$0xff]  }
 0x6dc   :  { %v2343_v53 = vmul.f32 %v3151_v61, %v2328_v62  ;;  %v3017_v62 = vld [vmem:[%s4952_s5 + $0x18] sm:$0xff]   ;;  %v3019_v61 = vld [vmem:[%s4952_s5 + $0x20] sm:$0xff]  }
 0x6dd   :  { %v2342_v56 = vmul.f32 %v2329_v49, %v4744_v50  ;;  %v2330_v2 = vadd.f32 0.5, %v2327_v58  ;;  %v5338_v50 = vld [vmem:[#allocation20_spill] sm:$0xff]  ;;  %v3024_v58 = vld [vmem:[%s4952_s5 + $0x78] sm:$0xff]  }
 0x6de   :  { %v3020_v49 = vld [vmem:[%s4952_s5 + $0x68] sm:$0xff]  }
 0x6df   :  { %v4840_v43 = vadd.f32 %v2343_v53, %v2342_v56  ;;  %v3021_v53 = vld [vmem:[%s4952_s5 + $0x28] sm:$0xff]   ;;  %v3022_v56 = vld [vmem:[%s4952_s5 + $0x70] sm:$0xff]  }
 0x6e1   :  { %3154 = vtanh.f32 %v4840_v43 }
 0x6eb   :  { %v3155_v1 = vpop.eup %3154 }
 0x6ec   :  { %v2346_v5 = vmul.f32 %v3155_v1, %v2330_v2  ;;  %v3025_v2 = vld [vmem:[%s4952_s5 + $0x38] sm:$0xff]  }
 0x6ee   :  { %v2360_v47 = vpack.c.bf16 %v2346_v5, %v2346_v5 }
 0x6f0   :  { %2394 = vmatmul.mubr.bf16.vlgmr.msra.gmra.mrb[72].mxu0 %v2360_v47  ;;  %2435 = vmatmul.mubr.bf16.vlgmr.msra.gmra.mrb[88].mxu1 %v2360_v47  ;;  %v5348_v47 = vld [vmem:[#allocation13_spill] sm:$0xff] }
 0x6f1   :  { %2449 = vmatpush1.bf16.msra.mxu0 %v4516_v7  ;;  %2490 = vmatpush1.bf16.msra.mxu1 %v4522_v63  ;;  %v5333_v7 = vld [vmem:[#allocation72_spill] sm:$0xff]  ;;  %v5334_v63 = vld [vmem:[#allocation73_spill] sm:$0xff] }
 0x6f2   :  { %2450 = vmatprep.subr.bf16.mxu0 %v4528_v8  ;;  %2491 = vmatprep.subr.bf16.mxu1 %v4534_v9  ;;  %v5335_v8 = vld [vmem:[#allocation74_spill] sm:$0xff] }
 0x6f3   :  { %2480 = vmatprep.mubr.bf16.mxu0 %v5136_v3  ;;  %2521 = vmatprep.mubr.bf16.mxu1 %v5136_v3  ;;  %v5332_v3 = vld [vmem:[#allocation71_spill] sm:$0xff] }
 0x6f5   :  { %2451 = vmatpush1.bf16.msra.mxu0 %v4542_v10  ;;  %2492 = vmatpush1.bf16.msra.mxu1 %v4548_v11  ;;  %v5336_v11 = vld [vmem:[#allocation19_spill] sm:$0xff] }
 0x6f6   :  { %2452 = vmatprep.subr.bf16.mxu0 %v4554_v12  ;;  %2493 = vmatprep.subr.bf16.mxu1 %v4560_v13  ;;  %v5337_v13 = vld [vmem:[#allocation45_spill] sm:$0xff] }
 0x6f9   :  { %2453 = vmatpush1.bf16.msra.mxu0 %v4566_v51  ;;  %2494 = vmatpush1.bf16.msra.mxu1 %v4572_v44 }
 0x6fa   :  { %2454 = vmatprep.subr.bf16.mxu0 %v4578_v39  ;;  %2495 = vmatprep.subr.bf16.mxu1 %v5304_v35 }
 0x6fd   :  { %2455 = vmatpush1.bf16.msra.mxu0 %v5305_v46  ;;  %2496 = vmatpush1.bf16.msra.mxu1 %v5306_v40  ;;  %v5339_v46 = vld [vmem:[#allocation46_spill] sm:$0xff] }
 0x6fe   :  { %2456 = vmatprep.subr.bf16.mxu0 %v5307_v34  ;;  %2497 = vmatprep.subr.bf16.mxu1 %v5308_v48 }
 0x701   :  { %2457 = vmatpush1.bf16.msra.mxu0 %v5332_v3  ;;  %2498 = vmatpush1.bf16.msra.mxu1 %v5333_v7  ;;  %v5349_v7 = vld [vmem:[#allocation39_spill] sm:$0xff] }
 0x702   :  { %2458 = vmatprep.subr.bf16.mxu0 %v5334_v63  ;;  %2499 = vmatprep.subr.bf16.mxu1 %v5335_v8 }
 0x704   :  { %v2270_v9 = vpop.f32.mrb[68].mxu0  ;;  %v2311_v10 = vpop.f32.mrb[84].mxu1 }
 0x705   :  { %v2318_v12 = vadd.f32 %v2270_v9, %v5336_v11  ;;  %v2320_v51 = vadd.f32 %v2311_v10, %v5337_v13  ;;  %v2272_v44 = vpop.f32.mrb[69].mxu0  ;;  %v2313_v39 = vpop.f32.mrb[85].mxu1  ;;  %2459 = vmatpush1.bf16.msra.mxu0 %v5316_v60  ;;  %2500 = vmatpush1.bf16.msra.mxu1 %v5317_v32  ;;  %v5346_v60 = vld [vmem:[#allocation64_spill] sm:$0xff]  ;;  %v5347_v32 = vld [vmem:[#allocation34_spill] sm:$0xff]  ;;  %v5350_v10 = vld [vmem:[#allocation15_spill] sm:$0xff] }
 0x706   :  { %v2319_v35 = vadd.f32 %v2272_v44, %v5338_v50  ;;  %v2321_v40 = vadd.f32 %v2313_v39, %v5339_v46  ;;  %v2274_v34 = vpop.f32.mrb[70].mxu0  ;;  %v2315_v48 = vpop.f32.mrb[86].mxu1  ;;  %2460 = vmatprep.subr.bf16.mxu0 %v5340_v36  ;;  %2501 = vmatprep.subr.bf16.mxu1 %v5341_v33 }
 0x707   :  { %3156 = vtanh.f32 %v2318_v12  ;;  %v2275_v37 = vpop.f32.mrb[71].mxu0  ;;  %v2316_v30 = vpop.f32.mrb[87].mxu1  ;;  %v5351_v12 = vld [vmem:[#allocation41_spill] sm:$0xff] }
 0x708   :  { %3158 = vtanh.f32 %v2319_v35 }
 0x709   :  { %2461 = vmatpush1.bf16.msra.mxu0 %v5342_v0  ;;  %2502 = vmatpush1.bf16.msra.mxu1 %v5343_v29  ;;  %3160 = vtanh.f32 %v2321_v40 }
 0x70a   :  { %2462 = vmatprep.subr.bf16.mxu0 %v5344_v45  ;;  %2503 = vmatprep.subr.bf16.mxu1 %v5345_v55  ;;  %3162 = vtanh.f32 %v2320_v51 }
 0x70d   :  { %2463 = vmatpush1.bf16.msra.mxu0 %v5346_v60  ;;  %2504 = vmatpush1.bf16.msra.mxu1 %v5347_v32 }
 0x70e   :  { %2879 = vmatprep.subr.bf16.mxu0 %v3010_v16 }
 0x711   :  { %v3157_v28 = vpop.eup %3156 }
 0x712   :  { %v2335_v31 = vmul.f32 0.5, %v3157_v28  ;;  %v3159_v59 = vpop.eup %3158 }
 0x713   :  { %v2336_v17 = vmul.f32 0.5, %v3159_v59  ;;  %v3161_v22 = vpop.eup %3160  ;;  %v5352_v59 = vld [vmem:[#allocation17_spill] sm:$0xff] }
 0x714   :  { %v2338_v42 = vadd.f32 0.5, %v2335_v31  ;;  %v3163_v41 = vpop.eup %3162 }
 0x715   :  { %v2339_v14 = vadd.f32 0.5, %v2336_v17  ;;  %v2337_v18 = vmul.f32 0.5, %v3163_v41  ;;  %v5353_v17 = vld [vmem:[#allocation43_spill] sm:$0xff] }
 0x716   :  { %v2348_v24 = vmul.f32 %v3161_v22, %v2338_v42 }
 0x717   :  { %v2347_v25 = vmul.f32 %v2339_v14, %v4786_v23  ;;  %v2340_v19 = vadd.f32 0.5, %v2337_v18  ;;  %v3011_v23 = vld [vmem:[%s4952_s5] sm:$0xff]   ;;  %v5355_v18 = vld [vmem:[#allocation44_spill] sm:$0xff] }
 0x719   :  { %v4880_v4 = vadd.f32 %v2348_v24, %v2347_v25  ;;  %v5354_v25 = vld [vmem:[#allocation18_spill] sm:$0xff] }
 0x71b   :  { %3164 = vtanh.f32 %v4880_v4 }
 0x725   :  { %v3165_v20 = vpop.eup %3164 }
 0x726   :  { %v2351_v15 = vmul.f32 %v3165_v20, %v2340_v19 }
 0x728   :  { %v2447_v52 = vpack.c.bf16 %v2351_v15, %v2351_v15 }
 0x72a   :  { %2481 = vmatmul.mubr.bf16.vlgmr.msra.gmra.mrb[76].mxu0 %v2447_v52  ;;  %2522 = vmatmul.mubr.bf16.vlgmr.msra.gmra.mrb[92].mxu1 %v2447_v52 }
 0x72b   :  { %2880 = vmatpush3.bf16.msra.mxu0 %v3011_v23 }
 0x72c   :  { %2881 = vmatprep.subr.bf16.mxu0 %v3012_v21 }
 0x72f   :  { %2882 = vmatpush3.bf16.msra.mxu0 %v3013_v54 }
 0x730   :  { %2883 = vmatprep.subr.bf16.mxu0 %v3014_v38 }
 0x733   :  { %2884 = vmatpush3.bf16.msra.mxu0 %v3015_v27 }
 0x734   :  { %2885 = vmatprep.subr.bf16.mxu0 %v3016_v26 }
 0x737   :  { %2886 = vmatpush3.bf16.msra.mxu0 %v3017_v62 }
 0x738   :  { %2887 = vmatprep.subr.bf16.mxu0 %v3018_v57 }
 0x73b   :  { %2888 = vmatpush3.bf16.msra.mxu0 %v3019_v61 }
 0x73c   :  { %2889 = vmatprep.subr.bf16.mxu0 %v3020_v49 }
 0x73f   :  { %2890 = vmatpush3.bf16.msra.mxu0 %v3021_v53 }
 0x740   :  { %2891 = vmatprep.subr.bf16.mxu0 %v3022_v56 }
 0x743   :  { %2892 = vmatpush3.bf16.msra.mxu0 %v3023_v6 }
 0x744   :  { %2893 = vmatprep.subr.bf16.mxu0 %v3024_v58 }
 0x747   :  { %2894 = vmatpush3.bf16.msra.mxu0 %v3025_v2 }
 0x7c3   :  { %v2395_v1 = vpop.f32.mrb[72].mxu0  ;;  %v2436_v5 = vpop.f32.mrb[88].mxu1 }
 0x7c4   :  { %v2443_v3 = vadd.f32 %v2395_v1, %v5348_v47  ;;  %v2445_v63 = vadd.f32 %v2436_v5, %v5349_v7  ;;  %v2397_v8 = vpop.f32.mrb[73].mxu0  ;;  %v2438_v9 = vpop.f32.mrb[89].mxu1  ;;  %v2862_v47 = vld [vmem:[%s4953_s6] ss:$0 sm:$0xff] }
 0x7c5   :  { %v2444_v11 = vadd.f32 %v2397_v8, %v5350_v10  ;;  %v2446_v13 = vadd.f32 %v2438_v9, %v5351_v12  ;;  %v2399_v51 = vpop.f32.mrb[74].mxu0  ;;  %v2440_v44 = vpop.f32.mrb[90].mxu1 }
 0x7c6   :  { %3166 = vtanh.f32 %v2443_v3  ;;  %v2400_v39 = vpop.f32.mrb[75].mxu0  ;;  %v2441_v50 = vpop.f32.mrb[91].mxu1 }
 0x7c7   :  { %3168 = vtanh.f32 %v2444_v11 }
 0x7c8   :  { %3170 = vtanh.f32 %v2446_v13 }
 0x7c9   :  { %3172 = vtanh.f32 %v2445_v63 }
 0x7d0   :  { %v3167_v35 = vpop.eup %3166 }
 0x7d1   :  { %v2537_v46 = vmul.f32 0.5, %v3167_v35  ;;  %v3169_v40 = vpop.eup %3168 }
 0x7d2   :  { %v2538_v48 = vmul.f32 0.5, %v3169_v40  ;;  %v3171_v37 = vpop.eup %3170 }
 0x7d3   :  { %v2540_v34 = vadd.f32 0.5, %v2537_v46  ;;  %v3173_v29 = vpop.eup %3172 }
 0x7d4   :  { %v2541_v30 = vadd.f32 0.5, %v2538_v48  ;;  %v2539_v45 = vmul.f32 0.5, %v3173_v29 }
 0x7d5   :  { %v2555_v36 = vmul.f32 %v3171_v37, %v2540_v34 }
 0x7d6   :  { %v2554_v33 = vmul.f32 %v2541_v30, %v4840_v43  ;;  %v2542_v55 = vadd.f32 0.5, %v2539_v45 }
 0x7d8   :  { %v2556_v0 = vadd.f32 %v2555_v36, %v2554_v33 }
 0x7da   :  { %3174 = vtanh.f32 %v2556_v0 }
 0x7e4   :  { %v3175_v60 = vpop.eup %3174 }
 0x7e5   :  { %v2558_v32 = vmul.f32 %v3175_v60, %v2542_v55 }
 0x7e7   :  { %v2564_v1 = vpack.c.bf16 %v2558_v32, %v2558_v32 }
 0x7fd   :  { %v2482_v28 = vpop.f32.mrb[76].mxu0  ;;  %v2523_v31 = vpop.f32.mrb[92].mxu1 }
 0x7fe   :  { %v2530_v42 = vadd.f32 %v2482_v28, %v5352_v59  ;;  %v2532_v22 = vadd.f32 %v2523_v31, %v5353_v17  ;;  %v2484_v14 = vpop.f32.mrb[77].mxu0  ;;  %v2525_v24 = vpop.f32.mrb[93].mxu1 }
 0x7ff   :  { %v2531_v41 = vadd.f32 %v2484_v14, %v5354_v25  ;;  %v2533_v19 = vadd.f32 %v2525_v24, %v5355_v18  ;;  %v2486_v43 = vpop.f32.mrb[78].mxu0  ;;  %v2527_v20 = vpop.f32.mrb[94].mxu1 }
 0x800   :  { %3176 = vtanh.f32 %v2530_v42  ;;  %v2487_v15 = vpop.f32.mrb[79].mxu0  ;;  %v2528_v52 = vpop.f32.mrb[95].mxu1 }
 0x801   :  { %3178 = vtanh.f32 %v2531_v41 }
 0x802   :  { %3180 = vtanh.f32 %v2533_v19 }
 0x803   :  { %3182 = vtanh.f32 %v2532_v22 }
 0x80a   :  { %v3177_v16 = vpop.eup %3176 }
 0x80b   :  { %v2547_v23 = vmul.f32 0.5, %v3177_v16  ;;  %v3179_v21 = vpop.eup %3178 }
 0x80c   :  { %v2548_v38 = vmul.f32 0.5, %v3179_v21  ;;  %v3181_v27 = vpop.eup %3180 }
 0x80d   :  { %v2550_v54 = vadd.f32 0.5, %v2547_v23  ;;  %v3183_v49 = vpop.eup %3182 }
 0x80e   :  { %v2551_v26 = vadd.f32 0.5, %v2548_v38  ;;  %v2549_v53 = vmul.f32 0.5, %v3183_v49 }
 0x80f   :  { %v2560_v62 = vmul.f32 %v3181_v27, %v2550_v54 }
 0x810   :  { %v2559_v57 = vmul.f32 %v2551_v26, %v4880_v4  ;;  %v2552_v56 = vadd.f32 0.5, %v2549_v53 }
 0x812   :  { %v2561_v61 = vadd.f32 %v2560_v62, %v2559_v57 }
 0x814   :  { %3184 = vtanh.f32 %v2561_v61 }
 0x81e   :  { %v3185_v6 = vpop.eup %3184 }
 0x81f   :  { %v2563_v58 = vmul.f32 %v3185_v6, %v2552_v56 }
 0x821   :  { %v2565_v2 = vpack.c.bf16 %v2563_v58, %v2563_v58 }
 0x823   :  { %2733 = vmatprep.mubr.bf16.mxu0 %v2565_v2 }
 0x824   :  { %2734 = vmatmul.mubr.bf16.vlgmr.msra.gmra.mrb[80].mxu0 %v2564_v1 }
 0x8f7   :  { %v2895_v5 = vpop.f32.mrb[80].mxu0 }
 0x8f8   :  { %v2896_v3 = vpop.f32.mrb[81].mxu0 }
 0x8f9   :  { %v2897_v7 = vadd.f32 %v2896_v3, %v2895_v5  ;;  %v2898_v63 = vpop.f32.mrb[82].mxu0 }
 0x8fa   :  { %v2899_v4 = vpop.f32.mrb[83].mxu0 }
 0x8fb   :  { %v2736_v8 = vadd.f32 %v2897_v7, %v2862_v47 }
 0x8fd   :  { %2741 = vst [vmem:[%s4954_s7] sm:$0xff] %v2736_v8 }

</bundles_post_ra>
